<compile_context>
chip_gen: v6e
topology: v6e:2x2x1
jax: 0.10.0
libtpu: 0.0.40
codegen_flags: <defaults>
</compile_context>

<pallas_src>
import functools
import math

import jax
import jax.numpy as jnp
from jax.experimental import pallas as pl
from jax.experimental.pallas import tpu as pltpu


# --------------------------------------------------------------------------- in-kernel helpers

def _layernorm(x, g_ref, b_ref, eps):
    """LayerNorm over last dim. x: (rows, D) value; g/b: (1, D) refs."""
    x = x.astype(jnp.float32)
    mu = jnp.mean(x, axis=-1, keepdims=True)
    var = jnp.mean(jnp.square(x - mu), axis=-1, keepdims=True)
    return (x - mu) * jax.lax.rsqrt(var + eps) * g_ref[...] + b_ref[...]


def _add_layernorm(x, res, g_ref, b_ref, eps):
    return _layernorm(x + res, g_ref, b_ref, eps)


def _linear(x, w_ref, b_ref):
    return jnp.dot(x, w_ref[...], preferred_element_type=jnp.float32) + b_ref[...]


def _mha(q_flat, kv_flat, wo_ref, bo_ref, *, bb, nh, H, scale):
    """Multi-head attention, all batch elements & heads in one pass.

    q_flat:  (bb*Nq, H)   -- projected queries (bias already added)
    kv_flat: (bb*Nk, 2H)  -- [:, :H] keys, [:, H:] values
    The per-head output projection wo[h] is folded into the head loop, so
    head outputs are accumulated directly into the (rows, H) context
    (no lane-dim head concatenation).
    """
    dh = H // nh
    rows_q = q_flat.shape[0]
    rows_k = kv_flat.shape[0]
    Nq = rows_q // bb
    Nk = rows_k // bb
    q3 = q_flat.reshape(bb, Nq, H)
    kv3 = kv_flat.reshape(bb, Nk, 2 * H)
    wo = wo_ref[...]

    ctx = jnp.zeros((rows_q, H), jnp.float32)
    for h in range(nh):
        qh = q3[:, :, h * dh:(h + 1) * dh] * scale           # scale folded into q
        kh = kv3[:, :, h * dh:(h + 1) * dh]
        vh = kv3[:, :, H + h * dh:H + (h + 1) * dh]
        s = jnp.einsum('bqd,bkd->bqk', qh, kh,
                       preferred_element_type=jnp.float32)
        s = s - jnp.max(s, axis=-1, keepdims=True)
        p = jnp.exp(s)
        p = p * pl.reciprocal(jnp.sum(p, axis=-1, keepdims=True), approx=True)
        oh = jnp.einsum('bqk,bkd->bqd', p, vh,
                        preferred_element_type=jnp.float32)  # (bb, Nq, dh)
        ctx = ctx + jnp.dot(oh.reshape(rows_q, dh), wo[h * dh:(h + 1) * dh, :],
                            preferred_element_type=jnp.float32)
    return ctx + bo_ref[...]


def _bert_layer(xf, vf, lp, *, bb, nh, H, eps=1e-12):
    scale = 1.0 / math.sqrt(H // nh)

    # ---- self attention (query tokens only; all-ones mask -> no masking)
    qkv = _linear(xf, lp["sa_wqkv"], lp["sa_bqkv"])          # (rows, 3H) fused QKV
    a = _mha(qkv[:, :H], qkv[:, H:], lp["sa_wo"], lp["sa_bo"],
             bb=bb, nh=nh, H=H, scale=scale)
    xf = _add_layernorm(a, xf, lp["sa_ln_g"], lp["sa_ln_b"], eps)

    # ---- cross attention to visual features (cross_attention_freq=1 -> every layer)
    q = _linear(xf, lp["ca_wq"], lp["ca_bq"])                # (rows, H)
    kv = _linear(vf, lp["ca_wkv"], lp["ca_bkv"])             # (rows_v, 2H) fused K/V
    a = _mha(q, kv, lp["ca_wo"], lp["ca_bo"], bb=bb, nh=nh, H=H, scale=scale)
    xf = _add_layernorm(a, xf, lp["ca_ln_g"], lp["ca_ln_b"], eps)

    # ---- feed-forward (query FFN path)
    # TODO(synk): PyTorch nn.GELU uses exact erf; tanh approximation used here.
    hdn = jax.nn.gelu(_linear(xf, lp["ffn_wi"], lp["ffn_bi"]), approximate=True)
    hdn = _linear(hdn, lp["ffn_wo"], lp["ffn_bo"])
    xf = _add_layernorm(hdn, xf, lp["ffn_ln_g"], lp["ffn_ln_b"], eps)
    return xf


# --------------------------------------------------------------------------- fused kernel

def _vl_projector_kernel(*refs, treedef, cfg, bb):
    vis_ref = refs[0]                                # (bb, N_img, D_v)
    o_ref = refs[-1]                                 # (bb * NQ, d_model)
    p = jax.tree_util.tree_unflatten(treedef, refs[1:-1])   # refs, same structure as params

    H, nh, NQ, Nv, Dv = cfg["H"], cfg["nh"], cfg["NQ"], cfg["N_img"], cfg["D_v"]

    # visual LayerNorm (nn.LayerNorm default eps=1e-5); stays resident in VMEM.
    vf = _layernorm(vis_ref[...].reshape(bb * Nv, Dv),
                    p["visual_ln_g"], p["visual_ln_b"], 1e-5)

    # Q-Former embeddings: LayerNorm(query_tokens) ONCE, then tile across batch.
    qt = _layernorm(p["query_tokens"][...], p["emb_ln_g"], p["emb_ln_b"], 1e-12)
    xf = qt if bb == 1 else jnp.concatenate([qt] * bb, axis=0)   # (bb*NQ, H)

    for lp in p["layers"]:
        xf = _bert_layer(xf, vf, lp, bb=bb, nh=nh, H=H)

    # visual_proj: Linear -> GELU -> Linear (build_mlp, depth=2)
    y = jax.nn.gelu(_linear(xf, p["proj_w1"], p["proj_b1"]), approximate=True)
    y = _linear(y, p["proj_w2"], p["proj_b2"])
    o_ref[...] = y.astype(o_ref.dtype)


# --------------------------------------------------------------------------- wrapper

def vl_projector_forward(params, visual_feature, *, cfg):
    b, tn, d = visual_feature.shape
    Nv, NQ, d_model = cfg["N_img"], cfg["NQ"], cfg["d_model"]
    t = tn // Nv
    B = b * t

    x_vis = visual_feature.reshape(B, Nv, d)

    # Split the (b*t) batch across grid steps.  "parallel" lets v7x shard its
    # two TensorCores; weights use constant index_maps so they are fetched once.
    nbb = 2 if (B % 2 == 0 and B >= 2) else 1
    bb = B // nbb

    leaves, treedef = jax.tree_util.tree_flatten(params)   # all leaves are 2-D
    kernel = functools.partial(_vl_projector_kernel, treedef=treedef, cfg=cfg, bb=bb)

    weight_specs = [pl.BlockSpec(leaf.shape, lambda i: (0, 0)) for leaf in leaves]

    out = pl.pallas_call(
        kernel,
        out_shape=jax.ShapeDtypeStruct((B * NQ, d_model), visual_feature.dtype),
        grid=(nbb,),
        in_specs=[pl.BlockSpec((bb, Nv, d), lambda i: (i, 0, 0))] + weight_specs,
        out_specs=pl.BlockSpec((bb * NQ, d_model), lambda i: (i, 0)),
        compiler_params=pltpu.CompilerParams(
            dimension_semantics=("parallel",)),
    )(x_vis, *leaves)

    return out.reshape(b, t * NQ, d_model)


# --------------------------------------------------------------------------- params

def init_params(key, cfg):
    D_v, H, I, NQ, d_model, L = (cfg["D_v"], cfg["H"], cfg["I"], cfg["NQ"],
                                 cfg["d_model"], cfg["L"])
    keys = iter(jax.random.split(key, 64))

    def dense(din, dout):
        w = jax.random.normal(next(keys), (din, dout), jnp.float32) * 0.02
        return w, jnp.zeros((1, dout), jnp.float32)          # biases stored (1, D)

    def ln(dd):
        return jnp.ones((1, dd), jnp.float32), jnp.zeros((1, dd), jnp.float32)

    params = {}
    params["visual_ln_g"], params["visual_ln_b"] = ln(D_v)
    params["query_tokens"] = jax.random.normal(next(keys), (NQ, H), jnp.float32) * 0.02
    params["emb_ln_g"], params["emb_ln_b"] = ln(H)

    layers = []
    for _ in range(L):
        p = {}
        p["sa_wqkv"], p["sa_bqkv"] = dense(H, 3 * H)          # fused Q|K|V
        p["sa_wo"], p["sa_bo"] = dense(H, H)
        p["sa_ln_g"], p["sa_ln_b"] = ln(H)
        p["ca_wq"], p["ca_bq"] = dense(H, H)
        p["ca_wkv"], p["ca_bkv"] = dense(D_v, 2 * H)          # fused K|V (encoder_width = D_v)
        p["ca_wo"], p["ca_bo"] = dense(H, H)
        p["ca_ln_g"], p["ca_ln_b"] = ln(H)
        p["ffn_wi"], p["ffn_bi"] = dense(H, I)
        p["ffn_wo"], p["ffn_bo"] = dense(I, H)
        p["ffn_ln_g"], p["ffn_ln_b"] = ln(H)
        layers.append(p)
    params["layers"] = layers

    params["proj_w1"], params["proj_b1"] = dense(H, d_model)
    params["proj_w2"], params["proj_b2"] = dense(d_model, d_model)
    return params


# --------------------------------------------------------------------------- main

if __name__ == "__main__":
    # Small shapes consistent with the module's forward:
    #   visual_feature: (b, t * image_token_nums, hidden_size)
    cfg = dict(
        D_v=32,      # hidden_size (visual feature dim)
        H=32,        # Q-Former hidden size
        nh=4,        # attention heads
        I=64,        # FFN intermediate size
        NQ=8,        # num_query_token
        N_img=8,     # image_token_nums
        d_model=48,  # output d_model
        L=2,         # num_hidden_layers
    )
    b, t = 2, 2

    key = jax.random.PRNGKey(0)
    kp, kx = jax.random.split(key)
    params = init_params(kp, cfg)
    visual_feature = jax.random.normal(
        kx, (b, t * cfg["N_img"], cfg["D_v"]), jnp.float32)

    fwd = jax.jit(functools.partial(vl_projector_forward, cfg=cfg))
    out = fwd(params, visual_feature)
    out = jax.block_until_ready(out)

    assert out.shape == (b, t * cfg["NQ"], cfg["d_model"]), out.shape
    assert out.dtype == jnp.float32
    assert bool(jnp.all(jnp.isfinite(out)))
    print("KERNEL_OK")
</pallas_src>

<mosaic_0001>
module attributes {stable_mosaic.version = 11 : i64} {
  func.func @_vl_projector_kernel(%arg0: i32, %arg1: memref<2x8x32xf32, #tpu.memory_space<vmem>>, %arg2: memref<1x32xf32, #tpu.memory_space<vmem>>, %arg3: memref<1x32xf32, #tpu.memory_space<vmem>>, %arg4: memref<1x64xf32, #tpu.memory_space<vmem>>, %arg5: memref<1x32xf32, #tpu.memory_space<vmem>>, %arg6: memref<1x32xf32, #tpu.memory_space<vmem>>, %arg7: memref<1x32xf32, #tpu.memory_space<vmem>>, %arg8: memref<1x32xf32, #tpu.memory_space<vmem>>, %arg9: memref<32x64xf32, #tpu.memory_space<vmem>>, %arg10: memref<32x32xf32, #tpu.memory_space<vmem>>, %arg11: memref<32x32xf32, #tpu.memory_space<vmem>>, %arg12: memref<1x64xf32, #tpu.memory_space<vmem>>, %arg13: memref<1x32xf32, #tpu.memory_space<vmem>>, %arg14: memref<1x32xf32, #tpu.memory_space<vmem>>, %arg15: memref<1x32xf32, #tpu.memory_space<vmem>>, %arg16: memref<32x64xf32, #tpu.memory_space<vmem>>, %arg17: memref<64x32xf32, #tpu.memory_space<vmem>>, %arg18: memref<1x32xf32, #tpu.memory_space<vmem>>, %arg19: memref<1x96xf32, #tpu.memory_space<vmem>>, %arg20: memref<1x32xf32, #tpu.memory_space<vmem>>, %arg21: memref<1x32xf32, #tpu.memory_space<vmem>>, %arg22: memref<32x32xf32, #tpu.memory_space<vmem>>, %arg23: memref<32x96xf32, #tpu.memory_space<vmem>>, %arg24: memref<1x64xf32, #tpu.memory_space<vmem>>, %arg25: memref<1x32xf32, #tpu.memory_space<vmem>>, %arg26: memref<1x32xf32, #tpu.memory_space<vmem>>, %arg27: memref<1x32xf32, #tpu.memory_space<vmem>>, %arg28: memref<1x32xf32, #tpu.memory_space<vmem>>, %arg29: memref<32x64xf32, #tpu.memory_space<vmem>>, %arg30: memref<32x32xf32, #tpu.memory_space<vmem>>, %arg31: memref<32x32xf32, #tpu.memory_space<vmem>>, %arg32: memref<1x64xf32, #tpu.memory_space<vmem>>, %arg33: memref<1x32xf32, #tpu.memory_space<vmem>>, %arg34: memref<1x32xf32, #tpu.memory_space<vmem>>, %arg35: memref<1x32xf32, #tpu.memory_space<vmem>>, %arg36: memref<32x64xf32, #tpu.memory_space<vmem>>, %arg37: memref<64x32xf32, #tpu.memory_space<vmem>>, %arg38: memref<1x32xf32, #tpu.memory_space<vmem>>, %arg39: memref<1x96xf32, #tpu.memory_space<vmem>>, %arg40: memref<1x32xf32, #tpu.memory_space<vmem>>, %arg41: memref<1x32xf32, #tpu.memory_space<vmem>>, %arg42: memref<32x32xf32, #tpu.memory_space<vmem>>, %arg43: memref<32x96xf32, #tpu.memory_space<vmem>>, %arg44: memref<1x48xf32, #tpu.memory_space<vmem>>, %arg45: memref<1x48xf32, #tpu.memory_space<vmem>>, %arg46: memref<32x48xf32, #tpu.memory_space<vmem>>, %arg47: memref<48x48xf32, #tpu.memory_space<vmem>>, %arg48: memref<8x32xf32, #tpu.memory_space<vmem>>, %arg49: memref<1x32xf32, #tpu.memory_space<vmem>>, %arg50: memref<1x32xf32, #tpu.memory_space<vmem>>, %arg51: memref<16x48xf32, #tpu.memory_space<vmem>>) attributes {dimension_semantics = [#tpu.dimension_semantics<parallel>], iteration_bounds = array<i64: 2>, scalar_prefetch = 0 : i64, scratch_operands = 0 : i64, tpu.core_type = #tpu.core_type<tc>, window_params = [{transform_indices = @transform_0, window_bounds = array<i64: 2, 8, 32>}, {pipeline_mode = #tpu.pipeline_mode<synchronous>, transform_indices = @transform_1, window_bounds = array<i64: 1, 32>}, {pipeline_mode = #tpu.pipeline_mode<synchronous>, transform_indices = @transform_2, window_bounds = array<i64: 1, 32>}, {pipeline_mode = #tpu.pipeline_mode<synchronous>, transform_indices = @transform_3, window_bounds = array<i64: 1, 64>}, {pipeline_mode = #tpu.pipeline_mode<synchronous>, transform_indices = @transform_4, window_bounds = array<i64: 1, 32>}, {pipeline_mode = #tpu.pipeline_mode<synchronous>, transform_indices = @transform_5, window_bounds = array<i64: 1, 32>}, {pipeline_mode = #tpu.pipeline_mode<synchronous>, transform_indices = @transform_6, window_bounds = array<i64: 1, 32>}, {pipeline_mode = #tpu.pipeline_mode<synchronous>, transform_indices = @transform_7, window_bounds = array<i64: 1, 32>}, {pipeline_mode = #tpu.pipeline_mode<synchronous>, transform_indices = @transform_8, window_bounds = array<i64: 32, 64>}, {pipeline_mode = #tpu.pipeline_mode<synchronous>, transform_indices = @transform_9, window_bounds = array<i64: 32, 32>}, {pipeline_mode = #tpu.pipeline_mode<synchronous>, transform_indices = @transform_10, window_bounds = array<i64: 32, 32>}, {pipeline_mode = #tpu.pipeline_mode<synchronous>, transform_indices = @transform_11, window_bounds = array<i64: 1, 64>}, {pipeline_mode = #tpu.pipeline_mode<synchronous>, transform_indices = @transform_12, window_bounds = array<i64: 1, 32>}, {pipeline_mode = #tpu.pipeline_mode<synchronous>, transform_indices = @transform_13, window_bounds = array<i64: 1, 32>}, {pipeline_mode = #tpu.pipeline_mode<synchronous>, transform_indices = @transform_14, window_bounds = array<i64: 1, 32>}, {pipeline_mode = #tpu.pipeline_mode<synchronous>, transform_indices = @transform_15, window_bounds = array<i64: 32, 64>}, {pipeline_mode = #tpu.pipeline_mode<synchronous>, transform_indices = @transform_16, window_bounds = array<i64: 64, 32>}, {pipeline_mode = #tpu.pipeline_mode<synchronous>, transform_indices = @transform_17, window_bounds = array<i64: 1, 32>}, {pipeline_mode = #tpu.pipeline_mode<synchronous>, transform_indices = @transform_18, window_bounds = array<i64: 1, 96>}, {pipeline_mode = #tpu.pipeline_mode<synchronous>, transform_indices = @transform_19, window_bounds = array<i64: 1, 32>}, {pipeline_mode = #tpu.pipeline_mode<synchronous>, transform_indices = @transform_20, window_bounds = array<i64: 1, 32>}, {pipeline_mode = #tpu.pipeline_mode<synchronous>, transform_indices = @transform_21, window_bounds = array<i64: 32, 32>}, {pipeline_mode = #tpu.pipeline_mode<synchronous>, transform_indices = @transform_22, window_bounds = array<i64: 32, 96>}, {pipeline_mode = #tpu.pipeline_mode<synchronous>, transform_indices = @transform_23, window_bounds = array<i64: 1, 64>}, {pipeline_mode = #tpu.pipeline_mode<synchronous>, transform_indices = @transform_24, window_bounds = array<i64: 1, 32>}, {pipeline_mode = #tpu.pipeline_mode<synchronous>, transform_indices = @transform_25, window_bounds = array<i64: 1, 32>}, {pipeline_mode = #tpu.pipeline_mode<synchronous>, transform_indices = @transform_26, window_bounds = array<i64: 1, 32>}, {pipeline_mode = #tpu.pipeline_mode<synchronous>, transform_indices = @transform_27, window_bounds = array<i64: 1, 32>}, {pipeline_mode = #tpu.pipeline_mode<synchronous>, transform_indices = @transform_28, window_bounds = array<i64: 32, 64>}, {pipeline_mode = #tpu.pipeline_mode<synchronous>, transform_indices = @transform_29, window_bounds = array<i64: 32, 32>}, {pipeline_mode = #tpu.pipeline_mode<synchronous>, transform_indices = @transform_30, window_bounds = array<i64: 32, 32>}, {pipeline_mode = #tpu.pipeline_mode<synchronous>, transform_indices = @transform_31, window_bounds = array<i64: 1, 64>}, {pipeline_mode = #tpu.pipeline_mode<synchronous>, transform_indices = @transform_32, window_bounds = array<i64: 1, 32>}, {pipeline_mode = #tpu.pipeline_mode<synchronous>, transform_indices = @transform_33, window_bounds = array<i64: 1, 32>}, {pipeline_mode = #tpu.pipeline_mode<synchronous>, transform_indices = @transform_34, window_bounds = array<i64: 1, 32>}, {pipeline_mode = #tpu.pipeline_mode<synchronous>, transform_indices = @transform_35, window_bounds = array<i64: 32, 64>}, {pipeline_mode = #tpu.pipeline_mode<synchronous>, transform_indices = @transform_36, window_bounds = array<i64: 64, 32>}, {pipeline_mode = #tpu.pipeline_mode<synchronous>, transform_indices = @transform_37, window_bounds = array<i64: 1, 32>}, {pipeline_mode = #tpu.pipeline_mode<synchronous>, transform_indices = @transform_38, window_bounds = array<i64: 1, 96>}, {pipeline_mode = #tpu.pipeline_mode<synchronous>, transform_indices = @transform_39, window_bounds = array<i64: 1, 32>}, {pipeline_mode = #tpu.pipeline_mode<synchronous>, transform_indices = @transform_40, window_bounds = array<i64: 1, 32>}, {pipeline_mode = #tpu.pipeline_mode<synchronous>, transform_indices = @transform_41, window_bounds = array<i64: 32, 32>}, {pipeline_mode = #tpu.pipeline_mode<synchronous>, transform_indices = @transform_42, window_bounds = array<i64: 32, 96>}, {pipeline_mode = #tpu.pipeline_mode<synchronous>, transform_indices = @transform_43, window_bounds = array<i64: 1, 48>}, {pipeline_mode = #tpu.pipeline_mode<synchronous>, transform_indices = @transform_44, window_bounds = array<i64: 1, 48>}, {pipeline_mode = #tpu.pipeline_mode<synchronous>, transform_indices = @transform_45, window_bounds = array<i64: 32, 48>}, {pipeline_mode = #tpu.pipeline_mode<synchronous>, transform_indices = @transform_46, window_bounds = array<i64: 48, 48>}, {pipeline_mode = #tpu.pipeline_mode<synchronous>, transform_indices = @transform_47, window_bounds = array<i64: 8, 32>}, {pipeline_mode = #tpu.pipeline_mode<synchronous>, transform_indices = @transform_48, window_bounds = array<i64: 1, 32>}, {pipeline_mode = #tpu.pipeline_mode<synchronous>, transform_indices = @transform_49, window_bounds = array<i64: 1, 32>}, {transform_indices = @transform_50, window_bounds = array<i64: 16, 48>}]} {
    %c0 = arith.constant 0 : index
    %c0_0 = arith.constant 0 : index
    %c0_1 = arith.constant 0 : index
    %0 = vector.load %arg1[%c0, %c0_0, %c0_1] : memref<2x8x32xf32, #tpu.memory_space<vmem>>, vector<2x8x32xf32>
    %1 = vector.shape_cast %0 : vector<2x8x32xf32> to vector<16x32xf32>
    %cst = arith.constant dense<0.000000e+00> : vector<16xf32>
    %2 = vector.multi_reduction <add>, %1, %cst [1] : vector<16x32xf32> to vector<16xf32>
    %3 = vector.shape_cast %2 : vector<16xf32> to vector<16x1xf32>
    %cst_2 = arith.constant 3.200000e+01 : f32
    %4 = vector.broadcast %cst_2 : f32 to vector<16x1xf32>
    %5 = arith.divf %3, %4 : vector<16x1xf32>
    %6 = vector.broadcast %5 : vector<16x1xf32> to vector<16x32xf32>
    %7 = arith.subf %1, %6 : vector<16x32xf32>
    %8 = arith.mulf %7, %7 : vector<16x32xf32>
    %cst_3 = arith.constant dense<0.000000e+00> : vector<16xf32>
    %9 = vector.multi_reduction <add>, %8, %cst_3 [1] : vector<16x32xf32> to vector<16xf32>
    %10 = vector.shape_cast %9 : vector<16xf32> to vector<16x1xf32>
    %cst_4 = arith.constant 3.200000e+01 : f32
    %11 = vector.broadcast %cst_4 : f32 to vector<16x1xf32>
    %12 = arith.divf %10, %11 : vector<16x1xf32>
    %13 = vector.broadcast %5 : vector<16x1xf32> to vector<16x32xf32>
    %14 = arith.subf %1, %13 : vector<16x32xf32>
    %cst_5 = arith.constant 9.99999974E-6 : f32
    %15 = vector.broadcast %cst_5 : f32 to vector<16x1xf32>
    %16 = arith.addf %12, %15 : vector<16x1xf32>
    %17 = math.rsqrt %16 : vector<16x1xf32>
    %18 = vector.broadcast %17 : vector<16x1xf32> to vector<16x32xf32>
    %19 = arith.mulf %14, %18 : vector<16x32xf32>
    %c0_6 = arith.constant 0 : index
    %c0_7 = arith.constant 0 : index
    %20 = vector.load %arg50[%c0_6, %c0_7] : memref<1x32xf32, #tpu.memory_space<vmem>>, vector<1x32xf32>
    %21 = vector.broadcast %20 : vector<1x32xf32> to vector<16x32xf32>
    %22 = arith.mulf %19, %21 : vector<16x32xf32>
    %c0_8 = arith.constant 0 : index
    %c0_9 = arith.constant 0 : index
    %23 = vector.load %arg49[%c0_8, %c0_9] : memref<1x32xf32, #tpu.memory_space<vmem>>, vector<1x32xf32>
    %24 = vector.broadcast %23 : vector<1x32xf32> to vector<16x32xf32>
    %25 = arith.addf %22, %24 : vector<16x32xf32>
    %c0_10 = arith.constant 0 : index
    %c0_11 = arith.constant 0 : index
    %26 = vector.load %arg48[%c0_10, %c0_11] : memref<8x32xf32, #tpu.memory_space<vmem>>, vector<8x32xf32>
    %cst_12 = arith.constant dense<0.000000e+00> : vector<8xf32>
    %27 = vector.multi_reduction <add>, %26, %cst_12 [1] : vector<8x32xf32> to vector<8xf32>
    %28 = vector.shape_cast %27 : vector<8xf32> to vector<8x1xf32>
    %cst_13 = arith.constant 3.200000e+01 : f32
    %29 = vector.broadcast %cst_13 : f32 to vector<8x1xf32>
    %30 = arith.divf %28, %29 : vector<8x1xf32>
    %31 = vector.broadcast %30 : vector<8x1xf32> to vector<8x32xf32>
    %32 = arith.subf %26, %31 : vector<8x32xf32>
    %33 = arith.mulf %32, %32 : vector<8x32xf32>
    %cst_14 = arith.constant dense<0.000000e+00> : vector<8xf32>
    %34 = vector.multi_reduction <add>, %33, %cst_14 [1] : vector<8x32xf32> to vector<8xf32>
    %35 = vector.shape_cast %34 : vector<8xf32> to vector<8x1xf32>
    %cst_15 = arith.constant 3.200000e+01 : f32
    %36 = vector.broadcast %cst_15 : f32 to vector<8x1xf32>
    %37 = arith.divf %35, %36 : vector<8x1xf32>
    %38 = vector.broadcast %30 : vector<8x1xf32> to vector<8x32xf32>
    %39 = arith.subf %26, %38 : vector<8x32xf32>
    %cst_16 = arith.constant 9.99999996E-13 : f32
    %40 = vector.broadcast %cst_16 : f32 to vector<8x1xf32>
    %41 = arith.addf %37, %40 : vector<8x1xf32>
    %42 = math.rsqrt %41 : vector<8x1xf32>
    %43 = vector.broadcast %42 : vector<8x1xf32> to vector<8x32xf32>
    %44 = arith.mulf %39, %43 : vector<8x32xf32>
    %c0_17 = arith.constant 0 : index
    %c0_18 = arith.constant 0 : index
    %45 = vector.load %arg3[%c0_17, %c0_18] : memref<1x32xf32, #tpu.memory_space<vmem>>, vector<1x32xf32>
    %46 = vector.broadcast %45 : vector<1x32xf32> to vector<8x32xf32>
    %47 = arith.mulf %44, %46 : vector<8x32xf32>
    %c0_19 = arith.constant 0 : index
    %c0_20 = arith.constant 0 : index
    %48 = vector.load %arg2[%c0_19, %c0_20] : memref<1x32xf32, #tpu.memory_space<vmem>>, vector<1x32xf32>
    %49 = vector.broadcast %48 : vector<1x32xf32> to vector<8x32xf32>
    %50 = arith.addf %47, %49 : vector<8x32xf32>
    %51 = tpu.concatenate %50, %50 in 0 : vector<8x32xf32>, vector<8x32xf32> -> vector<16x32xf32>
    %c0_21 = arith.constant 0 : index
    %c0_22 = arith.constant 0 : index
    %52 = vector.load %arg23[%c0_21, %c0_22] : memref<32x96xf32, #tpu.memory_space<vmem>>, vector<32x96xf32>
    %cst_23 = arith.constant dense<0.000000e+00> : vector<16x96xf32>
    %53 = tpu.matmul %51, %52, %cst_23 {dimension_numbers = #tpu.dot_dimension_numbers<[1], [0], [0], [1], [0, 0, 1, 1], [], []>} : vector<16x32xf32>, vector<32x96xf32>, vector<16x96xf32> -> vector<16x96xf32>
    %c0_24 = arith.constant 0 : index
    %c0_25 = arith.constant 0 : index
    %54 = vector.load %arg19[%c0_24, %c0_25] : memref<1x96xf32, #tpu.memory_space<vmem>>, vector<1x96xf32>
    %55 = vector.broadcast %54 : vector<1x96xf32> to vector<16x96xf32>
    %56 = arith.addf %53, %55 : vector<16x96xf32>
    %57 = vector.extract_strided_slice %56 {offsets = [0, 0], sizes = [16, 32], strides = [1, 1]} : vector<16x96xf32> to vector<16x32xf32>
    %58 = vector.extract_strided_slice %56 {offsets = [0, 32], sizes = [16, 64], strides = [1, 1]} : vector<16x96xf32> to vector<16x64xf32>
    %59 = vector.shape_cast %57 : vector<16x32xf32> to vector<2x8x32xf32>
    %60 = vector.shape_cast %58 : vector<16x64xf32> to vector<2x8x64xf32>
    %c0_26 = arith.constant 0 : index
    %c0_27 = arith.constant 0 : index
    %61 = vector.load %arg22[%c0_26, %c0_27] : memref<32x32xf32, #tpu.memory_space<vmem>>, vector<32x32xf32>
    %cst_28 = arith.constant 0.000000e+00 : f32
    %62 = vector.broadcast %cst_28 : f32 to vector<16x32xf32>
    %63 = vector.extract_strided_slice %59 {offsets = [0, 0, 0], sizes = [2, 8, 8], strides = [1, 1, 1]} : vector<2x8x32xf32> to vector<2x8x8xf32>
    %cst_29 = arith.constant 0.353553385 : f32
    %64 = vector.broadcast %cst_29 : f32 to vector<2x8x8xf32>
    %65 = arith.mulf %63, %64 : vector<2x8x8xf32>
    %66 = vector.extract_strided_slice %60 {offsets = [0, 0, 0], sizes = [2, 8, 8], strides = [1, 1, 1]} : vector<2x8x64xf32> to vector<2x8x8xf32>
    %67 = vector.extract_strided_slice %60 {offsets = [0, 0, 32], sizes = [2, 8, 8], strides = [1, 1, 1]} : vector<2x8x64xf32> to vector<2x8x8xf32>
    "tpu.trace_start"() <{level = 10 : i32, message = "bqd,bkd->bqk"}> : () -> ()
    %cst_30 = arith.constant dense<0.000000e+00> : vector<2x8x8xf32>
    %68 = tpu.matmul %65, %66, %cst_30 {dimension_numbers = #tpu.dot_dimension_numbers<[2], [2], [1], [1], [0, 0, 0, 1, 1, 1], [0], [0]>} : vector<2x8x8xf32>, vector<2x8x8xf32>, vector<2x8x8xf32> -> vector<2x8x8xf32>
    "tpu.trace_stop"() : () -> ()
    %cst_31 = arith.constant dense<0xFF800000> : vector<2x8xf32>
    %69 = vector.multi_reduction <maximumf>, %68, %cst_31 [2] : vector<2x8x8xf32> to vector<2x8xf32>
    %70 = vector.shape_cast %69 : vector<2x8xf32> to vector<2x8x1xf32>
    %71 = vector.broadcast %70 : vector<2x8x1xf32> to vector<2x8x8xf32>
    %72 = arith.subf %68, %71 : vector<2x8x8xf32>
    %73 = math.exp %72 : vector<2x8x8xf32>
    %cst_32 = arith.constant dense<0.000000e+00> : vector<2x8xf32>
    %74 = vector.multi_reduction <add>, %73, %cst_32 [2] : vector<2x8x8xf32> to vector<2x8xf32>
    %75 = vector.shape_cast %74 : vector<2x8xf32> to vector<2x8x1xf32>
    %76 = tpu.reciprocal %75 {approx = true} : vector<2x8x1xf32> -> vector<2x8x1xf32>
    %77 = vector.broadcast %76 : vector<2x8x1xf32> to vector<2x8x8xf32>
    %78 = arith.mulf %73, %77 : vector<2x8x8xf32>
    "tpu.trace_start"() <{level = 10 : i32, message = "bqk,bkd->bqd"}> : () -> ()
    %cst_33 = arith.constant dense<0.000000e+00> : vector<2x8x8xf32>
    %79 = tpu.matmul %78, %67, %cst_33 {dimension_numbers = #tpu.dot_dimension_numbers<[2], [1], [1], [2], [0, 0, 0, 1, 1, 2], [0], [0]>} : vector<2x8x8xf32>, vector<2x8x8xf32>, vector<2x8x8xf32> -> vector<2x8x8xf32>
    "tpu.trace_stop"() : () -> ()
    %80 = vector.shape_cast %79 : vector<2x8x8xf32> to vector<16x8xf32>
    %81 = vector.extract_strided_slice %61 {offsets = [0, 0], sizes = [8, 32], strides = [1, 1]} : vector<32x32xf32> to vector<8x32xf32>
    %cst_34 = arith.constant dense<0.000000e+00> : vector<16x32xf32>
    %82 = tpu.matmul %80, %81, %cst_34 {dimension_numbers = #tpu.dot_dimension_numbers<[1], [0], [0], [1], [0, 0, 1, 1], [], []>} : vector<16x8xf32>, vector<8x32xf32>, vector<16x32xf32> -> vector<16x32xf32>
    %83 = arith.addf %62, %82 : vector<16x32xf32>
    %84 = vector.extract_strided_slice %59 {offsets = [0, 0, 8], sizes = [2, 8, 8], strides = [1, 1, 1]} : vector<2x8x32xf32> to vector<2x8x8xf32>
    %cst_35 = arith.constant 0.353553385 : f32
    %85 = vector.broadcast %cst_35 : f32 to vector<2x8x8xf32>
    %86 = arith.mulf %84, %85 : vector<2x8x8xf32>
    %87 = vector.extract_strided_slice %60 {offsets = [0, 0, 8], sizes = [2, 8, 8], strides = [1, 1, 1]} : vector<2x8x64xf32> to vector<2x8x8xf32>
    %88 = vector.extract_strided_slice %60 {offsets = [0, 0, 40], sizes = [2, 8, 8], strides = [1, 1, 1]} : vector<2x8x64xf32> to vector<2x8x8xf32>
    "tpu.trace_start"() <{level = 10 : i32, message = "bqd,bkd->bqk"}> : () -> ()
    %cst_36 = arith.constant dense<0.000000e+00> : vector<2x8x8xf32>
    %89 = tpu.matmul %86, %87, %cst_36 {dimension_numbers = #tpu.dot_dimension_numbers<[2], [2], [1], [1], [0, 0, 0, 1, 1, 1], [0], [0]>} : vector<2x8x8xf32>, vector<2x8x8xf32>, vector<2x8x8xf32> -> vector<2x8x8xf32>
    "tpu.trace_stop"() : () -> ()
    %cst_37 = arith.constant dense<0xFF800000> : vector<2x8xf32>
    %90 = vector.multi_reduction <maximumf>, %89, %cst_37 [2] : vector<2x8x8xf32> to vector<2x8xf32>
    %91 = vector.shape_cast %90 : vector<2x8xf32> to vector<2x8x1xf32>
    %92 = vector.broadcast %91 : vector<2x8x1xf32> to vector<2x8x8xf32>
    %93 = arith.subf %89, %92 : vector<2x8x8xf32>
    %94 = math.exp %93 : vector<2x8x8xf32>
    %cst_38 = arith.constant dense<0.000000e+00> : vector<2x8xf32>
    %95 = vector.multi_reduction <add>, %94, %cst_38 [2] : vector<2x8x8xf32> to vector<2x8xf32>
    %96 = vector.shape_cast %95 : vector<2x8xf32> to vector<2x8x1xf32>
    %97 = tpu.reciprocal %96 {approx = true} : vector<2x8x1xf32> -> vector<2x8x1xf32>
    %98 = vector.broadcast %97 : vector<2x8x1xf32> to vector<2x8x8xf32>
    %99 = arith.mulf %94, %98 : vector<2x8x8xf32>
    "tpu.trace_start"() <{level = 10 : i32, message = "bqk,bkd->bqd"}> : () -> ()
    %cst_39 = arith.constant dense<0.000000e+00> : vector<2x8x8xf32>
    %100 = tpu.matmul %99, %88, %cst_39 {dimension_numbers = #tpu.dot_dimension_numbers<[2], [1], [1], [2], [0, 0, 0, 1, 1, 2], [0], [0]>} : vector<2x8x8xf32>, vector<2x8x8xf32>, vector<2x8x8xf32> -> vector<2x8x8xf32>
    "tpu.trace_stop"() : () -> ()
    %101 = vector.shape_cast %100 : vector<2x8x8xf32> to vector<16x8xf32>
    %102 = vector.extract_strided_slice %61 {offsets = [8, 0], sizes = [8, 32], strides = [1, 1]} : vector<32x32xf32> to vector<8x32xf32>
    %cst_40 = arith.constant dense<0.000000e+00> : vector<16x32xf32>
    %103 = tpu.matmul %101, %102, %cst_40 {dimension_numbers = #tpu.dot_dimension_numbers<[1], [0], [0], [1], [0, 0, 1, 1], [], []>} : vector<16x8xf32>, vector<8x32xf32>, vector<16x32xf32> -> vector<16x32xf32>
    %104 = arith.addf %83, %103 : vector<16x32xf32>
    %105 = vector.extract_strided_slice %59 {offsets = [0, 0, 16], sizes = [2, 8, 8], strides = [1, 1, 1]} : vector<2x8x32xf32> to vector<2x8x8xf32>
    %cst_41 = arith.constant 0.353553385 : f32
    %106 = vector.broadcast %cst_41 : f32 to vector<2x8x8xf32>
    %107 = arith.mulf %105, %106 : vector<2x8x8xf32>
    %108 = vector.extract_strided_slice %60 {offsets = [0, 0, 16], sizes = [2, 8, 8], strides = [1, 1, 1]} : vector<2x8x64xf32> to vector<2x8x8xf32>
    %109 = vector.extract_strided_slice %60 {offsets = [0, 0, 48], sizes = [2, 8, 8], strides = [1, 1, 1]} : vector<2x8x64xf32> to vector<2x8x8xf32>
    "tpu.trace_start"() <{level = 10 : i32, message = "bqd,bkd->bqk"}> : () -> ()
    %cst_42 = arith.constant dense<0.000000e+00> : vector<2x8x8xf32>
    %110 = tpu.matmul %107, %108, %cst_42 {dimension_numbers = #tpu.dot_dimension_numbers<[2], [2], [1], [1], [0, 0, 0, 1, 1, 1], [0], [0]>} : vector<2x8x8xf32>, vector<2x8x8xf32>, vector<2x8x8xf32> -> vector<2x8x8xf32>
    "tpu.trace_stop"() : () -> ()
    %cst_43 = arith.constant dense<0xFF800000> : vector<2x8xf32>
    %111 = vector.multi_reduction <maximumf>, %110, %cst_43 [2] : vector<2x8x8xf32> to vector<2x8xf32>
    %112 = vector.shape_cast %111 : vector<2x8xf32> to vector<2x8x1xf32>
    %113 = vector.broadcast %112 : vector<2x8x1xf32> to vector<2x8x8xf32>
    %114 = arith.subf %110, %113 : vector<2x8x8xf32>
    %115 = math.exp %114 : vector<2x8x8xf32>
    %cst_44 = arith.constant dense<0.000000e+00> : vector<2x8xf32>
    %116 = vector.multi_reduction <add>, %115, %cst_44 [2] : vector<2x8x8xf32> to vector<2x8xf32>
    %117 = vector.shape_cast %116 : vector<2x8xf32> to vector<2x8x1xf32>
    %118 = tpu.reciprocal %117 {approx = true} : vector<2x8x1xf32> -> vector<2x8x1xf32>
    %119 = vector.broadcast %118 : vector<2x8x1xf32> to vector<2x8x8xf32>
    %120 = arith.mulf %115, %119 : vector<2x8x8xf32>
    "tpu.trace_start"() <{level = 10 : i32, message = "bqk,bkd->bqd"}> : () -> ()
    %cst_45 = arith.constant dense<0.000000e+00> : vector<2x8x8xf32>
    %121 = tpu.matmul %120, %109, %cst_45 {dimension_numbers = #tpu.dot_dimension_numbers<[2], [1], [1], [2], [0, 0, 0, 1, 1, 2], [0], [0]>} : vector<2x8x8xf32>, vector<2x8x8xf32>, vector<2x8x8xf32> -> vector<2x8x8xf32>
    "tpu.trace_stop"() : () -> ()
    %122 = vector.shape_cast %121 : vector<2x8x8xf32> to vector<16x8xf32>
    %123 = vector.extract_strided_slice %61 {offsets = [16, 0], sizes = [8, 32], strides = [1, 1]} : vector<32x32xf32> to vector<8x32xf32>
    %cst_46 = arith.constant dense<0.000000e+00> : vector<16x32xf32>
    %124 = tpu.matmul %122, %123, %cst_46 {dimension_numbers = #tpu.dot_dimension_numbers<[1], [0], [0], [1], [0, 0, 1, 1], [], []>} : vector<16x8xf32>, vector<8x32xf32>, vector<16x32xf32> -> vector<16x32xf32>
    %125 = arith.addf %104, %124 : vector<16x32xf32>
    %126 = vector.extract_strided_slice %59 {offsets = [0, 0, 24], sizes = [2, 8, 8], strides = [1, 1, 1]} : vector<2x8x32xf32> to vector<2x8x8xf32>
    %cst_47 = arith.constant 0.353553385 : f32
    %127 = vector.broadcast %cst_47 : f32 to vector<2x8x8xf32>
    %128 = arith.mulf %126, %127 : vector<2x8x8xf32>
    %129 = vector.extract_strided_slice %60 {offsets = [0, 0, 24], sizes = [2, 8, 8], strides = [1, 1, 1]} : vector<2x8x64xf32> to vector<2x8x8xf32>
    %130 = vector.extract_strided_slice %60 {offsets = [0, 0, 56], sizes = [2, 8, 8], strides = [1, 1, 1]} : vector<2x8x64xf32> to vector<2x8x8xf32>
    "tpu.trace_start"() <{level = 10 : i32, message = "bqd,bkd->bqk"}> : () -> ()
    %cst_48 = arith.constant dense<0.000000e+00> : vector<2x8x8xf32>
    %131 = tpu.matmul %128, %129, %cst_48 {dimension_numbers = #tpu.dot_dimension_numbers<[2], [2], [1], [1], [0, 0, 0, 1, 1, 1], [0], [0]>} : vector<2x8x8xf32>, vector<2x8x8xf32>, vector<2x8x8xf32> -> vector<2x8x8xf32>
    "tpu.trace_stop"() : () -> ()
    %cst_49 = arith.constant dense<0xFF800000> : vector<2x8xf32>
    %132 = vector.multi_reduction <maximumf>, %131, %cst_49 [2] : vector<2x8x8xf32> to vector<2x8xf32>
    %133 = vector.shape_cast %132 : vector<2x8xf32> to vector<2x8x1xf32>
    %134 = vector.broadcast %133 : vector<2x8x1xf32> to vector<2x8x8xf32>
    %135 = arith.subf %131, %134 : vector<2x8x8xf32>
    %136 = math.exp %135 : vector<2x8x8xf32>
    %cst_50 = arith.constant dense<0.000000e+00> : vector<2x8xf32>
    %137 = vector.multi_reduction <add>, %136, %cst_50 [2] : vector<2x8x8xf32> to vector<2x8xf32>
    %138 = vector.shape_cast %137 : vector<2x8xf32> to vector<2x8x1xf32>
    %139 = tpu.reciprocal %138 {approx = true} : vector<2x8x1xf32> -> vector<2x8x1xf32>
    %140 = vector.broadcast %139 : vector<2x8x1xf32> to vector<2x8x8xf32>
    %141 = arith.mulf %136, %140 : vector<2x8x8xf32>
    "tpu.trace_start"() <{level = 10 : i32, message = "bqk,bkd->bqd"}> : () -> ()
    %cst_51 = arith.constant dense<0.000000e+00> : vector<2x8x8xf32>
    %142 = tpu.matmul %141, %130, %cst_51 {dimension_numbers = #tpu.dot_dimension_numbers<[2], [1], [1], [2], [0, 0, 0, 1, 1, 2], [0], [0]>} : vector<2x8x8xf32>, vector<2x8x8xf32>, vector<2x8x8xf32> -> vector<2x8x8xf32>
    "tpu.trace_stop"() : () -> ()
    %143 = vector.shape_cast %142 : vector<2x8x8xf32> to vector<16x8xf32>
    %144 = vector.extract_strided_slice %61 {offsets = [24, 0], sizes = [8, 32], strides = [1, 1]} : vector<32x32xf32> to vector<8x32xf32>
    %cst_52 = arith.constant dense<0.000000e+00> : vector<16x32xf32>
    %145 = tpu.matmul %143, %144, %cst_52 {dimension_numbers = #tpu.dot_dimension_numbers<[1], [0], [0], [1], [0, 0, 1, 1], [], []>} : vector<16x8xf32>, vector<8x32xf32>, vector<16x32xf32> -> vector<16x32xf32>
    %146 = arith.addf %125, %145 : vector<16x32xf32>
    %c0_53 = arith.constant 0 : index
    %c0_54 = arith.constant 0 : index
    %147 = vector.load %arg18[%c0_53, %c0_54] : memref<1x32xf32, #tpu.memory_space<vmem>>, vector<1x32xf32>
    %148 = vector.broadcast %147 : vector<1x32xf32> to vector<16x32xf32>
    %149 = arith.addf %146, %148 : vector<16x32xf32>
    %150 = arith.addf %149, %51 : vector<16x32xf32>
    %cst_55 = arith.constant dense<0.000000e+00> : vector<16xf32>
    %151 = vector.multi_reduction <add>, %150, %cst_55 [1] : vector<16x32xf32> to vector<16xf32>
    %152 = vector.shape_cast %151 : vector<16xf32> to vector<16x1xf32>
    %cst_56 = arith.constant 3.200000e+01 : f32
    %153 = vector.broadcast %cst_56 : f32 to vector<16x1xf32>
    %154 = arith.divf %152, %153 : vector<16x1xf32>
    %155 = vector.broadcast %154 : vector<16x1xf32> to vector<16x32xf32>
    %156 = arith.subf %150, %155 : vector<16x32xf32>
    %157 = arith.mulf %156, %156 : vector<16x32xf32>
    %cst_57 = arith.constant dense<0.000000e+00> : vector<16xf32>
    %158 = vector.multi_reduction <add>, %157, %cst_57 [1] : vector<16x32xf32> to vector<16xf32>
    %159 = vector.shape_cast %158 : vector<16xf32> to vector<16x1xf32>
    %cst_58 = arith.constant 3.200000e+01 : f32
    %160 = vector.broadcast %cst_58 : f32 to vector<16x1xf32>
    %161 = arith.divf %159, %160 : vector<16x1xf32>
    %162 = vector.broadcast %154 : vector<16x1xf32> to vector<16x32xf32>
    %163 = arith.subf %150, %162 : vector<16x32xf32>
    %cst_59 = arith.constant 9.99999996E-13 : f32
    %164 = vector.broadcast %cst_59 : f32 to vector<16x1xf32>
    %165 = arith.addf %161, %164 : vector<16x1xf32>
    %166 = math.rsqrt %165 : vector<16x1xf32>
    %167 = vector.broadcast %166 : vector<16x1xf32> to vector<16x32xf32>
    %168 = arith.mulf %163, %167 : vector<16x32xf32>
    %c0_60 = arith.constant 0 : index
    %c0_61 = arith.constant 0 : index
    %169 = vector.load %arg21[%c0_60, %c0_61] : memref<1x32xf32, #tpu.memory_space<vmem>>, vector<1x32xf32>
    %170 = vector.broadcast %169 : vector<1x32xf32> to vector<16x32xf32>
    %171 = arith.mulf %168, %170 : vector<16x32xf32>
    %c0_62 = arith.constant 0 : index
    %c0_63 = arith.constant 0 : index
    %172 = vector.load %arg20[%c0_62, %c0_63] : memref<1x32xf32, #tpu.memory_space<vmem>>, vector<1x32xf32>
    %173 = vector.broadcast %172 : vector<1x32xf32> to vector<16x32xf32>
    %174 = arith.addf %171, %173 : vector<16x32xf32>
    %c0_64 = arith.constant 0 : index
    %c0_65 = arith.constant 0 : index
    %175 = vector.load %arg11[%c0_64, %c0_65] : memref<32x32xf32, #tpu.memory_space<vmem>>, vector<32x32xf32>
    %cst_66 = arith.constant dense<0.000000e+00> : vector<16x32xf32>
    %176 = tpu.matmul %174, %175, %cst_66 {dimension_numbers = #tpu.dot_dimension_numbers<[1], [0], [0], [1], [0, 0, 1, 1], [], []>} : vector<16x32xf32>, vector<32x32xf32>, vector<16x32xf32> -> vector<16x32xf32>
    %c0_67 = arith.constant 0 : index
    %c0_68 = arith.constant 0 : index
    %177 = vector.load %arg6[%c0_67, %c0_68] : memref<1x32xf32, #tpu.memory_space<vmem>>, vector<1x32xf32>
    %178 = vector.broadcast %177 : vector<1x32xf32> to vector<16x32xf32>
    %179 = arith.addf %176, %178 : vector<16x32xf32>
    %c0_69 = arith.constant 0 : index
    %c0_70 = arith.constant 0 : index
    %180 = vector.load %arg9[%c0_69, %c0_70] : memref<32x64xf32, #tpu.memory_space<vmem>>, vector<32x64xf32>
    %cst_71 = arith.constant dense<0.000000e+00> : vector<16x64xf32>
    %181 = tpu.matmul %25, %180, %cst_71 {dimension_numbers = #tpu.dot_dimension_numbers<[1], [0], [0], [1], [0, 0, 1, 1], [], []>} : vector<16x32xf32>, vector<32x64xf32>, vector<16x64xf32> -> vector<16x64xf32>
    %c0_72 = arith.constant 0 : index
    %c0_73 = arith.constant 0 : index
    %182 = vector.load %arg4[%c0_72, %c0_73] : memref<1x64xf32, #tpu.memory_space<vmem>>, vector<1x64xf32>
    %183 = vector.broadcast %182 : vector<1x64xf32> to vector<16x64xf32>
    %184 = arith.addf %181, %183 : vector<16x64xf32>
    %185 = vector.shape_cast %179 : vector<16x32xf32> to vector<2x8x32xf32>
    %186 = vector.shape_cast %184 : vector<16x64xf32> to vector<2x8x64xf32>
    %c0_74 = arith.constant 0 : index
    %c0_75 = arith.constant 0 : index
    %187 = vector.load %arg10[%c0_74, %c0_75] : memref<32x32xf32, #tpu.memory_space<vmem>>, vector<32x32xf32>
    %cst_76 = arith.constant 0.000000e+00 : f32
    %188 = vector.broadcast %cst_76 : f32 to vector<16x32xf32>
    %189 = vector.extract_strided_slice %185 {offsets = [0, 0, 0], sizes = [2, 8, 8], strides = [1, 1, 1]} : vector<2x8x32xf32> to vector<2x8x8xf32>
    %cst_77 = arith.constant 0.353553385 : f32
    %190 = vector.broadcast %cst_77 : f32 to vector<2x8x8xf32>
    %191 = arith.mulf %189, %190 : vector<2x8x8xf32>
    %192 = vector.extract_strided_slice %186 {offsets = [0, 0, 0], sizes = [2, 8, 8], strides = [1, 1, 1]} : vector<2x8x64xf32> to vector<2x8x8xf32>
    %193 = vector.extract_strided_slice %186 {offsets = [0, 0, 32], sizes = [2, 8, 8], strides = [1, 1, 1]} : vector<2x8x64xf32> to vector<2x8x8xf32>
    "tpu.trace_start"() <{level = 10 : i32, message = "bqd,bkd->bqk"}> : () -> ()
    %cst_78 = arith.constant dense<0.000000e+00> : vector<2x8x8xf32>
    %194 = tpu.matmul %191, %192, %cst_78 {dimension_numbers = #tpu.dot_dimension_numbers<[2], [2], [1], [1], [0, 0, 0, 1, 1, 1], [0], [0]>} : vector<2x8x8xf32>, vector<2x8x8xf32>, vector<2x8x8xf32> -> vector<2x8x8xf32>
    "tpu.trace_stop"() : () -> ()
    %cst_79 = arith.constant dense<0xFF800000> : vector<2x8xf32>
    %195 = vector.multi_reduction <maximumf>, %194, %cst_79 [2] : vector<2x8x8xf32> to vector<2x8xf32>
    %196 = vector.shape_cast %195 : vector<2x8xf32> to vector<2x8x1xf32>
    %197 = vector.broadcast %196 : vector<2x8x1xf32> to vector<2x8x8xf32>
    %198 = arith.subf %194, %197 : vector<2x8x8xf32>
    %199 = math.exp %198 : vector<2x8x8xf32>
    %cst_80 = arith.constant dense<0.000000e+00> : vector<2x8xf32>
    %200 = vector.multi_reduction <add>, %199, %cst_80 [2] : vector<2x8x8xf32> to vector<2x8xf32>
    %201 = vector.shape_cast %200 : vector<2x8xf32> to vector<2x8x1xf32>
    %202 = tpu.reciprocal %201 {approx = true} : vector<2x8x1xf32> -> vector<2x8x1xf32>
    %203 = vector.broadcast %202 : vector<2x8x1xf32> to vector<2x8x8xf32>
    %204 = arith.mulf %199, %203 : vector<2x8x8xf32>
    "tpu.trace_start"() <{level = 10 : i32, message = "bqk,bkd->bqd"}> : () -> ()
    %cst_81 = arith.constant dense<0.000000e+00> : vector<2x8x8xf32>
    %205 = tpu.matmul %204, %193, %cst_81 {dimension_numbers = #tpu.dot_dimension_numbers<[2], [1], [1], [2], [0, 0, 0, 1, 1, 2], [0], [0]>} : vector<2x8x8xf32>, vector<2x8x8xf32>, vector<2x8x8xf32> -> vector<2x8x8xf32>
    "tpu.trace_stop"() : () -> ()
    %206 = vector.shape_cast %205 : vector<2x8x8xf32> to vector<16x8xf32>
    %207 = vector.extract_strided_slice %187 {offsets = [0, 0], sizes = [8, 32], strides = [1, 1]} : vector<32x32xf32> to vector<8x32xf32>
    %cst_82 = arith.constant dense<0.000000e+00> : vector<16x32xf32>
    %208 = tpu.matmul %206, %207, %cst_82 {dimension_numbers = #tpu.dot_dimension_numbers<[1], [0], [0], [1], [0, 0, 1, 1], [], []>} : vector<16x8xf32>, vector<8x32xf32>, vector<16x32xf32> -> vector<16x32xf32>
    %209 = arith.addf %188, %208 : vector<16x32xf32>
    %210 = vector.extract_strided_slice %185 {offsets = [0, 0, 8], sizes = [2, 8, 8], strides = [1, 1, 1]} : vector<2x8x32xf32> to vector<2x8x8xf32>
    %cst_83 = arith.constant 0.353553385 : f32
    %211 = vector.broadcast %cst_83 : f32 to vector<2x8x8xf32>
    %212 = arith.mulf %210, %211 : vector<2x8x8xf32>
    %213 = vector.extract_strided_slice %186 {offsets = [0, 0, 8], sizes = [2, 8, 8], strides = [1, 1, 1]} : vector<2x8x64xf32> to vector<2x8x8xf32>
    %214 = vector.extract_strided_slice %186 {offsets = [0, 0, 40], sizes = [2, 8, 8], strides = [1, 1, 1]} : vector<2x8x64xf32> to vector<2x8x8xf32>
    "tpu.trace_start"() <{level = 10 : i32, message = "bqd,bkd->bqk"}> : () -> ()
    %cst_84 = arith.constant dense<0.000000e+00> : vector<2x8x8xf32>
    %215 = tpu.matmul %212, %213, %cst_84 {dimension_numbers = #tpu.dot_dimension_numbers<[2], [2], [1], [1], [0, 0, 0, 1, 1, 1], [0], [0]>} : vector<2x8x8xf32>, vector<2x8x8xf32>, vector<2x8x8xf32> -> vector<2x8x8xf32>
    "tpu.trace_stop"() : () -> ()
    %cst_85 = arith.constant dense<0xFF800000> : vector<2x8xf32>
    %216 = vector.multi_reduction <maximumf>, %215, %cst_85 [2] : vector<2x8x8xf32> to vector<2x8xf32>
    %217 = vector.shape_cast %216 : vector<2x8xf32> to vector<2x8x1xf32>
    %218 = vector.broadcast %217 : vector<2x8x1xf32> to vector<2x8x8xf32>
    %219 = arith.subf %215, %218 : vector<2x8x8xf32>
    %220 = math.exp %219 : vector<2x8x8xf32>
    %cst_86 = arith.constant dense<0.000000e+00> : vector<2x8xf32>
    %221 = vector.multi_reduction <add>, %220, %cst_86 [2] : vector<2x8x8xf32> to vector<2x8xf32>
    %222 = vector.shape_cast %221 : vector<2x8xf32> to vector<2x8x1xf32>
    %223 = tpu.reciprocal %222 {approx = true} : vector<2x8x1xf32> -> vector<2x8x1xf32>
    %224 = vector.broadcast %223 : vector<2x8x1xf32> to vector<2x8x8xf32>
    %225 = arith.mulf %220, %224 : vector<2x8x8xf32>
    "tpu.trace_start"() <{level = 10 : i32, message = "bqk,bkd->bqd"}> : () -> ()
    %cst_87 = arith.constant dense<0.000000e+00> : vector<2x8x8xf32>
    %226 = tpu.matmul %225, %214, %cst_87 {dimension_numbers = #tpu.dot_dimension_numbers<[2], [1], [1], [2], [0, 0, 0, 1, 1, 2], [0], [0]>} : vector<2x8x8xf32>, vector<2x8x8xf32>, vector<2x8x8xf32> -> vector<2x8x8xf32>
    "tpu.trace_stop"() : () -> ()
    %227 = vector.shape_cast %226 : vector<2x8x8xf32> to vector<16x8xf32>
    %228 = vector.extract_strided_slice %187 {offsets = [8, 0], sizes = [8, 32], strides = [1, 1]} : vector<32x32xf32> to vector<8x32xf32>
    %cst_88 = arith.constant dense<0.000000e+00> : vector<16x32xf32>
    %229 = tpu.matmul %227, %228, %cst_88 {dimension_numbers = #tpu.dot_dimension_numbers<[1], [0], [0], [1], [0, 0, 1, 1], [], []>} : vector<16x8xf32>, vector<8x32xf32>, vector<16x32xf32> -> vector<16x32xf32>
    %230 = arith.addf %209, %229 : vector<16x32xf32>
    %231 = vector.extract_strided_slice %185 {offsets = [0, 0, 16], sizes = [2, 8, 8], strides = [1, 1, 1]} : vector<2x8x32xf32> to vector<2x8x8xf32>
    %cst_89 = arith.constant 0.353553385 : f32
    %232 = vector.broadcast %cst_89 : f32 to vector<2x8x8xf32>
    %233 = arith.mulf %231, %232 : vector<2x8x8xf32>
    %234 = vector.extract_strided_slice %186 {offsets = [0, 0, 16], sizes = [2, 8, 8], strides = [1, 1, 1]} : vector<2x8x64xf32> to vector<2x8x8xf32>
    %235 = vector.extract_strided_slice %186 {offsets = [0, 0, 48], sizes = [2, 8, 8], strides = [1, 1, 1]} : vector<2x8x64xf32> to vector<2x8x8xf32>
    "tpu.trace_start"() <{level = 10 : i32, message = "bqd,bkd->bqk"}> : () -> ()
    %cst_90 = arith.constant dense<0.000000e+00> : vector<2x8x8xf32>
    %236 = tpu.matmul %233, %234, %cst_90 {dimension_numbers = #tpu.dot_dimension_numbers<[2], [2], [1], [1], [0, 0, 0, 1, 1, 1], [0], [0]>} : vector<2x8x8xf32>, vector<2x8x8xf32>, vector<2x8x8xf32> -> vector<2x8x8xf32>
    "tpu.trace_stop"() : () -> ()
    %cst_91 = arith.constant dense<0xFF800000> : vector<2x8xf32>
    %237 = vector.multi_reduction <maximumf>, %236, %cst_91 [2] : vector<2x8x8xf32> to vector<2x8xf32>
    %238 = vector.shape_cast %237 : vector<2x8xf32> to vector<2x8x1xf32>
    %239 = vector.broadcast %238 : vector<2x8x1xf32> to vector<2x8x8xf32>
    %240 = arith.subf %236, %239 : vector<2x8x8xf32>
    %241 = math.exp %240 : vector<2x8x8xf32>
    %cst_92 = arith.constant dense<0.000000e+00> : vector<2x8xf32>
    %242 = vector.multi_reduction <add>, %241, %cst_92 [2] : vector<2x8x8xf32> to vector<2x8xf32>
    %243 = vector.shape_cast %242 : vector<2x8xf32> to vector<2x8x1xf32>
    %244 = tpu.reciprocal %243 {approx = true} : vector<2x8x1xf32> -> vector<2x8x1xf32>
    %245 = vector.broadcast %244 : vector<2x8x1xf32> to vector<2x8x8xf32>
    %246 = arith.mulf %241, %245 : vector<2x8x8xf32>
    "tpu.trace_start"() <{level = 10 : i32, message = "bqk,bkd->bqd"}> : () -> ()
    %cst_93 = arith.constant dense<0.000000e+00> : vector<2x8x8xf32>
    %247 = tpu.matmul %246, %235, %cst_93 {dimension_numbers = #tpu.dot_dimension_numbers<[2], [1], [1], [2], [0, 0, 0, 1, 1, 2], [0], [0]>} : vector<2x8x8xf32>, vector<2x8x8xf32>, vector<2x8x8xf32> -> vector<2x8x8xf32>
    "tpu.trace_stop"() : () -> ()
    %248 = vector.shape_cast %247 : vector<2x8x8xf32> to vector<16x8xf32>
    %249 = vector.extract_strided_slice %187 {offsets = [16, 0], sizes = [8, 32], strides = [1, 1]} : vector<32x32xf32> to vector<8x32xf32>
    %cst_94 = arith.constant dense<0.000000e+00> : vector<16x32xf32>
    %250 = tpu.matmul %248, %249, %cst_94 {dimension_numbers = #tpu.dot_dimension_numbers<[1], [0], [0], [1], [0, 0, 1, 1], [], []>} : vector<16x8xf32>, vector<8x32xf32>, vector<16x32xf32> -> vector<16x32xf32>
    %251 = arith.addf %230, %250 : vector<16x32xf32>
    %252 = vector.extract_strided_slice %185 {offsets = [0, 0, 24], sizes = [2, 8, 8], strides = [1, 1, 1]} : vector<2x8x32xf32> to vector<2x8x8xf32>
    %cst_95 = arith.constant 0.353553385 : f32
    %253 = vector.broadcast %cst_95 : f32 to vector<2x8x8xf32>
    %254 = arith.mulf %252, %253 : vector<2x8x8xf32>
    %255 = vector.extract_strided_slice %186 {offsets = [0, 0, 24], sizes = [2, 8, 8], strides = [1, 1, 1]} : vector<2x8x64xf32> to vector<2x8x8xf32>
    %256 = vector.extract_strided_slice %186 {offsets = [0, 0, 56], sizes = [2, 8, 8], strides = [1, 1, 1]} : vector<2x8x64xf32> to vector<2x8x8xf32>
    "tpu.trace_start"() <{level = 10 : i32, message = "bqd,bkd->bqk"}> : () -> ()
    %cst_96 = arith.constant dense<0.000000e+00> : vector<2x8x8xf32>
    %257 = tpu.matmul %254, %255, %cst_96 {dimension_numbers = #tpu.dot_dimension_numbers<[2], [2], [1], [1], [0, 0, 0, 1, 1, 1], [0], [0]>} : vector<2x8x8xf32>, vector<2x8x8xf32>, vector<2x8x8xf32> -> vector<2x8x8xf32>
    "tpu.trace_stop"() : () -> ()
    %cst_97 = arith.constant dense<0xFF800000> : vector<2x8xf32>
    %258 = vector.multi_reduction <maximumf>, %257, %cst_97 [2] : vector<2x8x8xf32> to vector<2x8xf32>
    %259 = vector.shape_cast %258 : vector<2x8xf32> to vector<2x8x1xf32>
    %260 = vector.broadcast %259 : vector<2x8x1xf32> to vector<2x8x8xf32>
    %261 = arith.subf %257, %260 : vector<2x8x8xf32>
    %262 = math.exp %261 : vector<2x8x8xf32>
    %cst_98 = arith.constant dense<0.000000e+00> : vector<2x8xf32>
    %263 = vector.multi_reduction <add>, %262, %cst_98 [2] : vector<2x8x8xf32> to vector<2x8xf32>
    %264 = vector.shape_cast %263 : vector<2x8xf32> to vector<2x8x1xf32>
    %265 = tpu.reciprocal %264 {approx = true} : vector<2x8x1xf32> -> vector<2x8x1xf32>
    %266 = vector.broadcast %265 : vector<2x8x1xf32> to vector<2x8x8xf32>
    %267 = arith.mulf %262, %266 : vector<2x8x8xf32>
    "tpu.trace_start"() <{level = 10 : i32, message = "bqk,bkd->bqd"}> : () -> ()
    %cst_99 = arith.constant dense<0.000000e+00> : vector<2x8x8xf32>
    %268 = tpu.matmul %267, %256, %cst_99 {dimension_numbers = #tpu.dot_dimension_numbers<[2], [1], [1], [2], [0, 0, 0, 1, 1, 2], [0], [0]>} : vector<2x8x8xf32>, vector<2x8x8xf32>, vector<2x8x8xf32> -> vector<2x8x8xf32>
    "tpu.trace_stop"() : () -> ()
    %269 = vector.shape_cast %268 : vector<2x8x8xf32> to vector<16x8xf32>
    %270 = vector.extract_strided_slice %187 {offsets = [24, 0], sizes = [8, 32], strides = [1, 1]} : vector<32x32xf32> to vector<8x32xf32>
    %cst_100 = arith.constant dense<0.000000e+00> : vector<16x32xf32>
    %271 = tpu.matmul %269, %270, %cst_100 {dimension_numbers = #tpu.dot_dimension_numbers<[1], [0], [0], [1], [0, 0, 1, 1], [], []>} : vector<16x8xf32>, vector<8x32xf32>, vector<16x32xf32> -> vector<16x32xf32>
    %272 = arith.addf %251, %271 : vector<16x32xf32>
    %c0_101 = arith.constant 0 : index
    %c0_102 = arith.constant 0 : index
    %273 = vector.load %arg5[%c0_101, %c0_102] : memref<1x32xf32, #tpu.memory_space<vmem>>, vector<1x32xf32>
    %274 = vector.broadcast %273 : vector<1x32xf32> to vector<16x32xf32>
    %275 = arith.addf %272, %274 : vector<16x32xf32>
    %276 = arith.addf %275, %174 : vector<16x32xf32>
    %cst_103 = arith.constant dense<0.000000e+00> : vector<16xf32>
    %277 = vector.multi_reduction <add>, %276, %cst_103 [1] : vector<16x32xf32> to vector<16xf32>
    %278 = vector.shape_cast %277 : vector<16xf32> to vector<16x1xf32>
    %cst_104 = arith.constant 3.200000e+01 : f32
    %279 = vector.broadcast %cst_104 : f32 to vector<16x1xf32>
    %280 = arith.divf %278, %279 : vector<16x1xf32>
    %281 = vector.broadcast %280 : vector<16x1xf32> to vector<16x32xf32>
    %282 = arith.subf %276, %281 : vector<16x32xf32>
    %283 = arith.mulf %282, %282 : vector<16x32xf32>
    %cst_105 = arith.constant dense<0.000000e+00> : vector<16xf32>
    %284 = vector.multi_reduction <add>, %283, %cst_105 [1] : vector<16x32xf32> to vector<16xf32>
    %285 = vector.shape_cast %284 : vector<16xf32> to vector<16x1xf32>
    %cst_106 = arith.constant 3.200000e+01 : f32
    %286 = vector.broadcast %cst_106 : f32 to vector<16x1xf32>
    %287 = arith.divf %285, %286 : vector<16x1xf32>
    %288 = vector.broadcast %280 : vector<16x1xf32> to vector<16x32xf32>
    %289 = arith.subf %276, %288 : vector<16x32xf32>
    %cst_107 = arith.constant 9.99999996E-13 : f32
    %290 = vector.broadcast %cst_107 : f32 to vector<16x1xf32>
    %291 = arith.addf %287, %290 : vector<16x1xf32>
    %292 = math.rsqrt %291 : vector<16x1xf32>
    %293 = vector.broadcast %292 : vector<16x1xf32> to vector<16x32xf32>
    %294 = arith.mulf %289, %293 : vector<16x32xf32>
    %c0_108 = arith.constant 0 : index
    %c0_109 = arith.constant 0 : index
    %295 = vector.load %arg8[%c0_108, %c0_109] : memref<1x32xf32, #tpu.memory_space<vmem>>, vector<1x32xf32>
    %296 = vector.broadcast %295 : vector<1x32xf32> to vector<16x32xf32>
    %297 = arith.mulf %294, %296 : vector<16x32xf32>
    %c0_110 = arith.constant 0 : index
    %c0_111 = arith.constant 0 : index
    %298 = vector.load %arg7[%c0_110, %c0_111] : memref<1x32xf32, #tpu.memory_space<vmem>>, vector<1x32xf32>
    %299 = vector.broadcast %298 : vector<1x32xf32> to vector<16x32xf32>
    %300 = arith.addf %297, %299 : vector<16x32xf32>
    %c0_112 = arith.constant 0 : index
    %c0_113 = arith.constant 0 : index
    %301 = vector.load %arg16[%c0_112, %c0_113] : memref<32x64xf32, #tpu.memory_space<vmem>>, vector<32x64xf32>
    %cst_114 = arith.constant dense<0.000000e+00> : vector<16x64xf32>
    %302 = tpu.matmul %300, %301, %cst_114 {dimension_numbers = #tpu.dot_dimension_numbers<[1], [0], [0], [1], [0, 0, 1, 1], [], []>} : vector<16x32xf32>, vector<32x64xf32>, vector<16x64xf32> -> vector<16x64xf32>
    %c0_115 = arith.constant 0 : index
    %c0_116 = arith.constant 0 : index
    %303 = vector.load %arg12[%c0_115, %c0_116] : memref<1x64xf32, #tpu.memory_space<vmem>>, vector<1x64xf32>
    %304 = vector.broadcast %303 : vector<1x64xf32> to vector<16x64xf32>
    %305 = arith.addf %302, %304 : vector<16x64xf32>
    %306 = arith.mulf %305, %305 : vector<16x64xf32>
    %307 = arith.mulf %305, %306 : vector<16x64xf32>
    %cst_117 = arith.constant 4.471500e-02 : f32
    %308 = vector.broadcast %cst_117 : f32 to vector<16x64xf32>
    %309 = arith.mulf %308, %307 : vector<16x64xf32>
    %310 = arith.addf %305, %309 : vector<16x64xf32>
    %cst_118 = arith.constant 0.797884583 : f32
    %311 = vector.broadcast %cst_118 : f32 to vector<16x64xf32>
    %312 = arith.mulf %311, %310 : vector<16x64xf32>
    %313 = math.tanh %312 : vector<16x64xf32>
    %cst_119 = arith.constant 1.000000e+00 : f32
    %314 = vector.broadcast %cst_119 : f32 to vector<16x64xf32>
    %315 = arith.addf %314, %313 : vector<16x64xf32>
    %cst_120 = arith.constant 5.000000e-01 : f32
    %316 = vector.broadcast %cst_120 : f32 to vector<16x64xf32>
    %317 = arith.mulf %316, %315 : vector<16x64xf32>
    %318 = arith.mulf %305, %317 : vector<16x64xf32>
    %c0_121 = arith.constant 0 : index
    %c0_122 = arith.constant 0 : index
    %319 = vector.load %arg17[%c0_121, %c0_122] : memref<64x32xf32, #tpu.memory_space<vmem>>, vector<64x32xf32>
    %cst_123 = arith.constant dense<0.000000e+00> : vector<16x32xf32>
    %320 = tpu.matmul %318, %319, %cst_123 {dimension_numbers = #tpu.dot_dimension_numbers<[1], [0], [0], [1], [0, 0, 1, 1], [], []>} : vector<16x64xf32>, vector<64x32xf32>, vector<16x32xf32> -> vector<16x32xf32>
    %c0_124 = arith.constant 0 : index
    %c0_125 = arith.constant 0 : index
    %321 = vector.load %arg13[%c0_124, %c0_125] : memref<1x32xf32, #tpu.memory_space<vmem>>, vector<1x32xf32>
    %322 = vector.broadcast %321 : vector<1x32xf32> to vector<16x32xf32>
    %323 = arith.addf %320, %322 : vector<16x32xf32>
    %324 = arith.addf %323, %300 : vector<16x32xf32>
    %cst_126 = arith.constant dense<0.000000e+00> : vector<16xf32>
    %325 = vector.multi_reduction <add>, %324, %cst_126 [1] : vector<16x32xf32> to vector<16xf32>
    %326 = vector.shape_cast %325 : vector<16xf32> to vector<16x1xf32>
    %cst_127 = arith.constant 3.200000e+01 : f32
    %327 = vector.broadcast %cst_127 : f32 to vector<16x1xf32>
    %328 = arith.divf %326, %327 : vector<16x1xf32>
    %329 = vector.broadcast %328 : vector<16x1xf32> to vector<16x32xf32>
    %330 = arith.subf %324, %329 : vector<16x32xf32>
    %331 = arith.mulf %330, %330 : vector<16x32xf32>
    %cst_128 = arith.constant dense<0.000000e+00> : vector<16xf32>
    %332 = vector.multi_reduction <add>, %331, %cst_128 [1] : vector<16x32xf32> to vector<16xf32>
    %333 = vector.shape_cast %332 : vector<16xf32> to vector<16x1xf32>
    %cst_129 = arith.constant 3.200000e+01 : f32
    %334 = vector.broadcast %cst_129 : f32 to vector<16x1xf32>
    %335 = arith.divf %333, %334 : vector<16x1xf32>
    %336 = vector.broadcast %328 : vector<16x1xf32> to vector<16x32xf32>
    %337 = arith.subf %324, %336 : vector<16x32xf32>
    %cst_130 = arith.constant 9.99999996E-13 : f32
    %338 = vector.broadcast %cst_130 : f32 to vector<16x1xf32>
    %339 = arith.addf %335, %338 : vector<16x1xf32>
    %340 = math.rsqrt %339 : vector<16x1xf32>
    %341 = vector.broadcast %340 : vector<16x1xf32> to vector<16x32xf32>
    %342 = arith.mulf %337, %341 : vector<16x32xf32>
    %c0_131 = arith.constant 0 : index
    %c0_132 = arith.constant 0 : index
    %343 = vector.load %arg15[%c0_131, %c0_132] : memref<1x32xf32, #tpu.memory_space<vmem>>, vector<1x32xf32>
    %344 = vector.broadcast %343 : vector<1x32xf32> to vector<16x32xf32>
    %345 = arith.mulf %342, %344 : vector<16x32xf32>
    %c0_133 = arith.constant 0 : index
    %c0_134 = arith.constant 0 : index
    %346 = vector.load %arg14[%c0_133, %c0_134] : memref<1x32xf32, #tpu.memory_space<vmem>>, vector<1x32xf32>
    %347 = vector.broadcast %346 : vector<1x32xf32> to vector<16x32xf32>
    %348 = arith.addf %345, %347 : vector<16x32xf32>
    %c0_135 = arith.constant 0 : index
    %c0_136 = arith.constant 0 : index
    %349 = vector.load %arg43[%c0_135, %c0_136] : memref<32x96xf32, #tpu.memory_space<vmem>>, vector<32x96xf32>
    %cst_137 = arith.constant dense<0.000000e+00> : vector<16x96xf32>
    %350 = tpu.matmul %348, %349, %cst_137 {dimension_numbers = #tpu.dot_dimension_numbers<[1], [0], [0], [1], [0, 0, 1, 1], [], []>} : vector<16x32xf32>, vector<32x96xf32>, vector<16x96xf32> -> vector<16x96xf32>
    %c0_138 = arith.constant 0 : index
    %c0_139 = arith.constant 0 : index
    %351 = vector.load %arg39[%c0_138, %c0_139] : memref<1x96xf32, #tpu.memory_space<vmem>>, vector<1x96xf32>
    %352 = vector.broadcast %351 : vector<1x96xf32> to vector<16x96xf32>
    %353 = arith.addf %350, %352 : vector<16x96xf32>
    %354 = vector.extract_strided_slice %353 {offsets = [0, 0], sizes = [16, 32], strides = [1, 1]} : vector<16x96xf32> to vector<16x32xf32>
    %355 = vector.extract_strided_slice %353 {offsets = [0, 32], sizes = [16, 64], strides = [1, 1]} : vector<16x96xf32> to vector<16x64xf32>
    %356 = vector.shape_cast %354 : vector<16x32xf32> to vector<2x8x32xf32>
    %357 = vector.shape_cast %355 : vector<16x64xf32> to vector<2x8x64xf32>
    %c0_140 = arith.constant 0 : index
    %c0_141 = arith.constant 0 : index
    %358 = vector.load %arg42[%c0_140, %c0_141] : memref<32x32xf32, #tpu.memory_space<vmem>>, vector<32x32xf32>
    %cst_142 = arith.constant 0.000000e+00 : f32
    %359 = vector.broadcast %cst_142 : f32 to vector<16x32xf32>
    %360 = vector.extract_strided_slice %356 {offsets = [0, 0, 0], sizes = [2, 8, 8], strides = [1, 1, 1]} : vector<2x8x32xf32> to vector<2x8x8xf32>
    %cst_143 = arith.constant 0.353553385 : f32
    %361 = vector.broadcast %cst_143 : f32 to vector<2x8x8xf32>
    %362 = arith.mulf %360, %361 : vector<2x8x8xf32>
    %363 = vector.extract_strided_slice %357 {offsets = [0, 0, 0], sizes = [2, 8, 8], strides = [1, 1, 1]} : vector<2x8x64xf32> to vector<2x8x8xf32>
    %364 = vector.extract_strided_slice %357 {offsets = [0, 0, 32], sizes = [2, 8, 8], strides = [1, 1, 1]} : vector<2x8x64xf32> to vector<2x8x8xf32>
    "tpu.trace_start"() <{level = 10 : i32, message = "bqd,bkd->bqk"}> : () -> ()
    %cst_144 = arith.constant dense<0.000000e+00> : vector<2x8x8xf32>
    %365 = tpu.matmul %362, %363, %cst_144 {dimension_numbers = #tpu.dot_dimension_numbers<[2], [2], [1], [1], [0, 0, 0, 1, 1, 1], [0], [0]>} : vector<2x8x8xf32>, vector<2x8x8xf32>, vector<2x8x8xf32> -> vector<2x8x8xf32>
    "tpu.trace_stop"() : () -> ()
    %cst_145 = arith.constant dense<0xFF800000> : vector<2x8xf32>
    %366 = vector.multi_reduction <maximumf>, %365, %cst_145 [2] : vector<2x8x8xf32> to vector<2x8xf32>
    %367 = vector.shape_cast %366 : vector<2x8xf32> to vector<2x8x1xf32>
    %368 = vector.broadcast %367 : vector<2x8x1xf32> to vector<2x8x8xf32>
    %369 = arith.subf %365, %368 : vector<2x8x8xf32>
    %370 = math.exp %369 : vector<2x8x8xf32>
    %cst_146 = arith.constant dense<0.000000e+00> : vector<2x8xf32>
    %371 = vector.multi_reduction <add>, %370, %cst_146 [2] : vector<2x8x8xf32> to vector<2x8xf32>
    %372 = vector.shape_cast %371 : vector<2x8xf32> to vector<2x8x1xf32>
    %373 = tpu.reciprocal %372 {approx = true} : vector<2x8x1xf32> -> vector<2x8x1xf32>
    %374 = vector.broadcast %373 : vector<2x8x1xf32> to vector<2x8x8xf32>
    %375 = arith.mulf %370, %374 : vector<2x8x8xf32>
    "tpu.trace_start"() <{level = 10 : i32, message = "bqk,bkd->bqd"}> : () -> ()
    %cst_147 = arith.constant dense<0.000000e+00> : vector<2x8x8xf32>
    %376 = tpu.matmul %375, %364, %cst_147 {dimension_numbers = #tpu.dot_dimension_numbers<[2], [1], [1], [2], [0, 0, 0, 1, 1, 2], [0], [0]>} : vector<2x8x8xf32>, vector<2x8x8xf32>, vector<2x8x8xf32> -> vector<2x8x8xf32>
    "tpu.trace_stop"() : () -> ()
    %377 = vector.shape_cast %376 : vector<2x8x8xf32> to vector<16x8xf32>
    %378 = vector.extract_strided_slice %358 {offsets = [0, 0], sizes = [8, 32], strides = [1, 1]} : vector<32x32xf32> to vector<8x32xf32>
    %cst_148 = arith.constant dense<0.000000e+00> : vector<16x32xf32>
    %379 = tpu.matmul %377, %378, %cst_148 {dimension_numbers = #tpu.dot_dimension_numbers<[1], [0], [0], [1], [0, 0, 1, 1], [], []>} : vector<16x8xf32>, vector<8x32xf32>, vector<16x32xf32> -> vector<16x32xf32>
    %380 = arith.addf %359, %379 : vector<16x32xf32>
    %381 = vector.extract_strided_slice %356 {offsets = [0, 0, 8], sizes = [2, 8, 8], strides = [1, 1, 1]} : vector<2x8x32xf32> to vector<2x8x8xf32>
    %cst_149 = arith.constant 0.353553385 : f32
    %382 = vector.broadcast %cst_149 : f32 to vector<2x8x8xf32>
    %383 = arith.mulf %381, %382 : vector<2x8x8xf32>
    %384 = vector.extract_strided_slice %357 {offsets = [0, 0, 8], sizes = [2, 8, 8], strides = [1, 1, 1]} : vector<2x8x64xf32> to vector<2x8x8xf32>
    %385 = vector.extract_strided_slice %357 {offsets = [0, 0, 40], sizes = [2, 8, 8], strides = [1, 1, 1]} : vector<2x8x64xf32> to vector<2x8x8xf32>
    "tpu.trace_start"() <{level = 10 : i32, message = "bqd,bkd->bqk"}> : () -> ()
    %cst_150 = arith.constant dense<0.000000e+00> : vector<2x8x8xf32>
    %386 = tpu.matmul %383, %384, %cst_150 {dimension_numbers = #tpu.dot_dimension_numbers<[2], [2], [1], [1], [0, 0, 0, 1, 1, 1], [0], [0]>} : vector<2x8x8xf32>, vector<2x8x8xf32>, vector<2x8x8xf32> -> vector<2x8x8xf32>
    "tpu.trace_stop"() : () -> ()
    %cst_151 = arith.constant dense<0xFF800000> : vector<2x8xf32>
    %387 = vector.multi_reduction <maximumf>, %386, %cst_151 [2] : vector<2x8x8xf32> to vector<2x8xf32>
    %388 = vector.shape_cast %387 : vector<2x8xf32> to vector<2x8x1xf32>
    %389 = vector.broadcast %388 : vector<2x8x1xf32> to vector<2x8x8xf32>
    %390 = arith.subf %386, %389 : vector<2x8x8xf32>
    %391 = math.exp %390 : vector<2x8x8xf32>
    %cst_152 = arith.constant dense<0.000000e+00> : vector<2x8xf32>
    %392 = vector.multi_reduction <add>, %391, %cst_152 [2] : vector<2x8x8xf32> to vector<2x8xf32>
    %393 = vector.shape_cast %392 : vector<2x8xf32> to vector<2x8x1xf32>
    %394 = tpu.reciprocal %393 {approx = true} : vector<2x8x1xf32> -> vector<2x8x1xf32>
    %395 = vector.broadcast %394 : vector<2x8x1xf32> to vector<2x8x8xf32>
    %396 = arith.mulf %391, %395 : vector<2x8x8xf32>
    "tpu.trace_start"() <{level = 10 : i32, message = "bqk,bkd->bqd"}> : () -> ()
    %cst_153 = arith.constant dense<0.000000e+00> : vector<2x8x8xf32>
    %397 = tpu.matmul %396, %385, %cst_153 {dimension_numbers = #tpu.dot_dimension_numbers<[2], [1], [1], [2], [0, 0, 0, 1, 1, 2], [0], [0]>} : vector<2x8x8xf32>, vector<2x8x8xf32>, vector<2x8x8xf32> -> vector<2x8x8xf32>
    "tpu.trace_stop"() : () -> ()
    %398 = vector.shape_cast %397 : vector<2x8x8xf32> to vector<16x8xf32>
    %399 = vector.extract_strided_slice %358 {offsets = [8, 0], sizes = [8, 32], strides = [1, 1]} : vector<32x32xf32> to vector<8x32xf32>
    %cst_154 = arith.constant dense<0.000000e+00> : vector<16x32xf32>
    %400 = tpu.matmul %398, %399, %cst_154 {dimension_numbers = #tpu.dot_dimension_numbers<[1], [0], [0], [1], [0, 0, 1, 1], [], []>} : vector<16x8xf32>, vector<8x32xf32>, vector<16x32xf32> -> vector<16x32xf32>
    %401 = arith.addf %380, %400 : vector<16x32xf32>
    %402 = vector.extract_strided_slice %356 {offsets = [0, 0, 16], sizes = [2, 8, 8], strides = [1, 1, 1]} : vector<2x8x32xf32> to vector<2x8x8xf32>
    %cst_155 = arith.constant 0.353553385 : f32
    %403 = vector.broadcast %cst_155 : f32 to vector<2x8x8xf32>
    %404 = arith.mulf %402, %403 : vector<2x8x8xf32>
    %405 = vector.extract_strided_slice %357 {offsets = [0, 0, 16], sizes = [2, 8, 8], strides = [1, 1, 1]} : vector<2x8x64xf32> to vector<2x8x8xf32>
    %406 = vector.extract_strided_slice %357 {offsets = [0, 0, 48], sizes = [2, 8, 8], strides = [1, 1, 1]} : vector<2x8x64xf32> to vector<2x8x8xf32>
    "tpu.trace_start"() <{level = 10 : i32, message = "bqd,bkd->bqk"}> : () -> ()
    %cst_156 = arith.constant dense<0.000000e+00> : vector<2x8x8xf32>
    %407 = tpu.matmul %404, %405, %cst_156 {dimension_numbers = #tpu.dot_dimension_numbers<[2], [2], [1], [1], [0, 0, 0, 1, 1, 1], [0], [0]>} : vector<2x8x8xf32>, vector<2x8x8xf32>, vector<2x8x8xf32> -> vector<2x8x8xf32>
    "tpu.trace_stop"() : () -> ()
    %cst_157 = arith.constant dense<0xFF800000> : vector<2x8xf32>
    %408 = vector.multi_reduction <maximumf>, %407, %cst_157 [2] : vector<2x8x8xf32> to vector<2x8xf32>
    %409 = vector.shape_cast %408 : vector<2x8xf32> to vector<2x8x1xf32>
    %410 = vector.broadcast %409 : vector<2x8x1xf32> to vector<2x8x8xf32>
    %411 = arith.subf %407, %410 : vector<2x8x8xf32>
    %412 = math.exp %411 : vector<2x8x8xf32>
    %cst_158 = arith.constant dense<0.000000e+00> : vector<2x8xf32>
    %413 = vector.multi_reduction <add>, %412, %cst_158 [2] : vector<2x8x8xf32> to vector<2x8xf32>
    %414 = vector.shape_cast %413 : vector<2x8xf32> to vector<2x8x1xf32>
    %415 = tpu.reciprocal %414 {approx = true} : vector<2x8x1xf32> -> vector<2x8x1xf32>
    %416 = vector.broadcast %415 : vector<2x8x1xf32> to vector<2x8x8xf32>
    %417 = arith.mulf %412, %416 : vector<2x8x8xf32>
    "tpu.trace_start"() <{level = 10 : i32, message = "bqk,bkd->bqd"}> : () -> ()
    %cst_159 = arith.constant dense<0.000000e+00> : vector<2x8x8xf32>
    %418 = tpu.matmul %417, %406, %cst_159 {dimension_numbers = #tpu.dot_dimension_numbers<[2], [1], [1], [2], [0, 0, 0, 1, 1, 2], [0], [0]>} : vector<2x8x8xf32>, vector<2x8x8xf32>, vector<2x8x8xf32> -> vector<2x8x8xf32>
    "tpu.trace_stop"() : () -> ()
    %419 = vector.shape_cast %418 : vector<2x8x8xf32> to vector<16x8xf32>
    %420 = vector.extract_strided_slice %358 {offsets = [16, 0], sizes = [8, 32], strides = [1, 1]} : vector<32x32xf32> to vector<8x32xf32>
    %cst_160 = arith.constant dense<0.000000e+00> : vector<16x32xf32>
    %421 = tpu.matmul %419, %420, %cst_160 {dimension_numbers = #tpu.dot_dimension_numbers<[1], [0], [0], [1], [0, 0, 1, 1], [], []>} : vector<16x8xf32>, vector<8x32xf32>, vector<16x32xf32> -> vector<16x32xf32>
    %422 = arith.addf %401, %421 : vector<16x32xf32>
    %423 = vector.extract_strided_slice %356 {offsets = [0, 0, 24], sizes = [2, 8, 8], strides = [1, 1, 1]} : vector<2x8x32xf32> to vector<2x8x8xf32>
    %cst_161 = arith.constant 0.353553385 : f32
    %424 = vector.broadcast %cst_161 : f32 to vector<2x8x8xf32>
    %425 = arith.mulf %423, %424 : vector<2x8x8xf32>
    %426 = vector.extract_strided_slice %357 {offsets = [0, 0, 24], sizes = [2, 8, 8], strides = [1, 1, 1]} : vector<2x8x64xf32> to vector<2x8x8xf32>
    %427 = vector.extract_strided_slice %357 {offsets = [0, 0, 56], sizes = [2, 8, 8], strides = [1, 1, 1]} : vector<2x8x64xf32> to vector<2x8x8xf32>
    "tpu.trace_start"() <{level = 10 : i32, message = "bqd,bkd->bqk"}> : () -> ()
    %cst_162 = arith.constant dense<0.000000e+00> : vector<2x8x8xf32>
    %428 = tpu.matmul %425, %426, %cst_162 {dimension_numbers = #tpu.dot_dimension_numbers<[2], [2], [1], [1], [0, 0, 0, 1, 1, 1], [0], [0]>} : vector<2x8x8xf32>, vector<2x8x8xf32>, vector<2x8x8xf32> -> vector<2x8x8xf32>
    "tpu.trace_stop"() : () -> ()
    %cst_163 = arith.constant dense<0xFF800000> : vector<2x8xf32>
    %429 = vector.multi_reduction <maximumf>, %428, %cst_163 [2] : vector<2x8x8xf32> to vector<2x8xf32>
    %430 = vector.shape_cast %429 : vector<2x8xf32> to vector<2x8x1xf32>
    %431 = vector.broadcast %430 : vector<2x8x1xf32> to vector<2x8x8xf32>
    %432 = arith.subf %428, %431 : vector<2x8x8xf32>
    %433 = math.exp %432 : vector<2x8x8xf32>
    %cst_164 = arith.constant dense<0.000000e+00> : vector<2x8xf32>
    %434 = vector.multi_reduction <add>, %433, %cst_164 [2] : vector<2x8x8xf32> to vector<2x8xf32>
    %435 = vector.shape_cast %434 : vector<2x8xf32> to vector<2x8x1xf32>
    %436 = tpu.reciprocal %435 {approx = true} : vector<2x8x1xf32> -> vector<2x8x1xf32>
    %437 = vector.broadcast %436 : vector<2x8x1xf32> to vector<2x8x8xf32>
    %438 = arith.mulf %433, %437 : vector<2x8x8xf32>
    "tpu.trace_start"() <{level = 10 : i32, message = "bqk,bkd->bqd"}> : () -> ()
    %cst_165 = arith.constant dense<0.000000e+00> : vector<2x8x8xf32>
    %439 = tpu.matmul %438, %427, %cst_165 {dimension_numbers = #tpu.dot_dimension_numbers<[2], [1], [1], [2], [0, 0, 0, 1, 1, 2], [0], [0]>} : vector<2x8x8xf32>, vector<2x8x8xf32>, vector<2x8x8xf32> -> vector<2x8x8xf32>
    "tpu.trace_stop"() : () -> ()
    %440 = vector.shape_cast %439 : vector<2x8x8xf32> to vector<16x8xf32>
    %441 = vector.extract_strided_slice %358 {offsets = [24, 0], sizes = [8, 32], strides = [1, 1]} : vector<32x32xf32> to vector<8x32xf32>
    %cst_166 = arith.constant dense<0.000000e+00> : vector<16x32xf32>
    %442 = tpu.matmul %440, %441, %cst_166 {dimension_numbers = #tpu.dot_dimension_numbers<[1], [0], [0], [1], [0, 0, 1, 1], [], []>} : vector<16x8xf32>, vector<8x32xf32>, vector<16x32xf32> -> vector<16x32xf32>
    %443 = arith.addf %422, %442 : vector<16x32xf32>
    %c0_167 = arith.constant 0 : index
    %c0_168 = arith.constant 0 : index
    %444 = vector.load %arg38[%c0_167, %c0_168] : memref<1x32xf32, #tpu.memory_space<vmem>>, vector<1x32xf32>
    %445 = vector.broadcast %444 : vector<1x32xf32> to vector<16x32xf32>
    %446 = arith.addf %443, %445 : vector<16x32xf32>
    %447 = arith.addf %446, %348 : vector<16x32xf32>
    %cst_169 = arith.constant dense<0.000000e+00> : vector<16xf32>
    %448 = vector.multi_reduction <add>, %447, %cst_169 [1] : vector<16x32xf32> to vector<16xf32>
    %449 = vector.shape_cast %448 : vector<16xf32> to vector<16x1xf32>
    %cst_170 = arith.constant 3.200000e+01 : f32
    %450 = vector.broadcast %cst_170 : f32 to vector<16x1xf32>
    %451 = arith.divf %449, %450 : vector<16x1xf32>
    %452 = vector.broadcast %451 : vector<16x1xf32> to vector<16x32xf32>
    %453 = arith.subf %447, %452 : vector<16x32xf32>
    %454 = arith.mulf %453, %453 : vector<16x32xf32>
    %cst_171 = arith.constant dense<0.000000e+00> : vector<16xf32>
    %455 = vector.multi_reduction <add>, %454, %cst_171 [1] : vector<16x32xf32> to vector<16xf32>
    %456 = vector.shape_cast %455 : vector<16xf32> to vector<16x1xf32>
    %cst_172 = arith.constant 3.200000e+01 : f32
    %457 = vector.broadcast %cst_172 : f32 to vector<16x1xf32>
    %458 = arith.divf %456, %457 : vector<16x1xf32>
    %459 = vector.broadcast %451 : vector<16x1xf32> to vector<16x32xf32>
    %460 = arith.subf %447, %459 : vector<16x32xf32>
    %cst_173 = arith.constant 9.99999996E-13 : f32
    %461 = vector.broadcast %cst_173 : f32 to vector<16x1xf32>
    %462 = arith.addf %458, %461 : vector<16x1xf32>
    %463 = math.rsqrt %462 : vector<16x1xf32>
    %464 = vector.broadcast %463 : vector<16x1xf32> to vector<16x32xf32>
    %465 = arith.mulf %460, %464 : vector<16x32xf32>
    %c0_174 = arith.constant 0 : index
    %c0_175 = arith.constant 0 : index
    %466 = vector.load %arg41[%c0_174, %c0_175] : memref<1x32xf32, #tpu.memory_space<vmem>>, vector<1x32xf32>
    %467 = vector.broadcast %466 : vector<1x32xf32> to vector<16x32xf32>
    %468 = arith.mulf %465, %467 : vector<16x32xf32>
    %c0_176 = arith.constant 0 : index
    %c0_177 = arith.constant 0 : index
    %469 = vector.load %arg40[%c0_176, %c0_177] : memref<1x32xf32, #tpu.memory_space<vmem>>, vector<1x32xf32>
    %470 = vector.broadcast %469 : vector<1x32xf32> to vector<16x32xf32>
    %471 = arith.addf %468, %470 : vector<16x32xf32>
    %c0_178 = arith.constant 0 : index
    %c0_179 = arith.constant 0 : index
    %472 = vector.load %arg31[%c0_178, %c0_179] : memref<32x32xf32, #tpu.memory_space<vmem>>, vector<32x32xf32>
    %cst_180 = arith.constant dense<0.000000e+00> : vector<16x32xf32>
    %473 = tpu.matmul %471, %472, %cst_180 {dimension_numbers = #tpu.dot_dimension_numbers<[1], [0], [0], [1], [0, 0, 1, 1], [], []>} : vector<16x32xf32>, vector<32x32xf32>, vector<16x32xf32> -> vector<16x32xf32>
    %c0_181 = arith.constant 0 : index
    %c0_182 = arith.constant 0 : index
    %474 = vector.load %arg26[%c0_181, %c0_182] : memref<1x32xf32, #tpu.memory_space<vmem>>, vector<1x32xf32>
    %475 = vector.broadcast %474 : vector<1x32xf32> to vector<16x32xf32>
    %476 = arith.addf %473, %475 : vector<16x32xf32>
    %c0_183 = arith.constant 0 : index
    %c0_184 = arith.constant 0 : index
    %477 = vector.load %arg29[%c0_183, %c0_184] : memref<32x64xf32, #tpu.memory_space<vmem>>, vector<32x64xf32>
    %cst_185 = arith.constant dense<0.000000e+00> : vector<16x64xf32>
    %478 = tpu.matmul %25, %477, %cst_185 {dimension_numbers = #tpu.dot_dimension_numbers<[1], [0], [0], [1], [0, 0, 1, 1], [], []>} : vector<16x32xf32>, vector<32x64xf32>, vector<16x64xf32> -> vector<16x64xf32>
    %c0_186 = arith.constant 0 : index
    %c0_187 = arith.constant 0 : index
    %479 = vector.load %arg24[%c0_186, %c0_187] : memref<1x64xf32, #tpu.memory_space<vmem>>, vector<1x64xf32>
    %480 = vector.broadcast %479 : vector<1x64xf32> to vector<16x64xf32>
    %481 = arith.addf %478, %480 : vector<16x64xf32>
    %482 = vector.shape_cast %476 : vector<16x32xf32> to vector<2x8x32xf32>
    %483 = vector.shape_cast %481 : vector<16x64xf32> to vector<2x8x64xf32>
    %c0_188 = arith.constant 0 : index
    %c0_189 = arith.constant 0 : index
    %484 = vector.load %arg30[%c0_188, %c0_189] : memref<32x32xf32, #tpu.memory_space<vmem>>, vector<32x32xf32>
    %cst_190 = arith.constant 0.000000e+00 : f32
    %485 = vector.broadcast %cst_190 : f32 to vector<16x32xf32>
    %486 = vector.extract_strided_slice %482 {offsets = [0, 0, 0], sizes = [2, 8, 8], strides = [1, 1, 1]} : vector<2x8x32xf32> to vector<2x8x8xf32>
    %cst_191 = arith.constant 0.353553385 : f32
    %487 = vector.broadcast %cst_191 : f32 to vector<2x8x8xf32>
    %488 = arith.mulf %486, %487 : vector<2x8x8xf32>
    %489 = vector.extract_strided_slice %483 {offsets = [0, 0, 0], sizes = [2, 8, 8], strides = [1, 1, 1]} : vector<2x8x64xf32> to vector<2x8x8xf32>
    %490 = vector.extract_strided_slice %483 {offsets = [0, 0, 32], sizes = [2, 8, 8], strides = [1, 1, 1]} : vector<2x8x64xf32> to vector<2x8x8xf32>
    "tpu.trace_start"() <{level = 10 : i32, message = "bqd,bkd->bqk"}> : () -> ()
    %cst_192 = arith.constant dense<0.000000e+00> : vector<2x8x8xf32>
    %491 = tpu.matmul %488, %489, %cst_192 {dimension_numbers = #tpu.dot_dimension_numbers<[2], [2], [1], [1], [0, 0, 0, 1, 1, 1], [0], [0]>} : vector<2x8x8xf32>, vector<2x8x8xf32>, vector<2x8x8xf32> -> vector<2x8x8xf32>
    "tpu.trace_stop"() : () -> ()
    %cst_193 = arith.constant dense<0xFF800000> : vector<2x8xf32>
    %492 = vector.multi_reduction <maximumf>, %491, %cst_193 [2] : vector<2x8x8xf32> to vector<2x8xf32>
    %493 = vector.shape_cast %492 : vector<2x8xf32> to vector<2x8x1xf32>
    %494 = vector.broadcast %493 : vector<2x8x1xf32> to vector<2x8x8xf32>
    %495 = arith.subf %491, %494 : vector<2x8x8xf32>
    %496 = math.exp %495 : vector<2x8x8xf32>
    %cst_194 = arith.constant dense<0.000000e+00> : vector<2x8xf32>
    %497 = vector.multi_reduction <add>, %496, %cst_194 [2] : vector<2x8x8xf32> to vector<2x8xf32>
    %498 = vector.shape_cast %497 : vector<2x8xf32> to vector<2x8x1xf32>
    %499 = tpu.reciprocal %498 {approx = true} : vector<2x8x1xf32> -> vector<2x8x1xf32>
    %500 = vector.broadcast %499 : vector<2x8x1xf32> to vector<2x8x8xf32>
    %501 = arith.mulf %496, %500 : vector<2x8x8xf32>
    "tpu.trace_start"() <{level = 10 : i32, message = "bqk,bkd->bqd"}> : () -> ()
    %cst_195 = arith.constant dense<0.000000e+00> : vector<2x8x8xf32>
    %502 = tpu.matmul %501, %490, %cst_195 {dimension_numbers = #tpu.dot_dimension_numbers<[2], [1], [1], [2], [0, 0, 0, 1, 1, 2], [0], [0]>} : vector<2x8x8xf32>, vector<2x8x8xf32>, vector<2x8x8xf32> -> vector<2x8x8xf32>
    "tpu.trace_stop"() : () -> ()
    %503 = vector.shape_cast %502 : vector<2x8x8xf32> to vector<16x8xf32>
    %504 = vector.extract_strided_slice %484 {offsets = [0, 0], sizes = [8, 32], strides = [1, 1]} : vector<32x32xf32> to vector<8x32xf32>
    %cst_196 = arith.constant dense<0.000000e+00> : vector<16x32xf32>
    %505 = tpu.matmul %503, %504, %cst_196 {dimension_numbers = #tpu.dot_dimension_numbers<[1], [0], [0], [1], [0, 0, 1, 1], [], []>} : vector<16x8xf32>, vector<8x32xf32>, vector<16x32xf32> -> vector<16x32xf32>
    %506 = arith.addf %485, %505 : vector<16x32xf32>
    %507 = vector.extract_strided_slice %482 {offsets = [0, 0, 8], sizes = [2, 8, 8], strides = [1, 1, 1]} : vector<2x8x32xf32> to vector<2x8x8xf32>
    %cst_197 = arith.constant 0.353553385 : f32
    %508 = vector.broadcast %cst_197 : f32 to vector<2x8x8xf32>
    %509 = arith.mulf %507, %508 : vector<2x8x8xf32>
    %510 = vector.extract_strided_slice %483 {offsets = [0, 0, 8], sizes = [2, 8, 8], strides = [1, 1, 1]} : vector<2x8x64xf32> to vector<2x8x8xf32>
    %511 = vector.extract_strided_slice %483 {offsets = [0, 0, 40], sizes = [2, 8, 8], strides = [1, 1, 1]} : vector<2x8x64xf32> to vector<2x8x8xf32>
    "tpu.trace_start"() <{level = 10 : i32, message = "bqd,bkd->bqk"}> : () -> ()
    %cst_198 = arith.constant dense<0.000000e+00> : vector<2x8x8xf32>
    %512 = tpu.matmul %509, %510, %cst_198 {dimension_numbers = #tpu.dot_dimension_numbers<[2], [2], [1], [1], [0, 0, 0, 1, 1, 1], [0], [0]>} : vector<2x8x8xf32>, vector<2x8x8xf32>, vector<2x8x8xf32> -> vector<2x8x8xf32>
    "tpu.trace_stop"() : () -> ()
    %cst_199 = arith.constant dense<0xFF800000> : vector<2x8xf32>
    %513 = vector.multi_reduction <maximumf>, %512, %cst_199 [2] : vector<2x8x8xf32> to vector<2x8xf32>
    %514 = vector.shape_cast %513 : vector<2x8xf32> to vector<2x8x1xf32>
    %515 = vector.broadcast %514 : vector<2x8x1xf32> to vector<2x8x8xf32>
    %516 = arith.subf %512, %515 : vector<2x8x8xf32>
    %517 = math.exp %516 : vector<2x8x8xf32>
    %cst_200 = arith.constant dense<0.000000e+00> : vector<2x8xf32>
    %518 = vector.multi_reduction <add>, %517, %cst_200 [2] : vector<2x8x8xf32> to vector<2x8xf32>
    %519 = vector.shape_cast %518 : vector<2x8xf32> to vector<2x8x1xf32>
    %520 = tpu.reciprocal %519 {approx = true} : vector<2x8x1xf32> -> vector<2x8x1xf32>
    %521 = vector.broadcast %520 : vector<2x8x1xf32> to vector<2x8x8xf32>
    %522 = arith.mulf %517, %521 : vector<2x8x8xf32>
    "tpu.trace_start"() <{level = 10 : i32, message = "bqk,bkd->bqd"}> : () -> ()
    %cst_201 = arith.constant dense<0.000000e+00> : vector<2x8x8xf32>
    %523 = tpu.matmul %522, %511, %cst_201 {dimension_numbers = #tpu.dot_dimension_numbers<[2], [1], [1], [2], [0, 0, 0, 1, 1, 2], [0], [0]>} : vector<2x8x8xf32>, vector<2x8x8xf32>, vector<2x8x8xf32> -> vector<2x8x8xf32>
    "tpu.trace_stop"() : () -> ()
    %524 = vector.shape_cast %523 : vector<2x8x8xf32> to vector<16x8xf32>
    %525 = vector.extract_strided_slice %484 {offsets = [8, 0], sizes = [8, 32], strides = [1, 1]} : vector<32x32xf32> to vector<8x32xf32>
    %cst_202 = arith.constant dense<0.000000e+00> : vector<16x32xf32>
    %526 = tpu.matmul %524, %525, %cst_202 {dimension_numbers = #tpu.dot_dimension_numbers<[1], [0], [0], [1], [0, 0, 1, 1], [], []>} : vector<16x8xf32>, vector<8x32xf32>, vector<16x32xf32> -> vector<16x32xf32>
    %527 = arith.addf %506, %526 : vector<16x32xf32>
    %528 = vector.extract_strided_slice %482 {offsets = [0, 0, 16], sizes = [2, 8, 8], strides = [1, 1, 1]} : vector<2x8x32xf32> to vector<2x8x8xf32>
    %cst_203 = arith.constant 0.353553385 : f32
    %529 = vector.broadcast %cst_203 : f32 to vector<2x8x8xf32>
    %530 = arith.mulf %528, %529 : vector<2x8x8xf32>
    %531 = vector.extract_strided_slice %483 {offsets = [0, 0, 16], sizes = [2, 8, 8], strides = [1, 1, 1]} : vector<2x8x64xf32> to vector<2x8x8xf32>
    %532 = vector.extract_strided_slice %483 {offsets = [0, 0, 48], sizes = [2, 8, 8], strides = [1, 1, 1]} : vector<2x8x64xf32> to vector<2x8x8xf32>
    "tpu.trace_start"() <{level = 10 : i32, message = "bqd,bkd->bqk"}> : () -> ()
    %cst_204 = arith.constant dense<0.000000e+00> : vector<2x8x8xf32>
    %533 = tpu.matmul %530, %531, %cst_204 {dimension_numbers = #tpu.dot_dimension_numbers<[2], [2], [1], [1], [0, 0, 0, 1, 1, 1], [0], [0]>} : vector<2x8x8xf32>, vector<2x8x8xf32>, vector<2x8x8xf32> -> vector<2x8x8xf32>
    "tpu.trace_stop"() : () -> ()
    %cst_205 = arith.constant dense<0xFF800000> : vector<2x8xf32>
    %534 = vector.multi_reduction <maximumf>, %533, %cst_205 [2] : vector<2x8x8xf32> to vector<2x8xf32>
    %535 = vector.shape_cast %534 : vector<2x8xf32> to vector<2x8x1xf32>
    %536 = vector.broadcast %535 : vector<2x8x1xf32> to vector<2x8x8xf32>
    %537 = arith.subf %533, %536 : vector<2x8x8xf32>
    %538 = math.exp %537 : vector<2x8x8xf32>
    %cst_206 = arith.constant dense<0.000000e+00> : vector<2x8xf32>
    %539 = vector.multi_reduction <add>, %538, %cst_206 [2] : vector<2x8x8xf32> to vector<2x8xf32>
    %540 = vector.shape_cast %539 : vector<2x8xf32> to vector<2x8x1xf32>
    %541 = tpu.reciprocal %540 {approx = true} : vector<2x8x1xf32> -> vector<2x8x1xf32>
    %542 = vector.broadcast %541 : vector<2x8x1xf32> to vector<2x8x8xf32>
    %543 = arith.mulf %538, %542 : vector<2x8x8xf32>
    "tpu.trace_start"() <{level = 10 : i32, message = "bqk,bkd->bqd"}> : () -> ()
    %cst_207 = arith.constant dense<0.000000e+00> : vector<2x8x8xf32>
    %544 = tpu.matmul %543, %532, %cst_207 {dimension_numbers = #tpu.dot_dimension_numbers<[2], [1], [1], [2], [0, 0, 0, 1, 1, 2], [0], [0]>} : vector<2x8x8xf32>, vector<2x8x8xf32>, vector<2x8x8xf32> -> vector<2x8x8xf32>
    "tpu.trace_stop"() : () -> ()
    %545 = vector.shape_cast %544 : vector<2x8x8xf32> to vector<16x8xf32>
    %546 = vector.extract_strided_slice %484 {offsets = [16, 0], sizes = [8, 32], strides = [1, 1]} : vector<32x32xf32> to vector<8x32xf32>
    %cst_208 = arith.constant dense<0.000000e+00> : vector<16x32xf32>
    %547 = tpu.matmul %545, %546, %cst_208 {dimension_numbers = #tpu.dot_dimension_numbers<[1], [0], [0], [1], [0, 0, 1, 1], [], []>} : vector<16x8xf32>, vector<8x32xf32>, vector<16x32xf32> -> vector<16x32xf32>
    %548 = arith.addf %527, %547 : vector<16x32xf32>
    %549 = vector.extract_strided_slice %482 {offsets = [0, 0, 24], sizes = [2, 8, 8], strides = [1, 1, 1]} : vector<2x8x32xf32> to vector<2x8x8xf32>
    %cst_209 = arith.constant 0.353553385 : f32
    %550 = vector.broadcast %cst_209 : f32 to vector<2x8x8xf32>
    %551 = arith.mulf %549, %550 : vector<2x8x8xf32>
    %552 = vector.extract_strided_slice %483 {offsets = [0, 0, 24], sizes = [2, 8, 8], strides = [1, 1, 1]} : vector<2x8x64xf32> to vector<2x8x8xf32>
    %553 = vector.extract_strided_slice %483 {offsets = [0, 0, 56], sizes = [2, 8, 8], strides = [1, 1, 1]} : vector<2x8x64xf32> to vector<2x8x8xf32>
    "tpu.trace_start"() <{level = 10 : i32, message = "bqd,bkd->bqk"}> : () -> ()
    %cst_210 = arith.constant dense<0.000000e+00> : vector<2x8x8xf32>
    %554 = tpu.matmul %551, %552, %cst_210 {dimension_numbers = #tpu.dot_dimension_numbers<[2], [2], [1], [1], [0, 0, 0, 1, 1, 1], [0], [0]>} : vector<2x8x8xf32>, vector<2x8x8xf32>, vector<2x8x8xf32> -> vector<2x8x8xf32>
    "tpu.trace_stop"() : () -> ()
    %cst_211 = arith.constant dense<0xFF800000> : vector<2x8xf32>
    %555 = vector.multi_reduction <maximumf>, %554, %cst_211 [2] : vector<2x8x8xf32> to vector<2x8xf32>
    %556 = vector.shape_cast %555 : vector<2x8xf32> to vector<2x8x1xf32>
    %557 = vector.broadcast %556 : vector<2x8x1xf32> to vector<2x8x8xf32>
    %558 = arith.subf %554, %557 : vector<2x8x8xf32>
    %559 = math.exp %558 : vector<2x8x8xf32>
    %cst_212 = arith.constant dense<0.000000e+00> : vector<2x8xf32>
    %560 = vector.multi_reduction <add>, %559, %cst_212 [2] : vector<2x8x8xf32> to vector<2x8xf32>
    %561 = vector.shape_cast %560 : vector<2x8xf32> to vector<2x8x1xf32>
    %562 = tpu.reciprocal %561 {approx = true} : vector<2x8x1xf32> -> vector<2x8x1xf32>
    %563 = vector.broadcast %562 : vector<2x8x1xf32> to vector<2x8x8xf32>
    %564 = arith.mulf %559, %563 : vector<2x8x8xf32>
    "tpu.trace_start"() <{level = 10 : i32, message = "bqk,bkd->bqd"}> : () -> ()
    %cst_213 = arith.constant dense<0.000000e+00> : vector<2x8x8xf32>
    %565 = tpu.matmul %564, %553, %cst_213 {dimension_numbers = #tpu.dot_dimension_numbers<[2], [1], [1], [2], [0, 0, 0, 1, 1, 2], [0], [0]>} : vector<2x8x8xf32>, vector<2x8x8xf32>, vector<2x8x8xf32> -> vector<2x8x8xf32>
    "tpu.trace_stop"() : () -> ()
    %566 = vector.shape_cast %565 : vector<2x8x8xf32> to vector<16x8xf32>
    %567 = vector.extract_strided_slice %484 {offsets = [24, 0], sizes = [8, 32], strides = [1, 1]} : vector<32x32xf32> to vector<8x32xf32>
    %cst_214 = arith.constant dense<0.000000e+00> : vector<16x32xf32>
    %568 = tpu.matmul %566, %567, %cst_214 {dimension_numbers = #tpu.dot_dimension_numbers<[1], [0], [0], [1], [0, 0, 1, 1], [], []>} : vector<16x8xf32>, vector<8x32xf32>, vector<16x32xf32> -> vector<16x32xf32>
    %569 = arith.addf %548, %568 : vector<16x32xf32>
    %c0_215 = arith.constant 0 : index
    %c0_216 = arith.constant 0 : index
    %570 = vector.load %arg25[%c0_215, %c0_216] : memref<1x32xf32, #tpu.memory_space<vmem>>, vector<1x32xf32>
    %571 = vector.broadcast %570 : vector<1x32xf32> to vector<16x32xf32>
    %572 = arith.addf %569, %571 : vector<16x32xf32>
    %573 = arith.addf %572, %471 : vector<16x32xf32>
    %cst_217 = arith.constant dense<0.000000e+00> : vector<16xf32>
    %574 = vector.multi_reduction <add>, %573, %cst_217 [1] : vector<16x32xf32> to vector<16xf32>
    %575 = vector.shape_cast %574 : vector<16xf32> to vector<16x1xf32>
    %cst_218 = arith.constant 3.200000e+01 : f32
    %576 = vector.broadcast %cst_218 : f32 to vector<16x1xf32>
    %577 = arith.divf %575, %576 : vector<16x1xf32>
    %578 = vector.broadcast %577 : vector<16x1xf32> to vector<16x32xf32>
    %579 = arith.subf %573, %578 : vector<16x32xf32>
    %580 = arith.mulf %579, %579 : vector<16x32xf32>
    %cst_219 = arith.constant dense<0.000000e+00> : vector<16xf32>
    %581 = vector.multi_reduction <add>, %580, %cst_219 [1] : vector<16x32xf32> to vector<16xf32>
    %582 = vector.shape_cast %581 : vector<16xf32> to vector<16x1xf32>
    %cst_220 = arith.constant 3.200000e+01 : f32
    %583 = vector.broadcast %cst_220 : f32 to vector<16x1xf32>
    %584 = arith.divf %582, %583 : vector<16x1xf32>
    %585 = vector.broadcast %577 : vector<16x1xf32> to vector<16x32xf32>
    %586 = arith.subf %573, %585 : vector<16x32xf32>
    %cst_221 = arith.constant 9.99999996E-13 : f32
    %587 = vector.broadcast %cst_221 : f32 to vector<16x1xf32>
    %588 = arith.addf %584, %587 : vector<16x1xf32>
    %589 = math.rsqrt %588 : vector<16x1xf32>
    %590 = vector.broadcast %589 : vector<16x1xf32> to vector<16x32xf32>
    %591 = arith.mulf %586, %590 : vector<16x32xf32>
    %c0_222 = arith.constant 0 : index
    %c0_223 = arith.constant 0 : index
    %592 = vector.load %arg28[%c0_222, %c0_223] : memref<1x32xf32, #tpu.memory_space<vmem>>, vector<1x32xf32>
    %593 = vector.broadcast %592 : vector<1x32xf32> to vector<16x32xf32>
    %594 = arith.mulf %591, %593 : vector<16x32xf32>
    %c0_224 = arith.constant 0 : index
    %c0_225 = arith.constant 0 : index
    %595 = vector.load %arg27[%c0_224, %c0_225] : memref<1x32xf32, #tpu.memory_space<vmem>>, vector<1x32xf32>
    %596 = vector.broadcast %595 : vector<1x32xf32> to vector<16x32xf32>
    %597 = arith.addf %594, %596 : vector<16x32xf32>
    %c0_226 = arith.constant 0 : index
    %c0_227 = arith.constant 0 : index
    %598 = vector.load %arg36[%c0_226, %c0_227] : memref<32x64xf32, #tpu.memory_space<vmem>>, vector<32x64xf32>
    %cst_228 = arith.constant dense<0.000000e+00> : vector<16x64xf32>
    %599 = tpu.matmul %597, %598, %cst_228 {dimension_numbers = #tpu.dot_dimension_numbers<[1], [0], [0], [1], [0, 0, 1, 1], [], []>} : vector<16x32xf32>, vector<32x64xf32>, vector<16x64xf32> -> vector<16x64xf32>
    %c0_229 = arith.constant 0 : index
    %c0_230 = arith.constant 0 : index
    %600 = vector.load %arg32[%c0_229, %c0_230] : memref<1x64xf32, #tpu.memory_space<vmem>>, vector<1x64xf32>
    %601 = vector.broadcast %600 : vector<1x64xf32> to vector<16x64xf32>
    %602 = arith.addf %599, %601 : vector<16x64xf32>
    %603 = arith.mulf %602, %602 : vector<16x64xf32>
    %604 = arith.mulf %602, %603 : vector<16x64xf32>
    %cst_231 = arith.constant 4.471500e-02 : f32
    %605 = vector.broadcast %cst_231 : f32 to vector<16x64xf32>
    %606 = arith.mulf %605, %604 : vector<16x64xf32>
    %607 = arith.addf %602, %606 : vector<16x64xf32>
    %cst_232 = arith.constant 0.797884583 : f32
    %608 = vector.broadcast %cst_232 : f32 to vector<16x64xf32>
    %609 = arith.mulf %608, %607 : vector<16x64xf32>
    %610 = math.tanh %609 : vector<16x64xf32>
    %cst_233 = arith.constant 1.000000e+00 : f32
    %611 = vector.broadcast %cst_233 : f32 to vector<16x64xf32>
    %612 = arith.addf %611, %610 : vector<16x64xf32>
    %cst_234 = arith.constant 5.000000e-01 : f32
    %613 = vector.broadcast %cst_234 : f32 to vector<16x64xf32>
    %614 = arith.mulf %613, %612 : vector<16x64xf32>
    %615 = arith.mulf %602, %614 : vector<16x64xf32>
    %c0_235 = arith.constant 0 : index
    %c0_236 = arith.constant 0 : index
    %616 = vector.load %arg37[%c0_235, %c0_236] : memref<64x32xf32, #tpu.memory_space<vmem>>, vector<64x32xf32>
    %cst_237 = arith.constant dense<0.000000e+00> : vector<16x32xf32>
    %617 = tpu.matmul %615, %616, %cst_237 {dimension_numbers = #tpu.dot_dimension_numbers<[1], [0], [0], [1], [0, 0, 1, 1], [], []>} : vector<16x64xf32>, vector<64x32xf32>, vector<16x32xf32> -> vector<16x32xf32>
    %c0_238 = arith.constant 0 : index
    %c0_239 = arith.constant 0 : index
    %618 = vector.load %arg33[%c0_238, %c0_239] : memref<1x32xf32, #tpu.memory_space<vmem>>, vector<1x32xf32>
    %619 = vector.broadcast %618 : vector<1x32xf32> to vector<16x32xf32>
    %620 = arith.addf %617, %619 : vector<16x32xf32>
    %621 = arith.addf %620, %597 : vector<16x32xf32>
    %cst_240 = arith.constant dense<0.000000e+00> : vector<16xf32>
    %622 = vector.multi_reduction <add>, %621, %cst_240 [1] : vector<16x32xf32> to vector<16xf32>
    %623 = vector.shape_cast %622 : vector<16xf32> to vector<16x1xf32>
    %cst_241 = arith.constant 3.200000e+01 : f32
    %624 = vector.broadcast %cst_241 : f32 to vector<16x1xf32>
    %625 = arith.divf %623, %624 : vector<16x1xf32>
    %626 = vector.broadcast %625 : vector<16x1xf32> to vector<16x32xf32>
    %627 = arith.subf %621, %626 : vector<16x32xf32>
    %628 = arith.mulf %627, %627 : vector<16x32xf32>
    %cst_242 = arith.constant dense<0.000000e+00> : vector<16xf32>
    %629 = vector.multi_reduction <add>, %628, %cst_242 [1] : vector<16x32xf32> to vector<16xf32>
    %630 = vector.shape_cast %629 : vector<16xf32> to vector<16x1xf32>
    %cst_243 = arith.constant 3.200000e+01 : f32
    %631 = vector.broadcast %cst_243 : f32 to vector<16x1xf32>
    %632 = arith.divf %630, %631 : vector<16x1xf32>
    %633 = vector.broadcast %625 : vector<16x1xf32> to vector<16x32xf32>
    %634 = arith.subf %621, %633 : vector<16x32xf32>
    %cst_244 = arith.constant 9.99999996E-13 : f32
    %635 = vector.broadcast %cst_244 : f32 to vector<16x1xf32>
    %636 = arith.addf %632, %635 : vector<16x1xf32>
    %637 = math.rsqrt %636 : vector<16x1xf32>
    %638 = vector.broadcast %637 : vector<16x1xf32> to vector<16x32xf32>
    %639 = arith.mulf %634, %638 : vector<16x32xf32>
    %c0_245 = arith.constant 0 : index
    %c0_246 = arith.constant 0 : index
    %640 = vector.load %arg35[%c0_245, %c0_246] : memref<1x32xf32, #tpu.memory_space<vmem>>, vector<1x32xf32>
    %641 = vector.broadcast %640 : vector<1x32xf32> to vector<16x32xf32>
    %642 = arith.mulf %639, %641 : vector<16x32xf32>
    %c0_247 = arith.constant 0 : index
    %c0_248 = arith.constant 0 : index
    %643 = vector.load %arg34[%c0_247, %c0_248] : memref<1x32xf32, #tpu.memory_space<vmem>>, vector<1x32xf32>
    %644 = vector.broadcast %643 : vector<1x32xf32> to vector<16x32xf32>
    %645 = arith.addf %642, %644 : vector<16x32xf32>
    %c0_249 = arith.constant 0 : index
    %c0_250 = arith.constant 0 : index
    %646 = vector.load %arg46[%c0_249, %c0_250] : memref<32x48xf32, #tpu.memory_space<vmem>>, vector<32x48xf32>
    %cst_251 = arith.constant dense<0.000000e+00> : vector<16x48xf32>
    %647 = tpu.matmul %645, %646, %cst_251 {dimension_numbers = #tpu.dot_dimension_numbers<[1], [0], [0], [1], [0, 0, 1, 1], [], []>} : vector<16x32xf32>, vector<32x48xf32>, vector<16x48xf32> -> vector<16x48xf32>
    %c0_252 = arith.constant 0 : index
    %c0_253 = arith.constant 0 : index
    %648 = vector.load %arg44[%c0_252, %c0_253] : memref<1x48xf32, #tpu.memory_space<vmem>>, vector<1x48xf32>
    %649 = vector.broadcast %648 : vector<1x48xf32> to vector<16x48xf32>
    %650 = arith.addf %647, %649 : vector<16x48xf32>
    %651 = arith.mulf %650, %650 : vector<16x48xf32>
    %652 = arith.mulf %650, %651 : vector<16x48xf32>
    %cst_254 = arith.constant 4.471500e-02 : f32
    %653 = vector.broadcast %cst_254 : f32 to vector<16x48xf32>
    %654 = arith.mulf %653, %652 : vector<16x48xf32>
    %655 = arith.addf %650, %654 : vector<16x48xf32>
    %cst_255 = arith.constant 0.797884583 : f32
    %656 = vector.broadcast %cst_255 : f32 to vector<16x48xf32>
    %657 = arith.mulf %656, %655 : vector<16x48xf32>
    %658 = math.tanh %657 : vector<16x48xf32>
    %cst_256 = arith.constant 1.000000e+00 : f32
    %659 = vector.broadcast %cst_256 : f32 to vector<16x48xf32>
    %660 = arith.addf %659, %658 : vector<16x48xf32>
    %cst_257 = arith.constant 5.000000e-01 : f32
    %661 = vector.broadcast %cst_257 : f32 to vector<16x48xf32>
    %662 = arith.mulf %661, %660 : vector<16x48xf32>
    %663 = arith.mulf %650, %662 : vector<16x48xf32>
    %c0_258 = arith.constant 0 : index
    %c0_259 = arith.constant 0 : index
    %664 = vector.load %arg47[%c0_258, %c0_259] : memref<48x48xf32, #tpu.memory_space<vmem>>, vector<48x48xf32>
    %cst_260 = arith.constant dense<0.000000e+00> : vector<16x48xf32>
    %665 = tpu.matmul %663, %664, %cst_260 {dimension_numbers = #tpu.dot_dimension_numbers<[1], [0], [0], [1], [0, 0, 1, 1], [], []>} : vector<16x48xf32>, vector<48x48xf32>, vector<16x48xf32> -> vector<16x48xf32>
    %c0_261 = arith.constant 0 : index
    %c0_262 = arith.constant 0 : index
    %666 = vector.load %arg45[%c0_261, %c0_262] : memref<1x48xf32, #tpu.memory_space<vmem>>, vector<1x48xf32>
    %667 = vector.broadcast %666 : vector<1x48xf32> to vector<16x48xf32>
    %668 = arith.addf %665, %667 : vector<16x48xf32>
    %c0_263 = arith.constant 0 : index
    %c0_264 = arith.constant 0 : index
    %669 = vector.load %arg51[%c0_263, %c0_264] : memref<16x48xf32, #tpu.memory_space<vmem>>, vector<16x48xf32>
    tpu.vector_store %arg51[%c0_263, %c0_264], %668 {strides = array<i32>} : memref<16x48xf32, #tpu.memory_space<vmem>>, vector<16x48xf32>,
    return
  }
  func.func @transform_0(%arg0: i32) -> (i32, i32, i32) {
    %c0_i32 = arith.constant 0 : i32
    %c0_i32_0 = arith.constant 0 : i32
    %c0_i32_1 = arith.constant 0 : i32
    return %arg0, %c0_i32, %c0_i32_0 : i32, i32, i32
  }
  func.func @transform_1(%arg0: i32) -> (i32, i32) {
    %c0_i32 = arith.constant 0 : i32
    %c0_i32_0 = arith.constant 0 : i32
    %c0_i32_1 = arith.constant 0 : i32
    return %c0_i32, %c0_i32_0 : i32, i32
  }
  func.func @transform_2(%arg0: i32) -> (i32, i32) {
    %c0_i32 = arith.constant 0 : i32
    %c0_i32_0 = arith.constant 0 : i32
    %c0_i32_1 = arith.constant 0 : i32
    return %c0_i32, %c0_i32_0 : i32, i32
  }
  func.func @transform_3(%arg0: i32) -> (i32, i32) {
    %c0_i32 = arith.constant 0 : i32
    %c0_i32_0 = arith.constant 0 : i32
    %c0_i32_1 = arith.constant 0 : i32
    return %c0_i32, %c0_i32_0 : i32, i32
  }
  func.func @transform_4(%arg0: i32) -> (i32, i32) {
    %c0_i32 = arith.constant 0 : i32
    %c0_i32_0 = arith.constant 0 : i32
    %c0_i32_1 = arith.constant 0 : i32
    return %c0_i32, %c0_i32_0 : i32, i32
  }
  func.func @transform_5(%arg0: i32) -> (i32, i32) {
    %c0_i32 = arith.constant 0 : i32
    %c0_i32_0 = arith.constant 0 : i32
    %c0_i32_1 = arith.constant 0 : i32
    return %c0_i32, %c0_i32_0 : i32, i32
  }
  func.func @transform_6(%arg0: i32) -> (i32, i32) {
    %c0_i32 = arith.constant 0 : i32
    %c0_i32_0 = arith.constant 0 : i32
    %c0_i32_1 = arith.constant 0 : i32
    return %c0_i32, %c0_i32_0 : i32, i32
  }
  func.func @transform_7(%arg0: i32) -> (i32, i32) {
    %c0_i32 = arith.constant 0 : i32
    %c0_i32_0 = arith.constant 0 : i32
    %c0_i32_1 = arith.constant 0 : i32
    return %c0_i32, %c0_i32_0 : i32, i32
  }
  func.func @transform_8(%arg0: i32) -> (i32, i32) {
    %c0_i32 = arith.constant 0 : i32
    %c0_i32_0 = arith.constant 0 : i32
    %c0_i32_1 = arith.constant 0 : i32
    return %c0_i32, %c0_i32_0 : i32, i32
  }
  func.func @transform_9(%arg0: i32) -> (i32, i32) {
    %c0_i32 = arith.constant 0 : i32
    %c0_i32_0 = arith.constant 0 : i32
    %c0_i32_1 = arith.constant 0 : i32
    return %c0_i32, %c0_i32_0 : i32, i32
  }
  func.func @transform_10(%arg0: i32) -> (i32, i32) {
    %c0_i32 = arith.constant 0 : i32
    %c0_i32_0 = arith.constant 0 : i32
    %c0_i32_1 = arith.constant 0 : i32
    return %c0_i32, %c0_i32_0 : i32, i32
  }
  func.func @transform_11(%arg0: i32) -> (i32, i32) {
    %c0_i32 = arith.constant 0 : i32
    %c0_i32_0 = arith.constant 0 : i32
    %c0_i32_1 = arith.constant 0 : i32
    return %c0_i32, %c0_i32_0 : i32, i32
  }
  func.func @transform_12(%arg0: i32) -> (i32, i32) {
    %c0_i32 = arith.constant 0 : i32
    %c0_i32_0 = arith.constant 0 : i32
    %c0_i32_1 = arith.constant 0 : i32
    return %c0_i32, %c0_i32_0 : i32, i32
  }
  func.func @transform_13(%arg0: i32) -> (i32, i32) {
    %c0_i32 = arith.constant 0 : i32
    %c0_i32_0 = arith.constant 0 : i32
    %c0_i32_1 = arith.constant 0 : i32
    return %c0_i32, %c0_i32_0 : i32, i32
  }
  func.func @transform_14(%arg0: i32) -> (i32, i32) {
    %c0_i32 = arith.constant 0 : i32
    %c0_i32_0 = arith.constant 0 : i32
    %c0_i32_1 = arith.constant 0 : i32
    return %c0_i32, %c0_i32_0 : i32, i32
  }
  func.func @transform_15(%arg0: i32) -> (i32, i32) {
    %c0_i32 = arith.constant 0 : i32
    %c0_i32_0 = arith.constant 0 : i32
    %c0_i32_1 = arith.constant 0 : i32
    return %c0_i32, %c0_i32_0 : i32, i32
  }
  func.func @transform_16(%arg0: i32) -> (i32, i32) {
    %c0_i32 = arith.constant 0 : i32
    %c0_i32_0 = arith.constant 0 : i32
    %c0_i32_1 = arith.constant 0 : i32
    return %c0_i32, %c0_i32_0 : i32, i32
  }
  func.func @transform_17(%arg0: i32) -> (i32, i32) {
    %c0_i32 = arith.constant 0 : i32
    %c0_i32_0 = arith.constant 0 : i32
    %c0_i32_1 = arith.constant 0 : i32
    return %c0_i32, %c0_i32_0 : i32, i32
  }
  func.func @transform_18(%arg0: i32) -> (i32, i32) {
    %c0_i32 = arith.constant 0 : i32
    %c0_i32_0 = arith.constant 0 : i32
    %c0_i32_1 = arith.constant 0 : i32
    return %c0_i32, %c0_i32_0 : i32, i32
  }
  func.func @transform_19(%arg0: i32) -> (i32, i32) {
    %c0_i32 = arith.constant 0 : i32
    %c0_i32_0 = arith.constant 0 : i32
    %c0_i32_1 = arith.constant 0 : i32
    return %c0_i32, %c0_i32_0 : i32, i32
  }
  func.func @transform_20(%arg0: i32) -> (i32, i32) {
    %c0_i32 = arith.constant 0 : i32
    %c0_i32_0 = arith.constant 0 : i32
    %c0_i32_1 = arith.constant 0 : i32
    return %c0_i32, %c0_i32_0 : i32, i32
  }
  func.func @transform_21(%arg0: i32) -> (i32, i32) {
    %c0_i32 = arith.constant 0 : i32
    %c0_i32_0 = arith.constant 0 : i32
    %c0_i32_1 = arith.constant 0 : i32
    return %c0_i32, %c0_i32_0 : i32, i32
  }
  func.func @transform_22(%arg0: i32) -> (i32, i32) {
    %c0_i32 = arith.constant 0 : i32
    %c0_i32_0 = arith.constant 0 : i32
    %c0_i32_1 = arith.constant 0 : i32
    return %c0_i32, %c0_i32_0 : i32, i32
  }
  func.func @transform_23(%arg0: i32) -> (i32, i32) {
    %c0_i32 = arith.constant 0 : i32
    %c0_i32_0 = arith.constant 0 : i32
    %c0_i32_1 = arith.constant 0 : i32
    return %c0_i32, %c0_i32_0 : i32, i32
  }
  func.func @transform_24(%arg0: i32) -> (i32, i32) {
    %c0_i32 = arith.constant 0 : i32
    %c0_i32_0 = arith.constant 0 : i32
    %c0_i32_1 = arith.constant 0 : i32
    return %c0_i32, %c0_i32_0 : i32, i32
  }
  func.func @transform_25(%arg0: i32) -> (i32, i32) {
    %c0_i32 = arith.constant 0 : i32
    %c0_i32_0 = arith.constant 0 : i32
    %c0_i32_1 = arith.constant 0 : i32
    return %c0_i32, %c0_i32_0 : i32, i32
  }
  func.func @transform_26(%arg0: i32) -> (i32, i32) {
    %c0_i32 = arith.constant 0 : i32
    %c0_i32_0 = arith.constant 0 : i32
    %c0_i32_1 = arith.constant 0 : i32
    return %c0_i32, %c0_i32_0 : i32, i32
  }
  func.func @transform_27(%arg0: i32) -> (i32, i32) {
    %c0_i32 = arith.constant 0 : i32
    %c0_i32_0 = arith.constant 0 : i32
    %c0_i32_1 = arith.constant 0 : i32
    return %c0_i32, %c0_i32_0 : i32, i32
  }
  func.func @transform_28(%arg0: i32) -> (i32, i32) {
    %c0_i32 = arith.constant 0 : i32
    %c0_i32_0 = arith.constant 0 : i32
    %c0_i32_1 = arith.constant 0 : i32
    return %c0_i32, %c0_i32_0 : i32, i32
  }
  func.func @transform_29(%arg0: i32) -> (i32, i32) {
    %c0_i32 = arith.constant 0 : i32
    %c0_i32_0 = arith.constant 0 : i32
    %c0_i32_1 = arith.constant 0 : i32
    return %c0_i32, %c0_i32_0 : i32, i32
  }
  func.func @transform_30(%arg0: i32) -> (i32, i32) {
    %c0_i32 = arith.constant 0 : i32
    %c0_i32_0 = arith.constant 0 : i32
    %c0_i32_1 = arith.constant 0 : i32
    return %c0_i32, %c0_i32_0 : i32, i32
  }
  func.func @transform_31(%arg0: i32) -> (i32, i32) {
    %c0_i32 = arith.constant 0 : i32
    %c0_i32_0 = arith.constant 0 : i32
    %c0_i32_1 = arith.constant 0 : i32
    return %c0_i32, %c0_i32_0 : i32, i32
  }
  func.func @transform_32(%arg0: i32) -> (i32, i32) {
    %c0_i32 = arith.constant 0 : i32
    %c0_i32_0 = arith.constant 0 : i32
    %c0_i32_1 = arith.constant 0 : i32
    return %c0_i32, %c0_i32_0 : i32, i32
  }
  func.func @transform_33(%arg0: i32) -> (i32, i32) {
    %c0_i32 = arith.constant 0 : i32
    %c0_i32_0 = arith.constant 0 : i32
    %c0_i32_1 = arith.constant 0 : i32
    return %c0_i32, %c0_i32_0 : i32, i32
  }
  func.func @transform_34(%arg0: i32) -> (i32, i32) {
    %c0_i32 = arith.constant 0 : i32
    %c0_i32_0 = arith.constant 0 : i32
    %c0_i32_1 = arith.constant 0 : i32
    return %c0_i32, %c0_i32_0 : i32, i32
  }
  func.func @transform_35(%arg0: i32) -> (i32, i32) {
    %c0_i32 = arith.constant 0 : i32
    %c0_i32_0 = arith.constant 0 : i32
    %c0_i32_1 = arith.constant 0 : i32
    return %c0_i32, %c0_i32_0 : i32, i32
  }
  func.func @transform_36(%arg0: i32) -> (i32, i32) {
    %c0_i32 = arith.constant 0 : i32
    %c0_i32_0 = arith.constant 0 : i32
    %c0_i32_1 = arith.constant 0 : i32
    return %c0_i32, %c0_i32_0 : i32, i32
  }
  func.func @transform_37(%arg0: i32) -> (i32, i32) {
    %c0_i32 = arith.constant 0 : i32
    %c0_i32_0 = arith.constant 0 : i32
    %c0_i32_1 = arith.constant 0 : i32
    return %c0_i32, %c0_i32_0 : i32, i32
  }
  func.func @transform_38(%arg0: i32) -> (i32, i32) {
    %c0_i32 = arith.constant 0 : i32
    %c0_i32_0 = arith.constant 0 : i32
    %c0_i32_1 = arith.constant 0 : i32
    return %c0_i32, %c0_i32_0 : i32, i32
  }
  func.func @transform_39(%arg0: i32) -> (i32, i32) {
    %c0_i32 = arith.constant 0 : i32
    %c0_i32_0 = arith.constant 0 : i32
    %c0_i32_1 = arith.constant 0 : i32
    return %c0_i32, %c0_i32_0 : i32, i32
  }
  func.func @transform_40(%arg0: i32) -> (i32, i32) {
    %c0_i32 = arith.constant 0 : i32
    %c0_i32_0 = arith.constant 0 : i32
    %c0_i32_1 = arith.constant 0 : i32
    return %c0_i32, %c0_i32_0 : i32, i32
  }
  func.func @transform_41(%arg0: i32) -> (i32, i32) {
    %c0_i32 = arith.constant 0 : i32
    %c0_i32_0 = arith.constant 0 : i32
    %c0_i32_1 = arith.constant 0 : i32
    return %c0_i32, %c0_i32_0 : i32, i32
  }
  func.func @transform_42(%arg0: i32) -> (i32, i32) {
    %c0_i32 = arith.constant 0 : i32
    %c0_i32_0 = arith.constant 0 : i32
    %c0_i32_1 = arith.constant 0 : i32
    return %c0_i32, %c0_i32_0 : i32, i32
  }
  func.func @transform_43(%arg0: i32) -> (i32, i32) {
    %c0_i32 = arith.constant 0 : i32
    %c0_i32_0 = arith.constant 0 : i32
    %c0_i32_1 = arith.constant 0 : i32
    return %c0_i32, %c0_i32_0 : i32, i32
  }
  func.func @transform_44(%arg0: i32) -> (i32, i32) {
    %c0_i32 = arith.constant 0 : i32
    %c0_i32_0 = arith.constant 0 : i32
    %c0_i32_1 = arith.constant 0 : i32
    return %c0_i32, %c0_i32_0 : i32, i32
  }
  func.func @transform_45(%arg0: i32) -> (i32, i32) {
    %c0_i32 = arith.constant 0 : i32
    %c0_i32_0 = arith.constant 0 : i32
    %c0_i32_1 = arith.constant 0 : i32
    return %c0_i32, %c0_i32_0 : i32, i32
  }
  func.func @transform_46(%arg0: i32) -> (i32, i32) {
    %c0_i32 = arith.constant 0 : i32
    %c0_i32_0 = arith.constant 0 : i32
    %c0_i32_1 = arith.constant 0 : i32
    return %c0_i32, %c0_i32_0 : i32, i32
  }
  func.func @transform_47(%arg0: i32) -> (i32, i32) {
    %c0_i32 = arith.constant 0 : i32
    %c0_i32_0 = arith.constant 0 : i32
    %c0_i32_1 = arith.constant 0 : i32
    return %c0_i32, %c0_i32_0 : i32, i32
  }
  func.func @transform_48(%arg0: i32) -> (i32, i32) {
    %c0_i32 = arith.constant 0 : i32
    %c0_i32_0 = arith.constant 0 : i32
    %c0_i32_1 = arith.constant 0 : i32
    return %c0_i32, %c0_i32_0 : i32, i32
  }
  func.func @transform_49(%arg0: i32) -> (i32, i32) {
    %c0_i32 = arith.constant 0 : i32
    %c0_i32_0 = arith.constant 0 : i32
    %c0_i32_1 = arith.constant 0 : i32
    return %c0_i32, %c0_i32_0 : i32, i32
  }
  func.func @transform_50(%arg0: i32) -> (i32, i32) {
    %c0_i32 = arith.constant 0 : i32
    %c0_i32_0 = arith.constant 0 : i32
    return %arg0, %c0_i32 : i32, i32
  }
}

</mosaic_0001>

<bundles_post_ra>
// kernel: vl_projector_forward.1
= control target key start
LH: loop header
LB: loop body
LE: loop exit
PB: predicated region body
PF: predicated region fallthrough
CT: control target
= control target key end

     0   :  { %s13369_s6 = smov 1   ;;  %s13370_s10 = smov 2   ;;  %s14928_s0 = inlined_call_operand.smem [shape: u32[51], index: -1, kind: input, shape index: {}] }
   0x1   :  { %s13484_s5 = sld [smem:[%s14928_s0]]   ;;  %s13371_s14 = smov 3  }
   0x2   :  { %s13489_s9 = sld [smem:[%s14928_s0 + %s13369_s6]]   ;;  %s13372_s18 = smov 4  }
   0x3   :  { %s13494_s13 = sld [smem:[%s14928_s0 + %s13370_s10]]   ;;  %s13373_s22 = smov 5  }
   0x4   :  { %s13499_s17 = sld [smem:[%s14928_s0 + %s13371_s14]]   ;;  %s13374_s26 = smov 6  }
   0x5   :  { %s13504_s21 = sld [smem:[%s14928_s0 + %s13372_s18]]   ;;  %s13375_s30 = smov 7  }
   0x6   :  { %s13509_s25 = sld [smem:[%s14928_s0 + %s13373_s22]]   ;;  %s13376_s4 = smov 8  }
   0x7   :  { %14957 = sst [smem:[#allocation84_spill]] %s13484_s5  ;;  %s13377_s10 = smov 9  }
   0x8   :  { %14958 = sst [smem:[#allocation85_spill]] %s13489_s9  ;;  %s13378_s15 = smov 10  }
   0x9   :  { %14959 = sst [smem:[#allocation86_spill]] %s13494_s13  ;;  %s13379_s20 = smov 11  }
   0xa   :  { %14960 = sst [smem:[#allocation87_spill]] %s13499_s17  ;;  %s13381_s1 = smov 13  }
   0xb   :  { %s13514_s29 = sld [smem:[%s14928_s0 + %s13374_s26]]   ;;  %s13380_s26 = smov 12  }
   0xc   :  { %14961 = sst [smem:[#allocation88_spill]] %s13509_s25  ;;  %s13382_s7 = smov 14  }
   0xd   :  { %s13519_s3 = sld [smem:[%s14928_s0 + %s13375_s30]]   ;;  %s13384_s22 = smov 16  }
   0xe   :  { %s13524_s8 = sld [smem:[%s14928_s0 + %s13376_s4]]   ;;  %s13385_s28 = smov 17  }
   0xf   :  { %s13529_s14 = sld [smem:[%s14928_s0 + %s13377_s10]]  }
  0x10   :  { %s13534_s19 = sld [smem:[%s14928_s0 + %s13378_s15]]   ;;  %s13383_s15 = smov 15  }
  0x11   :  { %s13539_s24 = sld [smem:[%s14928_s0 + %s13379_s20]]  }
  0x12   :  { %s13544_s30 = sld [smem:[%s14928_s0 + %s13380_s26]]  }
  0x13   :  { %14962 = sst [smem:[#allocation89_spill]] %s13519_s3 }
  0x14   :  { %14963 = sst [smem:[#allocation90_spill]] %s13524_s8 }
  0x15   :  { %14964 = sst [smem:[#allocation91_spill]] %s13529_s14 }
  0x16   :  { %14965 = sst [smem:[#allocation92_spill]] %s13534_s19 }
  0x17   :  { %s13549_s6 = sld [smem:[%s14928_s0 + %s13381_s1]]  }
  0x18   :  { %14966 = sst [smem:[#allocation93_spill]] %s13544_s30 }
  0x19   :  { %s13554_s12 = sld [smem:[%s14928_s0 + %s13382_s7]]   ;;  %s13386_s7 = smov 18  }
  0x1a   :  { %s13559_s20 = sld [smem:[%s14928_s0 + %s13383_s15]]   ;;  %s13387_s15 = smov 19  }
  0x1b   :  { %s13564_s27 = sld [smem:[%s14928_s0 + %s13384_s22]]   ;;  %s13388_s22 = smov 20  }
  0x1c   :  { %s13569_s4 = sld [smem:[%s14928_s0 + %s13385_s28]]   ;;  %s13389_s28 = smov 21  }
  0x1d   :  { %14967 = sst [smem:[#allocation94_spill]] %s13549_s6 }
  0x1e   :  { %s13574_s14 = sld [smem:[%s14928_s0 + %s13386_s7]]   ;;  %s13390_s7 = smov 22  }
  0x1f   :  { %14968 = sst [smem:[#allocation95_spill]] %s13554_s12 }
  0x20   :  { %s13579_s19 = sld [smem:[%s14928_s0 + %s13387_s15]]   ;;  %s13391_s15 = smov 23  }
  0x21   :  { %14969 = sst [smem:[#allocation96_spill]] %s13564_s27 }
  0x22   :  { %14970 = sst [smem:[#allocation97_spill]] %s13569_s4 }
  0x23   :  { %s13584_s27 = sld [smem:[%s14928_s0 + %s13388_s22]]   ;;  %s13392_s22 = smov 24  }
  0x24   :  { %s13589_s8 = sld [smem:[%s14928_s0 + %s13389_s28]]   ;;  %s13393_s28 = smov 25  }
  0x25   :  { %s13594_s5 = sld [smem:[%s14928_s0 + %s13390_s7]]   ;;  %s13394_s7 = smov 26  }
  0x26   :  { %14971 = sst [smem:[#allocation98_spill]] %s13579_s19 }
  0x27   :  { %s13599_s19 = sld [smem:[%s14928_s0 + %s13391_s15]]   ;;  %s13395_s15 = smov 27  }
  0x28   :  { %s13604_s4 = sld [smem:[%s14928_s0 + %s13392_s22]]   ;;  %s13396_s22 = smov 28  }
  0x29   :  { %s13614_s12 = sld [smem:[%s14928_s0 + %s13394_s7]]   ;;  %s13398_s7 = smov 30  }
  0x2a   :  { %14972 = sst [smem:[#allocation99_spill]] %s13589_s8 }
  0x2b   :  { %14973 = sst [smem:[#allocation100_spill]] %s13594_s5 }
  0x2c   :  { %s13609_s8 = sld [smem:[%s14928_s0 + %s13393_s28]]   ;;  %s13397_s28 = smov 29  }
  0x2d   :  { %14974 = sst [smem:[#allocation101_spill]] %s13599_s19 }
  0x2e   :  { %14975 = sst [smem:[#allocation102_spill]] %s13604_s4 }
  0x2f   :  { %s13619_s19 = sld [smem:[%s14928_s0 + %s13395_s15]]   ;;  %s13399_s15 = smov 31  }
  0x30   :  { %s13624_s30 = sld [smem:[%s14928_s0 + %s13396_s22]]   ;;  %s13400_s22 = smov 32  }
  0x31   :  { %s13634_s3 = sld [smem:[%s14928_s0 + %s13398_s7]]   ;;  %s13402_s7 = smov 34  }
  0x32   :  { %14976 = sst [smem:[#allocation103_spill]] %s13609_s8 }
  0x33   :  { %s13629_s8 = sld [smem:[%s14928_s0 + %s13397_s28]]   ;;  %s13401_s28 = smov 33  }
  0x34   :  { %s13649_s25 = sld [smem:[%s14928_s0 + %s13401_s28]]   ;;  %s13405_s28 = smov 37  }
  0x35   :  { %14977 = sst [smem:[#allocation104_spill]] %s13619_s19 }
  0x36   :  { %14978 = sst [smem:[#allocation105_spill]] %s13624_s30 }
  0x37   :  { %14979 = sst [smem:[#allocation106_spill]] %s13634_s3 }
  0x38   :  { %s13639_s19 = sld [smem:[%s14928_s0 + %s13399_s15]]   ;;  %s13403_s15 = smov 35  }
  0x39   :  { %s13644_s30 = sld [smem:[%s14928_s0 + %s13400_s22]]   ;;  %s13404_s22 = smov 36  }
  0x3a   :  { %s13654_s3 = sld [smem:[%s14928_s0 + %s13402_s7]]   ;;  %s13406_s7 = smov 38  }
  0x3b   :  { %s13659_s17 = sld [smem:[%s14928_s0 + %s13403_s15]]   ;;  %s13407_s15 = smov 39  }
  0x3c   :  { %s13669_s9 = sld [smem:[%s14928_s0 + %s13405_s28]]   ;;  %s13409_s28 = smov 41  }
  0x3f   :  { %14980 = sst [smem:[#allocation107_spill]] %s13644_s30 }
  0x40   :  { %14981 = sst [smem:[#allocation108_spill]] %s13654_s3 }
  0x41   :  { %14982 = sst [smem:[#allocation109_spill]] %s13659_s17 }
  0x42   :  { %s13664_s30 = sld [smem:[%s14928_s0 + %s13404_s22]]   ;;  %s13408_s22 = smov 40  }
  0x43   :  { %14984 = sst [smem:[#allocation111_spill]] %s13669_s9 }
  0x44   :  { %s13674_s3 = sld [smem:[%s14928_s0 + %s13406_s7]]   ;;  %s13410_s7 = smov 42  }
  0x45   :  { %s13679_s17 = sld [smem:[%s14928_s0 + %s13407_s15]]   ;;  %s13411_s15 = smov 43  }
  0x46   :  { %s13689_s9 = sld [smem:[%s14928_s0 + %s13409_s28]]   ;;  %s13413_s28 = smov 45  }
  0x48   :  { %14983 = sst [smem:[#allocation110_spill]] %s13664_s30 }
  0x49   :  { %s13684_s30 = sld [smem:[%s14928_s0 + %s13408_s22]]   ;;  %s13412_s22 = smov 44  }
  0x4a   :  { %14985 = sst [smem:[#allocation112_spill]] %s13674_s3 }
  0x4b   :  { %14986 = sst [smem:[#allocation113_spill]] %s13679_s17 }
  0x4c   :  { %14988 = sst [smem:[#allocation115_spill]] %s13689_s9 }
  0x4d   :  { %s13694_s3 = sld [smem:[%s14928_s0 + %s13410_s7]]   ;;  %s13414_s7 = smov 46  }
  0x4e   :  { %s13699_s17 = sld [smem:[%s14928_s0 + %s13411_s15]]   ;;  %s13415_s15 = smov 47  }
  0x4f   :  { %14987 = sst [smem:[#allocation114_spill]] %s13684_s30 }
  0x50   :  { %s13704_s30 = sld [smem:[%s14928_s0 + %s13412_s22]]   ;;  %s13416_s22 = smov 48  }
  0x51   :  { %s13709_s9 = sld [smem:[%s14928_s0 + %s13413_s28]]   ;;  %s13417_s28 = smov 49  }
  0x53   :  { %14989 = sst [smem:[#allocation116_spill]] %s13694_s3 }
  0x54   :  { %14990 = sst [smem:[#allocation117_spill]] %s13699_s17 }
  0x55   :  { %s13714_s3 = sld [smem:[%s14928_s0 + %s13414_s7]]   ;;  %s13418_s7 = smov 50  }
  0x56   :  { %14991 = sst [smem:[#allocation118_spill]] %s13704_s30 }
  0x57   :  { %14992 = sst [smem:[#allocation119_spill]] %s13709_s9 }
  0x58   :  { %s13719_s17 = sld [smem:[%s14928_s0 + %s13415_s15]]  }
  0x59   :  { %s13724_s30 = sld [smem:[%s14928_s0 + %s13416_s22]]  }
  0x5a   :  { %s13729_s9 = sld [smem:[%s14928_s0 + %s13417_s28]]  }
  0x5b   :  { %14993 = sst [smem:[#allocation120_spill]] %s13714_s3 }
  0x5c   :  { %s13734_s3 = sld [smem:[%s14928_s0 + %s13418_s7]]  }
  0x5d   :  { %106 = vsyncpa [#allocation3], 0 }
  0x5e   :  { %107 = vsyncpa [#allocation6], 0 }
  0x5f   :  { %108 = vsyncpa [#allocation9], 0 }
  0x60   :  { %109 = vsyncpa [#allocation12], 0 }
  0x61   :  { %110 = vsyncpa [#allocation15], 0 }
  0x62   :  { %111 = vsyncpa [#allocation18], 0 }
  0x63   :  { %112 = vsyncpa [#allocation21], 0 }
  0x64   :  { %113 = vsyncpa [#allocation24], 0 }
  0x65   :  { %114 = vsyncpa [#allocation27], 0 }
  0x66   :  { %115 = vsyncpa [#allocation30], 0 }
  0x67   :  { %116 = vsyncpa [#allocation33], 0 }
  0x68   :  { %117 = vsyncpa [#allocation36], 0 }
  0x69   :  { %118 = vsyncpa [#allocation39], 0 }
  0x6a   :  { %119 = vsyncpa [#allocation42], 0 }
  0x6b   :  { %120 = vsyncpa [#allocation45], 0 }
  0x6c   :  { %121 = vsyncpa [#allocation48], 0 }
  0x6d   :  { %122 = vsyncpa [#allocation51], 0 }
  0x6e   :  { %123 = vsyncpa [#allocation54], 0 }
  0x6f   :  { %124 = vsyncpa [#allocation57], 0 }
  0x70   :  { %125 = vsyncpa [#allocation60], 0 }
  0x71   :  { %126 = vsyncpa [#allocation4], 0 }
  0x72   :  { %128 = vsyncpa [#allocation4 + $0x1], 0  ;;  %s13736_s0 = smov 0   ;;  %s13738_s15 = smov 0  }
  0x73   :  { %s13740_s16 = smov 0   ;;  %s13742_s18 = smov 0  }
  0x74 LB: > { %14994 = sst [smem:[#allocation121_spill]] %s13355_s0  ;;  %s13757_s22 = sadd.s32 4294967295, %s13367_s18   ;;  %s13367_s18 = sphi %s13742_s18, %s15050_s18   ;;  %s13363_s16 = sphi %s13740_s16, %s15052_s16   ;;  %s13359_s15 = sphi %s13738_s15, %s15054_s15   ;;  %s13355_s0 = sphi %s13736_s0, %s15053_s0  }
  0x75   : > { %14995 = sst [smem:[#allocation122_spill]] %s13363_s16  ;;  %s10657_s23 = sadd.s32 4294967294, %s13367_s18  }
  0x76   : > { %s13761_s26 = sadd.s32 1, %s13367_s18   ;;  %s1196_s28 = sadd.s32 1, %s13363_s16 }
  0x77   : > { %14996 = sst [smem:[#allocation123_spill]] %s13761_s26  ;;  %s1193_s1 = ssub.s32 %s13367_s18, %s13761_s26 }
  0x78   : > { %p1206_p0 = scmp.ne.s32.totalorder %s13363_s16, %s13359_s15  ;;  %p1194_p1 = scmp.eq.s32.totalorder %s1193_s1, 0 }
  0x79   : > { %p1207_p2 = scmp.eq.s32.totalorder %s13757_s22, 1  ;;  %p1212_p3 = scmp.ne.s32.totalorder %s13359_s15, %s13355_s0 }
  0x7a   : > { %p1213_p4 = scmp.eq.s32.totalorder %s10657_s23, 1  ;;  %p10658_p7 = scmp.ge.s32.totalorder %s13367_s18, 1 }
  0x7b   : > { %s13772_s2 = scalar_select %p1194_p1, %s13363_s16, %s1196_s28  }
  0x7c   : > { %p13774_p5 = por %p1207_p2, %p1206_p0  ;;  %p13778_p6 = por %p1213_p4, %p1212_p3 }
  0x7d   : > { %14997 = sst [smem:[#allocation124_spill]] %s13772_s2  ;;  %p1220_p8 = scmp.lt.s32.totalorder %s13367_s18, 3 }
  0x7e   : > { %s14998_s7 = scalar_select %p13774_p5, 1, 0 }
  0x7f   : > { %s14999_s10 = scalar_select %p13778_p6, 1, 0 }
  0x80   : > { %p13784_p9 = pnand %p10658_p7, %p1220_p8 }
  0x81   : > { %15000 = sst [smem:[#allocation125_spill]] %s14999_s10  ;;  %p11904_p10 = scmp.eq.s32.totalorder (!%p13784_p9), %s13757_s22, 0 }
  0x82   : > { %1224 = sbr.rel (%p13784_p9) target bundleno = 574 (0x23e), region = 12  ;;  %s13419_s23 = smov (!%p13784_p9), [#allocation5]  }
  0x83   : > { %s1244_s28 = sshll.u32 (!%p13784_p9), %s13419_s23, 4  ;;  %s13420_s1 = smov (!%p13784_p9), [#allocation8]   ;;  %s1245_s28 = int_to_ptr.vmem [resolvable:$true] %s1244_s28 }
  0x84   : > { %s1266_s2 = sshll.u32 (!%p13784_p9), %s13420_s1, 4  ;;  %s12301_s16 = scalar_lea.vmem (!%p13784_p9), %s1245_s28, 16  ;;  %s1267_s2 = int_to_ptr.vmem [resolvable:$true] %s1266_s2 }
  0x85   : > { %p12302_p11 = scmp.ne.s32.totalorder (!%p13784_p9), %s1245_s28, %s12301_s16  ;;  %s12307_s26 = scalar_lea.vmem (!%p13784_p9), %s1245_s28, 32 }
  0x86   : > { %p12308_p0 = scmp.lt.s32.totalorder (!%p13784_p9), %s1245_s28, %s1245_s28  ;;  %p12309_p1 = scmp.lt.s32.totalorder (!%p13784_p9), %s12307_s26, %s12301_s16 }
  0x87   : > { %p12303_p12 = pnand %p12302_p11, %p11904_p10 }
  0x88   : > { %p12310_p2 = por %p12309_p1, %p12308_p0 }
  0x89   : > { %p12304_p13 = pneg %p12303_p12 }
  0x8b   : > { %p12311_p3 = pnand %p12310_p2, %p12304_p13 }
  0x8d   : > { %12314 = shalt.err (!%p12311_p3)
}
  0x8e   : > { %s15002_s13 = sld [smem:[#allocation86_spill]]  ;;  %s12325_s23 = scalar_lea.vmem %s1267_s2, 16 }
  0x8f   : > { %p12326_p4 = scmp.ne.s32.totalorder %s1267_s2, %s12325_s23  ;;  %s12331_s1 = scalar_lea.vmem %s1267_s2, 32 }
  0x90   : > { %p12332_p11 = scmp.lt.s32.totalorder %s1267_s2, %s1267_s2  ;;  %p12333_p12 = scmp.lt.s32.totalorder %s12331_s1, %s12325_s23 }
  0x91   : > { %p12327_p7 = pnand %p12326_p4, %p11904_p10 }
  0x92   : > { %p12334_p6 = por %p12333_p12, %p12332_p11 }
  0x93   : > { %p12328_p8 = pneg %p12327_p7 }
  0x94   : > { %11745 = dma.hbm_to_vmem [thread:$0]  (%p11904_p10), %s15002_s13, 16, %s1245_s28, [#allocation6]  }
  0x95   : > { %p12335_p5 = pnand %p12334_p6, %p12328_p8 }
  0x97   : > { %12338 = shalt.err (!%p12335_p5)
}
  0x98   : > { %11749 = dma.hbm_to_vmem [thread:$0]  (%p11904_p10), %s13504_s21, 16, %s1267_s2, [#allocation9]  }
  0x99   : > { %s13421_s16 = smov [#allocation11]   ;;  %s13422_s28 = smov [#allocation14]  }
  0x9a   : > { %s1288_s26 = sshll.u32 %s13421_s16, 4  ;;  %s1319_s13 = sshll.u32 %s13422_s28, 4  ;;  %s1289_s26 = int_to_ptr.vmem [resolvable:$true] %s1288_s26  ;;  %s1320_s13 = int_to_ptr.vmem [resolvable:$true] %s1319_s13 }
  0x9b   : > { %s12349_s10 = scalar_lea.vmem %s1289_s26, 16  ;;  %s12355_s0 = scalar_lea.vmem %s1289_s26, 32 }
  0x9c   : > { %p12350_p13 = scmp.ne.s32.totalorder %s1289_s26, %s12349_s10  ;;  %p12356_p2 = scmp.lt.s32.totalorder %s1289_s26, %s1289_s26 }
  0x9d   : > { %p12357_p3 = scmp.lt.s32.totalorder %s12355_s0, %s12349_s10 }
  0x9e   : > { %p12351_p0 = pnand %p12350_p13, %p11904_p10 }
  0x9f   : > { %p12358_p6 = por %p12357_p3, %p12356_p2 }
  0xa0   : > { %p12352_p1 = pneg %p12351_p0 }
  0xa2   : > { %p12359_p5 = pnand %p12358_p6, %p12352_p1 }
  0xa4   : > { %12362 = shalt.err (!%p12359_p5)
}
  0xa5   : > { %11753 = dma.hbm_to_vmem [thread:$0]  (%p11904_p10), %s13514_s29, 16, %s1289_s26, [#allocation12]  }
  0xa6   : > { %s12373_s2 = scalar_lea.vmem %s1320_s13, 16  ;;  %s12379_s23 = scalar_lea.vmem %s1320_s13, 32 }
  0xa7   : > { %p12374_p4 = scmp.ne.s32.totalorder %s1320_s13, %s12373_s2  ;;  %p12380_p11 = scmp.lt.s32.totalorder %s1320_s13, %s1320_s13 }
  0xa8   : > { %p12381_p12 = scmp.lt.s32.totalorder %s12379_s23, %s12373_s2 }
  0xa9   : > { %p12375_p7 = pnand %p12374_p4, %p11904_p10 }
  0xaa   : > { %p12382_p13 = por %p12381_p12, %p12380_p11 }
  0xab   : > { %p12376_p8 = pneg %p12375_p7 }
  0xad   : > { %p12383_p0 = pnand %p12382_p13, %p12376_p8 }
  0xaf   : > { %12386 = shalt.err (!%p12383_p0)
}
  0xb0   : > { %11757 = dma.hbm_to_vmem [thread:$0]  (%p11904_p10), %s13539_s24, 16, %s1320_s13, [#allocation15]  }
  0xb1   : > { %s13423_s0 = smov [#allocation17]   ;;  %s13424_s1 = smov [#allocation20]  }
  0xb2   : > { %s1341_s10 = sshll.u32 %s13423_s0, 4  ;;  %s1362_s16 = sshll.u32 %s13424_s1, 4  ;;  %s1342_s10 = int_to_ptr.vmem [resolvable:$true] %s1341_s10  ;;  %s1363_s16 = int_to_ptr.vmem [resolvable:$true] %s1362_s16 }
  0xb3   : > { %s12397_s26 = scalar_lea.vmem %s1342_s10, 16  ;;  %s12403_s28 = scalar_lea.vmem %s1342_s10, 32 }
  0xb4   : > { %p12398_p1 = scmp.ne.s32.totalorder %s1342_s10, %s12397_s26  ;;  %p12404_p6 = scmp.lt.s32.totalorder %s1342_s10, %s1342_s10 }
  0xb5   : > { %p12405_p5 = scmp.lt.s32.totalorder %s12403_s28, %s12397_s26 }
  0xb6   : > { %p12399_p2 = pnand %p12398_p1, %p11904_p10 }
  0xb7   : > { %p12406_p4 = por %p12405_p5, %p12404_p6 }
  0xb8   : > { %p12400_p3 = pneg %p12399_p2 }
  0xba   : > { %p12407_p7 = pnand %p12406_p4, %p12400_p3 }
  0xbc   : > { %12410 = shalt.err (!%p12407_p7)
}
  0xbd   : > { %s15003_s6 = sld [smem:[#allocation94_spill]]  ;;  %s12421_s13 = scalar_lea.vmem %s1363_s16, 512 }
  0xbe   : > { %p12422_p8 = scmp.ne.s32.totalorder %s1363_s16, %s12421_s13  ;;  %p12428_p13 = scmp.lt.s32.totalorder %s1363_s16, %s1363_s16 }
  0xbf   : > { %p12429_p0 = scmp.lt.s32.totalorder %s12421_s13, %s12421_s13 }
  0xc0   : > { %p12423_p11 = pnand %p12422_p8, %p11904_p10 }
  0xc1   : > { %p12430_p1 = por %p12429_p0, %p12428_p13 }
  0xc2   : > { %p12424_p12 = pneg %p12423_p11 }
  0xc3   : > { %11761 = dma.hbm_to_vmem [thread:$0]  (%p11904_p10), %s15003_s6, 16, %s1342_s10, [#allocation18]  }
  0xc4   : > { %p12431_p2 = pnand %p12430_p1, %p12424_p12 }
  0xc6   : > { %12434 = shalt.err (!%p12431_p2)
}
  0xc7   : > { %s14943_s2 = smov 128   ;;  %s14945_s23 = smov 8  }
  0xc8   : > { %11765 = dma.hbm_to_vmem [thread:$0]  (%p11904_p10), %s13559_s20, 512, %s1363_s16, [#allocation21], %s14943_s2, %s14943_s2, %s14945_s23  }
  0xc9   : > { %s13427_s0 = smov [#allocation23]   ;;  %s13428_s1 = smov [#allocation26]  }
  0xca   : > { %s1390_s10 = sshll.u32 %s13427_s0, 4  ;;  %s1412_s26 = sshll.u32 %s13428_s1, 4  ;;  %s1391_s10 = int_to_ptr.vmem [resolvable:$true] %s1390_s10  ;;  %s1413_s26 = int_to_ptr.vmem [resolvable:$true] %s1412_s26 }
  0xcb   : > { %s12445_s28 = scalar_lea.vmem %s1391_s10, 16  ;;  %s12451_s13 = scalar_lea.vmem %s1391_s10, 32 }
  0xcc   : > { %p12446_p3 = scmp.ne.s32.totalorder %s1391_s10, %s12445_s28  ;;  %p12452_p4 = scmp.lt.s32.totalorder %s1391_s10, %s1391_s10 }
  0xcd   : > { %p12453_p7 = scmp.lt.s32.totalorder %s12451_s13, %s12445_s28 }
  0xce   : > { %p12447_p6 = pnand %p12446_p3, %p11904_p10 }
  0xcf   : > { %p12454_p8 = por %p12453_p7, %p12452_p4 }
  0xd0   : > { %p12448_p5 = pneg %p12447_p6 }
  0xd2   : > { %p12455_p11 = pnand %p12454_p8, %p12448_p5 }
  0xd4   : > { %12458 = shalt.err (!%p12455_p11)
}
  0xd5   : > { %11769 = dma.hbm_to_vmem [thread:$0]  (%p11904_p10), %s13574_s14, 16, %s1391_s10, [#allocation24]  }
  0xd6   : > { %s12469_s16 = scalar_lea.vmem %s1413_s26, 16  ;;  %s12475_s0 = scalar_lea.vmem %s1413_s26, 32 }
  0xd7   : > { %p12470_p12 = scmp.ne.s32.totalorder %s1413_s26, %s12469_s16  ;;  %p12476_p1 = scmp.lt.s32.totalorder %s1413_s26, %s1413_s26 }
  0xd8   : > { %p12477_p2 = scmp.lt.s32.totalorder %s12475_s0, %s12469_s16 }
  0xd9   : > { %p12471_p13 = pnand %p12470_p12, %p11904_p10 }
  0xda   : > { %p12478_p3 = por %p12477_p2, %p12476_p1 }
  0xdb   : > { %p12472_p0 = pneg %p12471_p13 }
  0xdd   : > { %p12479_p6 = pnand %p12478_p3, %p12472_p0 }
  0xdf   : > { %12482 = shalt.err (!%p12479_p6)
}
  0xe0   : > { %11773 = dma.hbm_to_vmem [thread:$0]  (%p11904_p10), %s13584_s27, 16, %s1413_s26, [#allocation27]  }
  0xe1   : > { %s13429_s1 = smov [#allocation29]   ;;  %s13430_s10 = smov [#allocation32]  }
  0xe2   : > { %s1435_s28 = sshll.u32 %s13429_s1, 4  ;;  %s1460_s13 = sshll.u32 %s13430_s10, 4  ;;  %s1436_s28 = int_to_ptr.vmem [resolvable:$true] %s1435_s28  ;;  %s1461_s13 = int_to_ptr.vmem [resolvable:$true] %s1460_s13 }
  0xe3   : > { %s12493_s2 = scalar_lea.vmem %s1436_s28, 512  ;;  %p12500_p8 = scmp.lt.s32.totalorder %s1436_s28, %s1436_s28 }
  0xe4   : > { %p12494_p5 = scmp.ne.s32.totalorder %s1436_s28, %s12493_s2  ;;  %p12501_p11 = scmp.lt.s32.totalorder %s12493_s2, %s12493_s2 }
  0xe6   : > { %p12495_p4 = pnand %p12494_p5, %p11904_p10  ;;  %p12502_p12 = por %p12501_p11, %p12500_p8 }
  0xe8   : > { %p12496_p7 = pneg %p12495_p4 }
  0xea   : > { %p12503_p13 = pnand %p12502_p12, %p12496_p7 }
  0xec   : > { %12506 = shalt.err (!%p12503_p13)
}
  0xed   : > { %s15004_s16 = smov 128   ;;  %s15005_s5 = sld [smem:[#allocation100_spill]] }
  0xee   : > { %s12517_s26 = scalar_lea.vmem %s1461_s13, 16  ;;  %s12523_s0 = scalar_lea.vmem %s1461_s13, 32 }
  0xef   : > { %p12518_p0 = scmp.ne.s32.totalorder %s1461_s13, %s12517_s26  ;;  %p12524_p3 = scmp.lt.s32.totalorder %s1461_s13, %s1461_s13 }
  0xf0   : > { %p12525_p6 = scmp.lt.s32.totalorder %s12523_s0, %s12517_s26 }
  0xf1   : > { %p12519_p1 = pnand %p12518_p0, %p11904_p10 }
  0xf2   : > { %p12526_p5 = por %p12525_p6, %p12524_p3 }
  0xf3   : > { %11777 = dma.hbm_to_vmem [thread:$0]  (%p11904_p10), %s15005_s5, 512, %s1436_s28, [#allocation30], %s15004_s16, %s15004_s16, %s14945_s23  }
  0xf4   : > { %p12520_p2 = pneg %p12519_p1 }
  0xf6   : > { %p12527_p4 = pnand %p12526_p5, %p12520_p2 }
  0xf8   : > { %12530 = shalt.err (!%p12527_p4)
}
  0xf9   : > { %s15006_s4 = sld [smem:[#allocation102_spill]]  ;;  %s13431_s2 = smov [#allocation35]  }
  0xfa   : > { %s1482_s1 = sshll.u32 %s13431_s2, 4  ;;  %s13432_s28 = smov [#allocation38]   ;;  %s1483_s1 = int_to_ptr.vmem [resolvable:$true] %s1482_s1 }
  0xfb   : > { %s1506_s10 = sshll.u32 %s13432_s28, 4  ;;  %s12541_s23 = scalar_lea.vmem %s1483_s1, 16  ;;  %s1507_s10 = int_to_ptr.vmem [resolvable:$true] %s1506_s10 }
  0xfc   : > { %p12542_p7 = scmp.ne.s32.totalorder %s1483_s1, %s12541_s23  ;;  %s12547_s5 = scalar_lea.vmem %s1483_s1, 32 }
  0xfd   : > { %p12548_p12 = scmp.lt.s32.totalorder %s1483_s1, %s1483_s1  ;;  %p12549_p13 = scmp.lt.s32.totalorder %s12547_s5, %s12541_s23 }
  0xfe   : > { %p12543_p8 = pnand %p12542_p7, %p11904_p10 }
  0xff   : > { %11781 = dma.hbm_to_vmem [thread:$0]  (%p11904_p10), %s15006_s4, 16, %s1461_s13, [#allocation33]  }
 0x100   : > { %p12544_p11 = pneg %p12543_p8  ;;  %p12550_p0 = por %p12549_p13, %p12548_p12 }
 0x102   : > { %p12551_p1 = pnand %p12550_p0, %p12544_p11 }
 0x104   : > { %12554 = shalt.err (!%p12551_p1)
}
 0x105   : > { %11785 = dma.hbm_to_vmem [thread:$0]  (%p11904_p10), %s13614_s12, 16, %s1483_s1, [#allocation36]  }
 0x106   : > { %s12565_s13 = scalar_lea.vmem %s1507_s10, 512  ;;  %p12572_p5 = scmp.lt.s32.totalorder %s1507_s10, %s1507_s10 }
 0x107   : > { %p12566_p2 = scmp.ne.s32.totalorder %s1507_s10, %s12565_s13  ;;  %p12573_p4 = scmp.lt.s32.totalorder %s12565_s13, %s12565_s13 }
 0x109   : > { %p12567_p3 = pnand %p12566_p2, %p11904_p10  ;;  %p12574_p7 = por %p12573_p4, %p12572_p5 }
 0x10b   : > { %p12568_p6 = pneg %p12567_p3 }
 0x10d   : > { %p12575_p8 = pnand %p12574_p7, %p12568_p6 }
 0x10f   : > { %12578 = shalt.err (!%p12575_p8)
}
 0x110   : > { %s15007_s5 = smov 8   ;;  %s13433_s23 = smov [#allocation41]  }
 0x111   : > { %11789 = dma.hbm_to_vmem [thread:$0]  (%p11904_p10), %s13629_s8, 512, %s1507_s10, [#allocation39], %s15004_s16, %s15004_s16, %s15007_s5  }
 0x112   : > { %s1533_s26 = sshll.u32 %s13433_s23, 4  ;;  %s13434_s0 = smov [#allocation44]   ;;  %s1534_s26 = int_to_ptr.vmem [resolvable:$true] %s1533_s26 }
 0x113   : > { %s1555_s2 = sshll.u32 %s13434_s0, 4  ;;  %s12589_s1 = scalar_lea.vmem %s1534_s26, 16  ;;  %s1556_s2 = int_to_ptr.vmem [resolvable:$true] %s1555_s2 }
 0x114   : > { %p12590_p11 = scmp.ne.s32.totalorder %s1534_s26, %s12589_s1  ;;  %s12595_s28 = scalar_lea.vmem %s1534_s26, 32 }
 0x115   : > { %p12596_p0 = scmp.lt.s32.totalorder %s1534_s26, %s1534_s26  ;;  %p12597_p1 = scmp.lt.s32.totalorder %s12595_s28, %s12589_s1 }
 0x116   : > { %p12591_p12 = pnand %p12590_p11, %p11904_p10 }
 0x117   : > { %p12598_p2 = por %p12597_p1, %p12596_p0 }
 0x118   : > { %p12592_p13 = pneg %p12591_p12 }
 0x11a   : > { %p12599_p3 = pnand %p12598_p2, %p12592_p13 }
 0x11c   : > { %12602 = shalt.err (!%p12599_p3)
}
 0x11d   : > { %11793 = dma.hbm_to_vmem [thread:$0]  (%p11904_p10), %s13639_s19, 16, %s1534_s26, [#allocation42]  }
 0x11e   : > { %s12613_s10 = scalar_lea.vmem %s1556_s2, 16  ;;  %s12619_s13 = scalar_lea.vmem %s1556_s2, 32 }
 0x11f   : > { %p12614_p6 = scmp.ne.s32.totalorder %s1556_s2, %s12613_s10  ;;  %p12620_p7 = scmp.lt.s32.totalorder %s1556_s2, %s1556_s2 }
 0x120   : > { %p12621_p8 = scmp.lt.s32.totalorder %s12619_s13, %s12613_s10 }
 0x121   : > { %p12615_p5 = pnand %p12614_p6, %p11904_p10 }
 0x122   : > { %p12622_p11 = por %p12621_p8, %p12620_p7 }
 0x123   : > { %p12616_p4 = pneg %p12615_p5 }
 0x125   : > { %p12623_p12 = pnand %p12622_p11, %p12616_p4 }
 0x127   : > { %12626 = shalt.err (!%p12623_p12)
}
 0x128   : > { %11797 = dma.hbm_to_vmem [thread:$0]  (%p11904_p10), %s13649_s25, 16, %s1556_s2, [#allocation45]  }
 0x129   : > { %s13435_s23 = smov [#allocation47]   ;;  %s13436_s26 = smov [#allocation50]  }
 0x12a   : > { %s1576_s0 = sshll.u32 %s13435_s23, 4  ;;  %s1604_s1 = sshll.u32 %s13436_s26, 4  ;;  %s1577_s0 = int_to_ptr.vmem [resolvable:$true] %s1576_s0  ;;  %s1605_s1 = int_to_ptr.vmem [resolvable:$true] %s1604_s1 }
 0x12b   : > { %s12637_s28 = scalar_lea.vmem %s1577_s0, 512  ;;  %p12644_p2 = scmp.lt.s32.totalorder %s1577_s0, %s1577_s0 }
 0x12c   : > { %p12638_p13 = scmp.ne.s32.totalorder %s1577_s0, %s12637_s28  ;;  %p12645_p3 = scmp.lt.s32.totalorder %s12637_s28, %s12637_s28 }
 0x12e   : > { %p12639_p0 = pnand %p12638_p13, %p11904_p10  ;;  %p12646_p6 = por %p12645_p3, %p12644_p2 }
 0x130   : > { %p12640_p1 = pneg %p12639_p0 }
 0x132   : > { %p12647_p5 = pnand %p12646_p6, %p12640_p1 }
 0x134   : > { %12650 = shalt.err (!%p12647_p5)
}
 0x135   : > { %s15008_s2 = sld [smem:[#allocation109_spill]]  ;;  %s12661_s10 = scalar_lea.vmem %s1605_s1, 16 }
 0x136   : > { %p12662_p4 = scmp.ne.s32.totalorder %s1605_s1, %s12661_s10  ;;  %s12667_s13 = scalar_lea.vmem %s1605_s1, 32 }
 0x137   : > { %p12668_p11 = scmp.lt.s32.totalorder %s1605_s1, %s1605_s1  ;;  %p12669_p12 = scmp.lt.s32.totalorder %s12667_s13, %s12661_s10 }
 0x138   : > { %p12663_p7 = pnand %p12662_p4, %p11904_p10 }
 0x139   : > { %p12670_p13 = por %p12669_p12, %p12668_p11 }
 0x13a   : > { %p12664_p8 = pneg %p12663_p7 }
 0x13b   : > { %11801 = dma.hbm_to_vmem [thread:$0]  (%p11904_p10), %s15008_s2, 512, %s1577_s0, [#allocation48], %s15004_s16, %s15004_s16, %s15007_s5  }
 0x13c   : > { %p12671_p0 = pnand %p12670_p13, %p12664_p8 }
 0x13e   : > { %12674 = shalt.err (!%p12671_p0)
}
 0x13f   : > { %s15009_s23 = sld [smem:[#allocation112_spill]]  ;;  %s13437_s26 = smov [#allocation53]  }
 0x140   : > { %s1626_s28 = sshll.u32 %s13437_s26, 4  ;;  %s13438_s0 = smov [#allocation56]   ;;  %s1627_s28 = int_to_ptr.vmem [resolvable:$true] %s1626_s28 }
 0x141   : > { %s1649_s2 = sshll.u32 %s13438_s0, 4  ;;  %s12685_s4 = scalar_lea.vmem %s1627_s28, 16  ;;  %s1650_s2 = int_to_ptr.vmem [resolvable:$true] %s1649_s2 }
 0x142   : > { %p12686_p1 = scmp.ne.s32.totalorder %s1627_s28, %s12685_s4  ;;  %s12691_s6 = scalar_lea.vmem %s1627_s28, 32 }
 0x143   : > { %p12692_p6 = scmp.lt.s32.totalorder %s1627_s28, %s1627_s28  ;;  %p12693_p5 = scmp.lt.s32.totalorder %s12691_s6, %s12685_s4 }
 0x144   : > { %p12687_p2 = pnand %p12686_p1, %p11904_p10 }
 0x145   : > { %11805 = dma.hbm_to_vmem [thread:$0]  (%p11904_p10), %s15009_s23, 16, %s1605_s1, [#allocation51]  }
 0x146   : > { %p12688_p3 = pneg %p12687_p2  ;;  %p12694_p4 = por %p12693_p5, %p12692_p6 }
 0x148   : > { %p12695_p7 = pnand %p12694_p4, %p12688_p3 }
 0x14a   : > { %12698 = shalt.err (!%p12695_p7)
}
 0x14b   : > { %s15010_s10 = sld [smem:[#allocation114_spill]]  ;;  %s12709_s1 = scalar_lea.vmem %s1650_s2, 512 }
 0x14c   : > { %p12710_p8 = scmp.ne.s32.totalorder %s1650_s2, %s12709_s1  ;;  %p12716_p13 = scmp.lt.s32.totalorder %s1650_s2, %s1650_s2 }
 0x14d   : > { %p12717_p0 = scmp.lt.s32.totalorder %s12709_s1, %s12709_s1 }
 0x14e   : > { %p12711_p11 = pnand %p12710_p8, %p11904_p10 }
 0x14f   : > { %p12718_p1 = por %p12717_p0, %p12716_p13 }
 0x150   : > { %p12712_p12 = pneg %p12711_p11 }
 0x151   : > { %11809 = dma.hbm_to_vmem [thread:$0]  (%p11904_p10), %s15010_s10, 16, %s1627_s28, [#allocation54]  }
 0x152   : > { %p12719_p2 = pnand %p12718_p1, %p12712_p12 }
 0x154   : > { %12722 = shalt.err (!%p12719_p2)
}
 0x155   : > { %s15011_s6 = sld [smem:[#allocation116_spill]]  ;;  %s13439_s4 = smov [#allocation59]  }
 0x156   : > { %s1674_s13 = sshll.u32 %s13439_s4, 4  ;;  %s1675_s13 = int_to_ptr.vmem [resolvable:$true] %s1674_s13 }
 0x157   : > { %s12733_s23 = scalar_lea.vmem %s1675_s13, 16  ;;  %s12739_s26 = scalar_lea.vmem %s1675_s13, 32 }
 0x158   : > { %p12734_p3 = scmp.ne.s32.totalorder %s1675_s13, %s12733_s23  ;;  %p12740_p4 = scmp.lt.s32.totalorder %s1675_s13, %s1675_s13 }
 0x159   : > { %p12741_p7 = scmp.lt.s32.totalorder %s12739_s26, %s12733_s23 }
 0x15a   : > { %p12735_p6 = pnand %p12734_p3, %p11904_p10 }
 0x15b   : > { %11813 = dma.hbm_to_vmem [thread:$0]  (%p11904_p10), %s15011_s6, 512, %s1650_s2, [#allocation57], %s15004_s16, %s15004_s16, %s15007_s5  }
 0x15c   : > { %p12736_p5 = pneg %p12735_p6  ;;  %p12742_p8 = por %p12741_p7, %p12740_p4 }
 0x15e   : > { %p12743_p11 = pnand %p12742_p8, %p12736_p5 }
 0x160   : > { %12746 = shalt.err (!%p12743_p11)
}
 0x161   : > { %s15012_s28 = sld [smem:[#allocation118_spill]]  ;;  %s13440_s0 = smov [#allocation2]  }
 0x162   : > { %s1233_s2 = sshll.u32 %s13440_s0, 4  ;;  %s13441_s10 = smov [#allocation7]   ;;  %s1234_s2 = int_to_ptr.vmem [resolvable:$true] %s1233_s2 }
 0x163   : > { %s1255_s1 = sshll.u32 %s13441_s10, 4  ;;  %s12757_s6 = scalar_lea.vmem %s1234_s2, 16  ;;  %s1256_s1 = int_to_ptr.vmem [resolvable:$true] %s1255_s1 }
 0x164   : > { %p12758_p12 = scmp.ne.s32.totalorder %s1234_s2, %s12757_s6  ;;  %s12763_s4 = scalar_lea.vmem %s1234_s2, 32 }
 0x165   : > { %p12764_p1 = scmp.lt.s32.totalorder %s1234_s2, %s1234_s2  ;;  %p12765_p2 = scmp.lt.s32.totalorder %s12763_s4, %s12757_s6 }
 0x166   : > { %p12759_p13 = pnand %p12758_p12, %p11904_p10 }
 0x167   : > { %11817 = dma.hbm_to_vmem [thread:$0]  (%p11904_p10), %s15012_s28, 16, %s1675_s13, [#allocation60]  }
 0x168   : > { %p12760_p0 = pneg %p12759_p13  ;;  %p12766_p3 = por %p12765_p2, %p12764_p1 }
 0x16a   : > { %p12767_p6 = pnand %p12766_p3, %p12760_p0 }
 0x16c   : > { %12770 = shalt.err (!%p12767_p6)
}
 0x16d   : > { %s15013_s23 = sld [smem:[#allocation85_spill]]  ;;  %s12781_s13 = scalar_lea.vmem %s1256_s1, 16 }
 0x16e   : > { %p12782_p5 = scmp.ne.s32.totalorder %s1256_s1, %s12781_s13  ;;  %s12787_s26 = scalar_lea.vmem %s1256_s1, 32 }
 0x16f   : > { %p12788_p8 = scmp.lt.s32.totalorder %s1256_s1, %s1256_s1  ;;  %p12789_p11 = scmp.lt.s32.totalorder %s12787_s26, %s12781_s13 }
 0x170   : > { %p12783_p4 = pnand %p12782_p5, %p11904_p10 }
 0x171   : > { %p12790_p12 = por %p12789_p11, %p12788_p8 }
 0x172   : > { %p12784_p7 = pneg %p12783_p4 }
 0x173   : > { %11743 = dma.hbm_to_vmem [thread:$0]  (%p11904_p10), %s15013_s23, 16, %s1234_s2, [#allocation3]  }
 0x174   : > { %p12791_p13 = pnand %p12790_p12, %p12784_p7 }
 0x176   : > { %12794 = shalt.err (!%p12791_p13)
}
 0x177   : > { %s15014_s28 = sld [smem:[#allocation87_spill]]  ;;  %s13442_s0 = smov [#allocation10]  }
 0x178   : > { %s1277_s10 = sshll.u32 %s13442_s0, 4  ;;  %s13443_s2 = smov [#allocation13]   ;;  %s1278_s10 = int_to_ptr.vmem [resolvable:$true] %s1277_s10 }
 0x179   : > { %s1299_s6 = sshll.u32 %s13443_s2, 4  ;;  %s12805_s4 = scalar_lea.vmem %s1278_s10, 16  ;;  %s1300_s6 = int_to_ptr.vmem [resolvable:$true] %s1299_s6 }
 0x17a   : > { %p12806_p0 = scmp.ne.s32.totalorder %s1278_s10, %s12805_s4  ;;  %s12811_s23 = scalar_lea.vmem %s1278_s10, 32 }
 0x17b   : > { %p12812_p3 = scmp.lt.s32.totalorder %s1278_s10, %s1278_s10  ;;  %p12813_p6 = scmp.lt.s32.totalorder %s12811_s23, %s12805_s4 }
 0x17c   : > { %p12807_p1 = pnand %p12806_p0, %p11904_p10 }
 0x17d   : > { %11747 = dma.hbm_to_vmem [thread:$0]  (%p11904_p10), %s15014_s28, 16, %s1256_s1, [#allocation6]  }
 0x17e   : > { %p12808_p2 = pneg %p12807_p1  ;;  %p12814_p5 = por %p12813_p6, %p12812_p3 }
 0x180   : > { %p12815_p4 = pnand %p12814_p5, %p12808_p2 }
 0x182   : > { %12818 = shalt.err (!%p12815_p4)
}
 0x183   : > { %s15015_s13 = sld [smem:[#allocation88_spill]]  ;;  %s12829_s1 = scalar_lea.vmem %s1300_s6, 16 }
 0x184   : > { %p12830_p7 = scmp.ne.s32.totalorder %s1300_s6, %s12829_s1  ;;  %s12835_s26 = scalar_lea.vmem %s1300_s6, 32 }
 0x185   : > { %p12836_p12 = scmp.lt.s32.totalorder %s1300_s6, %s1300_s6  ;;  %p12837_p13 = scmp.lt.s32.totalorder %s12835_s26, %s12829_s1 }
 0x186   : > { %p12831_p8 = pnand %p12830_p7, %p11904_p10 }
 0x187   : > { %p12838_p0 = por %p12837_p13, %p12836_p12 }
 0x188   : > { %p12832_p11 = pneg %p12831_p8 }
 0x189   : > { %11751 = dma.hbm_to_vmem [thread:$0]  (%p11904_p10), %s15015_s13, 16, %s1278_s10, [#allocation9]  }
 0x18a   : > { %p12839_p1 = pnand %p12838_p0, %p12832_p11 }
 0x18c   : > { %12842 = shalt.err (!%p12839_p1)
}
 0x18d   : > { %s15016_s28 = sld [smem:[#allocation89_spill]]  ;;  %s13444_s0 = smov [#allocation16]  }
 0x18e   : > { %s1330_s2 = sshll.u32 %s13444_s0, 4  ;;  %s13445_s10 = smov [#allocation19]   ;;  %s1331_s2 = int_to_ptr.vmem [resolvable:$true] %s1330_s2 }
 0x18f   : > { %s1352_s4 = sshll.u32 %s13445_s10, 4  ;;  %s12853_s23 = scalar_lea.vmem %s1331_s2, 16  ;;  %s1353_s4 = int_to_ptr.vmem [resolvable:$true] %s1352_s4 }
 0x190   : > { %p12854_p2 = scmp.ne.s32.totalorder %s1331_s2, %s12853_s23  ;;  %s12859_s13 = scalar_lea.vmem %s1331_s2, 32 }
 0x191   : > { %p12860_p5 = scmp.lt.s32.totalorder %s1331_s2, %s1331_s2  ;;  %p12861_p4 = scmp.lt.s32.totalorder %s12859_s13, %s12853_s23 }
 0x192   : > { %p12855_p3 = pnand %p12854_p2, %p11904_p10 }
 0x193   : > { %11755 = dma.hbm_to_vmem [thread:$0]  (%p11904_p10), %s15016_s28, 16, %s1300_s6, [#allocation12]  }
 0x194   : > { %p12856_p6 = pneg %p12855_p3  ;;  %p12862_p7 = por %p12861_p4, %p12860_p5 }
 0x196   : > { %p12863_p8 = pnand %p12862_p7, %p12856_p6 }
 0x198   : > { %12866 = shalt.err (!%p12863_p8)
}
 0x199   : > { %s15017_s1 = sld [smem:[#allocation93_spill]]  ;;  %s12877_s6 = scalar_lea.vmem %s1353_s4, 16 }
 0x19a   : > { %p12878_p11 = scmp.ne.s32.totalorder %s1353_s4, %s12877_s6  ;;  %s12883_s26 = scalar_lea.vmem %s1353_s4, 32 }
 0x19b   : > { %p12884_p0 = scmp.lt.s32.totalorder %s1353_s4, %s1353_s4  ;;  %p12885_p1 = scmp.lt.s32.totalorder %s12883_s26, %s12877_s6 }
 0x19c   : > { %p12879_p12 = pnand %p12878_p11, %p11904_p10 }
 0x19d   : > { %p12886_p2 = por %p12885_p1, %p12884_p0 }
 0x19e   : > { %p12880_p13 = pneg %p12879_p12 }
 0x19f   : > { %11759 = dma.hbm_to_vmem [thread:$0]  (%p11904_p10), %s15017_s1, 16, %s1331_s2, [#allocation15]  }
 0x1a0   : > { %p12887_p3 = pnand %p12886_p2, %p12880_p13 }
 0x1a2   : > { %12890 = shalt.err (!%p12887_p3)
}
 0x1a3   : > { %s15018_s28 = sld [smem:[#allocation95_spill]]  ;;  %s13446_s0 = smov [#allocation22]  }
 0x1a4   : > { %s1379_s10 = sshll.u32 %s13446_s0, 4  ;;  %s13447_s2 = smov [#allocation25]   ;;  %s1380_s10 = int_to_ptr.vmem [resolvable:$true] %s1379_s10 }
 0x1a5   : > { %s1401_s23 = sshll.u32 %s13447_s2, 4  ;;  %s12901_s13 = scalar_lea.vmem %s1380_s10, 16  ;;  %s1402_s23 = int_to_ptr.vmem [resolvable:$true] %s1401_s23 }
 0x1a6   : > { %p12902_p6 = scmp.ne.s32.totalorder %s1380_s10, %s12901_s13  ;;  %s12907_s1 = scalar_lea.vmem %s1380_s10, 32 }
 0x1a7   : > { %p12908_p7 = scmp.lt.s32.totalorder %s1380_s10, %s1380_s10  ;;  %p12909_p8 = scmp.lt.s32.totalorder %s12907_s1, %s12901_s13 }
 0x1a8   : > { %p12903_p5 = pnand %p12902_p6, %p11904_p10 }
 0x1a9   : > { %11763 = dma.hbm_to_vmem [thread:$0]  (%p11904_p10), %s15018_s28, 16, %s1353_s4, [#allocation18]  }
 0x1aa   : > { %p12904_p4 = pneg %p12903_p5  ;;  %p12910_p11 = por %p12909_p8, %p12908_p7 }
 0x1ac   : > { %p12911_p12 = pnand %p12910_p11, %p12904_p4 }
 0x1ae   : > { %12914 = shalt.err (!%p12911_p12)
}
 0x1af   : > { %s15019_s6 = sld [smem:[#allocation97_spill]]  ;;  %s12925_s4 = scalar_lea.vmem %s1402_s23, 16 }
 0x1b0   : > { %p12926_p13 = scmp.ne.s32.totalorder %s1402_s23, %s12925_s4  ;;  %s12931_s26 = scalar_lea.vmem %s1402_s23, 32 }
 0x1b1   : > { %p12932_p2 = scmp.lt.s32.totalorder %s1402_s23, %s1402_s23  ;;  %p12933_p3 = scmp.lt.s32.totalorder %s12931_s26, %s12925_s4 }
 0x1b2   : > { %p12927_p0 = pnand %p12926_p13, %p11904_p10 }
 0x1b3   : > { %p12934_p6 = por %p12933_p3, %p12932_p2 }
 0x1b4   : > { %p12928_p1 = pneg %p12927_p0 }
 0x1b5   : > { %11767 = dma.hbm_to_vmem [thread:$0]  (%p11904_p10), %s15019_s6, 16, %s1380_s10, [#allocation21]  }
 0x1b6   : > { %p12935_p5 = pnand %p12934_p6, %p12928_p1 }
 0x1b8   : > { %12938 = shalt.err (!%p12935_p5)
}
 0x1b9   : > { %s15020_s28 = sld [smem:[#allocation98_spill]]  ;;  %s13448_s0 = smov [#allocation28]  }
 0x1ba   : > { %s1422_s2 = sshll.u32 %s13448_s0, 4  ;;  %s13449_s10 = smov [#allocation31]   ;;  %s1423_s2 = int_to_ptr.vmem [resolvable:$true] %s1422_s2 }
 0x1bb   : > { %s1449_s13 = sshll.u32 %s13449_s10, 4  ;;  %s12949_s1 = scalar_lea.vmem %s1423_s2, 512  ;;  %s1450_s13 = int_to_ptr.vmem [resolvable:$true] %s1449_s13 }
 0x1bc   : > { %p12950_p4 = scmp.ne.s32.totalorder %s1423_s2, %s12949_s1  ;;  %p12956_p11 = scmp.lt.s32.totalorder %s1423_s2, %s1423_s2 }
 0x1bd   : > { %p12957_p12 = scmp.lt.s32.totalorder %s12949_s1, %s12949_s1 }
 0x1be   : > { %p12951_p7 = pnand %p12950_p4, %p11904_p10 }
 0x1bf   : > { %11771 = dma.hbm_to_vmem [thread:$0]  (%p11904_p10), %s15020_s28, 16, %s1402_s23, [#allocation24]  }
 0x1c0   : > { %p12952_p8 = pneg %p12951_p7  ;;  %p12958_p13 = por %p12957_p12, %p12956_p11 }
 0x1c2   : > { %p12959_p0 = pnand %p12958_p13, %p12952_p8 }
 0x1c4   : > { %12962 = shalt.err (!%p12959_p0)
}
 0x1c5   : > { %s15021_s23 = sld [smem:[#allocation99_spill]]  ;;  %s12973_s6 = scalar_lea.vmem %s1450_s13, 16 }
 0x1c6   : > { %p12974_p1 = scmp.ne.s32.totalorder %s1450_s13, %s12973_s6  ;;  %s12979_s4 = scalar_lea.vmem %s1450_s13, 32 }
 0x1c7   : > { %p12980_p6 = scmp.lt.s32.totalorder %s1450_s13, %s1450_s13  ;;  %p12981_p5 = scmp.lt.s32.totalorder %s12979_s4, %s12973_s6 }
 0x1c8   : > { %p12975_p2 = pnand %p12974_p1, %p11904_p10 }
 0x1c9   : > { %p12982_p4 = por %p12981_p5, %p12980_p6 }
 0x1ca   : > { %p12976_p3 = pneg %p12975_p2 }
 0x1cb   : > { %11775 = dma.hbm_to_vmem [thread:$0]  (%p11904_p10), %s15021_s23, 512, %s1423_s2, [#allocation27], %s15004_s16, %s15004_s16, %s15007_s5  }
 0x1cc   : > { %p12983_p7 = pnand %p12982_p4, %p12976_p3 }
 0x1ce   : > { %12986 = shalt.err (!%p12983_p7)
}
 0x1cf   : > { %s15022_s26 = sld [smem:[#allocation101_spill]]  ;;  %s13450_s28 = smov [#allocation34]  }
 0x1d0   : > { %s1471_s0 = sshll.u32 %s13450_s28, 4  ;;  %s13451_s2 = smov [#allocation37]   ;;  %s1472_s0 = int_to_ptr.vmem [resolvable:$true] %s1471_s0 }
 0x1d1   : > { %s1493_s10 = sshll.u32 %s13451_s2, 4  ;;  %s12997_s1 = scalar_lea.vmem %s1472_s0, 16  ;;  %s1494_s10 = int_to_ptr.vmem [resolvable:$true] %s1493_s10 }
 0x1d2   : > { %p12998_p8 = scmp.ne.s32.totalorder %s1472_s0, %s12997_s1  ;;  %s13003_s23 = scalar_lea.vmem %s1472_s0, 32 }
 0x1d3   : > { %p13004_p13 = scmp.lt.s32.totalorder %s1472_s0, %s1472_s0  ;;  %p13005_p0 = scmp.lt.s32.totalorder %s13003_s23, %s12997_s1 }
 0x1d4   : > { %p12999_p11 = pnand %p12998_p8, %p11904_p10 }
 0x1d5   : > { %11779 = dma.hbm_to_vmem [thread:$0]  (%p11904_p10), %s15022_s26, 16, %s1450_s13, [#allocation30]  }
 0x1d6   : > { %p13000_p12 = pneg %p12999_p11  ;;  %p13006_p1 = por %p13005_p0, %p13004_p13 }
 0x1d8   : > { %p13007_p2 = pnand %p13006_p1, %p13000_p12 }
 0x1da   : > { %13010 = shalt.err (!%p13007_p2)
}
 0x1db   : > { %s15023_s6 = sld [smem:[#allocation103_spill]]  ;;  %s13021_s13 = scalar_lea.vmem %s1494_s10, 16 }
 0x1dc   : > { %p13022_p3 = scmp.ne.s32.totalorder %s1494_s10, %s13021_s13  ;;  %s13027_s4 = scalar_lea.vmem %s1494_s10, 32 }
 0x1dd   : > { %p13028_p4 = scmp.lt.s32.totalorder %s1494_s10, %s1494_s10  ;;  %p13029_p7 = scmp.lt.s32.totalorder %s13027_s4, %s13021_s13 }
 0x1de   : > { %p13023_p6 = pnand %p13022_p3, %p11904_p10 }
 0x1df   : > { %p13030_p8 = por %p13029_p7, %p13028_p4 }
 0x1e0   : > { %p13024_p5 = pneg %p13023_p6 }
 0x1e1   : > { %11783 = dma.hbm_to_vmem [thread:$0]  (%p11904_p10), %s15023_s6, 16, %s1472_s0, [#allocation33]  }
 0x1e2   : > { %p13031_p11 = pnand %p13030_p8, %p13024_p5 }
 0x1e4   : > { %13034 = shalt.err (!%p13031_p11)
}
 0x1e5   : > { %s15024_s26 = sld [smem:[#allocation104_spill]]  ;;  %s13452_s28 = smov [#allocation40]  }
 0x1e6   : > { %s1519_s2 = sshll.u32 %s13452_s28, 4  ;;  %s13453_s0 = smov [#allocation43]   ;;  %s1520_s2 = int_to_ptr.vmem [resolvable:$true] %s1519_s2 }
 0x1e7   : > { %s1544_s1 = sshll.u32 %s13453_s0, 4  ;;  %s13045_s23 = scalar_lea.vmem %s1520_s2, 512  ;;  %s1545_s1 = int_to_ptr.vmem [resolvable:$true] %s1544_s1 }
 0x1e8   : > { %p13046_p12 = scmp.ne.s32.totalorder %s1520_s2, %s13045_s23  ;;  %p13052_p1 = scmp.lt.s32.totalorder %s1520_s2, %s1520_s2 }
 0x1e9   : > { %p13053_p2 = scmp.lt.s32.totalorder %s13045_s23, %s13045_s23 }
 0x1ea   : > { %p13047_p13 = pnand %p13046_p12, %p11904_p10 }
 0x1eb   : > { %11787 = dma.hbm_to_vmem [thread:$0]  (%p11904_p10), %s15024_s26, 16, %s1494_s10, [#allocation36]  }
 0x1ec   : > { %p13048_p0 = pneg %p13047_p13  ;;  %p13054_p3 = por %p13053_p2, %p13052_p1 }
 0x1ee   : > { %p13055_p6 = pnand %p13054_p3, %p13048_p0 }
 0x1f0   : > { %13058 = shalt.err (!%p13055_p6)
}
 0x1f1   : > { %s15025_s10 = sld [smem:[#allocation106_spill]]  ;;  %s13069_s6 = scalar_lea.vmem %s1545_s1, 16 }
 0x1f2   : > { %p13070_p5 = scmp.ne.s32.totalorder %s1545_s1, %s13069_s6  ;;  %s13075_s13 = scalar_lea.vmem %s1545_s1, 32 }
 0x1f3   : > { %p13076_p8 = scmp.lt.s32.totalorder %s1545_s1, %s1545_s1  ;;  %p13077_p11 = scmp.lt.s32.totalorder %s13075_s13, %s13069_s6 }
 0x1f4   : > { %p13071_p4 = pnand %p13070_p5, %p11904_p10 }
 0x1f5   : > { %p13078_p12 = por %p13077_p11, %p13076_p8 }
 0x1f6   : > { %p13072_p7 = pneg %p13071_p4 }
 0x1f7   : > { %11791 = dma.hbm_to_vmem [thread:$0]  (%p11904_p10), %s15025_s10, 512, %s1520_s2, [#allocation39], %s15004_s16, %s15004_s16, %s15007_s5  }
 0x1f8   : > { %p13079_p13 = pnand %p13078_p12, %p13072_p7 }
 0x1fa   : > { %13082 = shalt.err (!%p13079_p13)
}
 0x1fb   : > { %s15026_s4 = sld [smem:[#allocation107_spill]]  ;;  %s13454_s26 = smov [#allocation46]  }
 0x1fc   : > { %s1566_s28 = sshll.u32 %s13454_s26, 4  ;;  %s13455_s2 = smov [#allocation49]   ;;  %s1567_s28 = int_to_ptr.vmem [resolvable:$true] %s1566_s28 }
 0x1fd   : > { %s1593_s0 = sshll.u32 %s13455_s2, 4  ;;  %s13093_s23 = scalar_lea.vmem %s1567_s28, 16  ;;  %s1594_s0 = int_to_ptr.vmem [resolvable:$true] %s1593_s0 }
 0x1fe   : > { %p13094_p0 = scmp.ne.s32.totalorder %s1567_s28, %s13093_s23  ;;  %s13099_s10 = scalar_lea.vmem %s1567_s28, 32 }
 0x1ff   : > { %p13100_p3 = scmp.lt.s32.totalorder %s1567_s28, %s1567_s28  ;;  %p13101_p6 = scmp.lt.s32.totalorder %s13099_s10, %s13093_s23 }
 0x200   : > { %p13095_p1 = pnand %p13094_p0, %p11904_p10 }
 0x201   : > { %11795 = dma.hbm_to_vmem [thread:$0]  (%p11904_p10), %s15026_s4, 16, %s1545_s1, [#allocation42]  }
 0x202   : > { %p13096_p2 = pneg %p13095_p1  ;;  %p13102_p5 = por %p13101_p6, %p13100_p3 }
 0x204   : > { %p13103_p4 = pnand %p13102_p5, %p13096_p2 }
 0x206   : > { %13106 = shalt.err (!%p13103_p4)
}
 0x207   : > { %s15027_s6 = sld [smem:[#allocation108_spill]]  ;;  %s13117_s1 = scalar_lea.vmem %s1594_s0, 16 }
 0x208   : > { %p13118_p7 = scmp.ne.s32.totalorder %s1594_s0, %s13117_s1  ;;  %s13123_s13 = scalar_lea.vmem %s1594_s0, 32 }
 0x209   : > { %p13124_p12 = scmp.lt.s32.totalorder %s1594_s0, %s1594_s0  ;;  %p13125_p13 = scmp.lt.s32.totalorder %s13123_s13, %s13117_s1 }
 0x20a   : > { %p13119_p8 = pnand %p13118_p7, %p11904_p10 }
 0x20b   : > { %p13126_p0 = por %p13125_p13, %p13124_p12 }
 0x20c   : > { %p13120_p11 = pneg %p13119_p8 }
 0x20d   : > { %11799 = dma.hbm_to_vmem [thread:$0]  (%p11904_p10), %s15027_s6, 16, %s1567_s28, [#allocation45]  }
 0x20e   : > { %p13127_p1 = pnand %p13126_p0, %p13120_p11 }
 0x210   : > { %13130 = shalt.err (!%p13127_p1)
}
 0x211   : > { %s15028_s4 = sld [smem:[#allocation111_spill]]  ;;  %s13456_s26 = smov [#allocation52]  }
 0x212   : > { %s1615_s2 = sshll.u32 %s13456_s26, 4  ;;  %s13457_s28 = smov [#allocation55]   ;;  %s1616_s2 = int_to_ptr.vmem [resolvable:$true] %s1615_s2 }
 0x213   : > { %s1636_s23 = sshll.u32 %s13457_s28, 4  ;;  %s13141_s10 = scalar_lea.vmem %s1616_s2, 16  ;;  %s1637_s23 = int_to_ptr.vmem [resolvable:$true] %s1636_s23 }
 0x214   : > { %p13142_p2 = scmp.ne.s32.totalorder %s1616_s2, %s13141_s10  ;;  %s13147_s6 = scalar_lea.vmem %s1616_s2, 32 }
 0x215   : > { %p13148_p5 = scmp.lt.s32.totalorder %s1616_s2, %s1616_s2  ;;  %p13149_p4 = scmp.lt.s32.totalorder %s13147_s6, %s13141_s10 }
 0x216   : > { %p13143_p3 = pnand %p13142_p2, %p11904_p10 }
 0x217   : > { %11803 = dma.hbm_to_vmem [thread:$0]  (%p11904_p10), %s15028_s4, 16, %s1594_s0, [#allocation48]  }
 0x218   : > { %p13144_p6 = pneg %p13143_p3  ;;  %p13150_p7 = por %p13149_p4, %p13148_p5 }
 0x21a   : > { %p13151_p8 = pnand %p13150_p7, %p13144_p6 }
 0x21c   : > { %13154 = shalt.err (!%p13151_p8)
}
 0x21d   : > { %s15029_s1 = sld [smem:[#allocation113_spill]]  ;;  %s13165_s0 = scalar_lea.vmem %s1637_s23, 512 }
 0x21e   : > { %p13166_p11 = scmp.ne.s32.totalorder %s1637_s23, %s13165_s0  ;;  %p13172_p0 = scmp.lt.s32.totalorder %s1637_s23, %s1637_s23 }
 0x21f   : > { %p13173_p1 = scmp.lt.s32.totalorder %s13165_s0, %s13165_s0 }
 0x220   : > { %p13167_p12 = pnand %p13166_p11, %p11904_p10 }
 0x221   : > { %p13174_p2 = por %p13173_p1, %p13172_p0 }
 0x222   : > { %p13168_p13 = pneg %p13167_p12 }
 0x223   : > { %11807 = dma.hbm_to_vmem [thread:$0]  (%p11904_p10), %s15029_s1, 16, %s1616_s2, [#allocation51]  }
 0x224   : > { %p13175_p3 = pnand %p13174_p2, %p13168_p13 }
 0x226   : > { %13178 = shalt.err (!%p13175_p3)
}
 0x227   : > { %s15030_s13 = sld [smem:[#allocation115_spill]]  ;;  %s13458_s4 = smov [#allocation58]  }
 0x228   : > { %s1663_s26 = sshll.u32 %s13458_s4, 4  ;;  %s13459_s2 = smov [#allocation61]   ;;  %s1664_s26 = int_to_ptr.vmem [resolvable:$true] %s1663_s26 }
 0x229   : > { %s1691_s28 = sshll.u32 %s13459_s2, 4  ;;  %s13189_s10 = scalar_lea.vmem %s1664_s26, 16  ;;  %s1692_s28 = int_to_ptr.vmem [resolvable:$true] %s1691_s28 }
 0x22a   : > { %p13190_p6 = scmp.ne.s32.totalorder %s1664_s26, %s13189_s10  ;;  %s13195_s6 = scalar_lea.vmem %s1664_s26, 32 }
 0x22b   : > { %p13196_p7 = scmp.lt.s32.totalorder %s1664_s26, %s1664_s26  ;;  %p13197_p8 = scmp.lt.s32.totalorder %s13195_s6, %s13189_s10 }
 0x22c   : > { %p13191_p5 = pnand %p13190_p6, %p11904_p10 }
 0x22d   : > { %11811 = dma.hbm_to_vmem [thread:$0]  (%p11904_p10), %s15030_s13, 512, %s1637_s23, [#allocation54], %s15004_s16, %s15004_s16, %s15007_s5  }
 0x22e   : > { %p13192_p4 = pneg %p13191_p5  ;;  %p13198_p11 = por %p13197_p8, %p13196_p7 }
 0x230   : > { %p13199_p12 = pnand %p13198_p11, %p13192_p4 }
 0x232   : > { %13202 = shalt.err (!%p13199_p12)
}
 0x233   : > { %s15031_s1 = sld [smem:[#allocation117_spill]]  ;;  %s13213_s16 = scalar_lea.vmem %s1692_s28, 128 }
 0x234   : > { %p13214_p13 = scmp.ne.s32.totalorder %s1692_s28, %s13213_s16  ;;  %p13220_p2 = scmp.lt.s32.totalorder %s1692_s28, %s1692_s28 }
 0x235   : > { %p13221_p3 = scmp.lt.s32.totalorder %s13213_s16, %s13213_s16 }
 0x236   : > { %p13215_p0 = pnand %p13214_p13, %p11904_p10 }
 0x237   : > { %p13222_p6 = por %p13221_p3, %p13220_p2 }
 0x238   : > { %p13216_p1 = pneg %p13215_p0 }
 0x239   : > { %11815 = dma.hbm_to_vmem [thread:$0]  (%p11904_p10), %s15031_s1, 16, %s1664_s26, [#allocation57]  }
 0x23a   : > { %p13223_p5 = pnand %p13222_p6, %p13216_p1 }
 0x23c   : > { %13226 = shalt.err (!%p13223_p5)
}
 0x23d   : > { %11819 = dma.hbm_to_vmem [thread:$0]  (%p11904_p10), %s13719_s17, 128, %s1692_s28, [#allocation60]  }
 0x23e PF: > { %1719 = sbr.rel (%p13784_p9) target bundleno = 16369 (0x3ff1), region = 220  ;;  %p11943_p4 = scmp.eq.s32.totalorder (!%p13784_p9), %s13757_s22, 0 }
 0x243   : > { %13270 = dma.done.wait (%p11943_p4), [#allocation3], 16  }
 0x244   : > { %13272 = vsyncadd (%p11943_p4), [#allocation3], 4294967280 }
 0x245   : > { %13274 = dma.done.wait (%p11943_p4), [#allocation6], 32  }
 0x246   : > { %13276 = vsyncadd (%p11943_p4), [#allocation6], 4294967264 }
 0x247   : > { %13278 = dma.done.wait (%p11943_p4), [#allocation9], 32  }
 0x248   : > { %13280 = vsyncadd (%p11943_p4), [#allocation9], 4294967264 }
 0x249   : > { %13282 = dma.done.wait (%p11943_p4), [#allocation12], 32  }
 0x24a   : > { %13284 = vsyncadd (%p11943_p4), [#allocation12], 4294967264 }
 0x24b   : > { %13286 = dma.done.wait (%p11943_p4), [#allocation15], 32  }
 0x24c   : > { %13288 = vsyncadd (%p11943_p4), [#allocation15], 4294967264 }
 0x24d   : > { %13290 = dma.done.wait (%p11943_p4), [#allocation18], 32  }
 0x24e   : > { %13292 = vsyncadd (%p11943_p4), [#allocation18], 4294967264 }
 0x24f   : > { %13294 = dma.done.wait (%p11943_p4), [#allocation21], 528  }
 0x250   : > { %13296 = vsyncadd (%p11943_p4), [#allocation21], 4294966768 }
 0x251   : > { %13298 = dma.done.wait (%p11943_p4), [#allocation24], 32  }
 0x252   : > { %13300 = vsyncadd (%p11943_p4), [#allocation24], 4294967264 }
 0x253   : > { %13302 = dma.done.wait (%p11943_p4), [#allocation27], 528  }
 0x254   : > { %13304 = vsyncadd (%p11943_p4), [#allocation27], 4294966768 }
 0x255   : > { %13306 = dma.done.wait (%p11943_p4), [#allocation30], 528  }
 0x256   : > { %13308 = vsyncadd (%p11943_p4), [#allocation30], 4294966768 }
 0x257   : > { %13310 = dma.done.wait (%p11943_p4), [#allocation33], 32  }
 0x258   : > { %13312 = vsyncadd (%p11943_p4), [#allocation33], 4294967264 }
 0x259   : > { %13314 = dma.done.wait (%p11943_p4), [#allocation36], 32  }
 0x25a   : > { %13316 = vsyncadd (%p11943_p4), [#allocation36], 4294967264 }
 0x25b   : > { %13318 = dma.done.wait (%p11943_p4), [#allocation39], 1024  }
 0x25c   : > { %13320 = vsyncadd (%p11943_p4), [#allocation39], 4294966272 }
 0x25d   : > { %13322 = dma.done.wait (%p11943_p4), [#allocation42], 32  }
 0x25e   : > { %13324 = vsyncadd (%p11943_p4), [#allocation42], 4294967264 }
 0x25f   : > { %13326 = dma.done.wait (%p11943_p4), [#allocation45], 32  }
 0x260   : > { %13328 = vsyncadd (%p11943_p4), [#allocation45], 4294967264 }
 0x261   : > { %13330 = dma.done.wait (%p11943_p4), [#allocation48], 528  }
 0x262   : > { %13332 = vsyncadd (%p11943_p4), [#allocation48], 4294966768 }
 0x263   : > { %13334 = dma.done.wait (%p11943_p4), [#allocation51], 32  }
 0x264   : > { %13336 = vsyncadd (%p11943_p4), [#allocation51], 4294967264 }
 0x265   : > { %13338 = dma.done.wait (%p11943_p4), [#allocation54], 528  }
 0x266   : > { %13340 = vsyncadd (%p11943_p4), [#allocation54], 4294966768 }
 0x267   : > { %13342 = dma.done.wait (%p11943_p4), [#allocation57], 528  }
 0x268   : > { %13344 = vsyncadd (%p11943_p4), [#allocation57], 4294966768 }
 0x269   : > { %13346 = dma.done.wait (%p11943_p4), [#allocation60], 144  }
 0x26a   : > { %13348 = vsyncadd (%p11943_p4), [#allocation60], 4294967152  ;;  %vm1998_vm0 = vcmask 261120   ;;  %v2044_v0 = vld [vmem:[#allocation61] sm:$0xff]  ;;  %v2076_v8 = vld [vmem:[#allocation29 + $0x10] sm:$0xff]  ;;  %v13460_v20 = vmov 0.0  }
 0x26b   : > { %v2045_v1 = vsel %vm1998_vm0, %v2044_v0, 0.0  ;;  %v2077_v7 = vld [vmem:[#allocation29 + $0x18] sm:$0xff]  ;;  %v2075_v9 = vld [vmem:[#allocation29 + $0x8] sm:$0xff]  ;;  %v2074_v10 = vld [vmem:[#allocation29] sm:$0xff]  ;;  %11211 = vmatprep.subr.mxu0 %v13460_v20  ;;  %vm13461_vm1 = vmmov 0   ;;  %s13462_s11 = smov 96  }
 0x26c   : > { %2046 = vadd.xlane.f32.xlu0 %v2045_v1  ;;  %11190 = vmatprep.subr.mxu1 %v2077_v7  ;;  %v10744_v15 = vld [vmem:[#allocation5] ss:$0 sm:$0xff]  ;;  %v10745_v17 = vld [vmem:[#allocation2] ss:$0 sm:$0xff]  ;;  %v10746_v22 = vld [vmem:[#allocation23] ss:$0 sm:$0xff] }
 0x26d   : > { %11191 = vmatpush3.msra.mxu1 %v2077_v7  ;;  %11213 = vmatprep.mubr.msk.f32.mxu0 %vm13461_vm1, %v13460_v20  ;;  %vm2172_vm2 = vcmask 64512   ;;  %s13463_s5 = smov 88   ;;  %s13464_s23 = smov 64   ;;  %vm5887_vm3 = vcmask 523264   ;;  %vm10074_vm4 = vcmask 392192  }
 0x26e   : > { %11192 = vmatprep.subr.mxu1 %v2076_v8  ;;  %s13465_s0 = smov 120   ;;  %s13466_s13 = smov 56  }
 0x26f   : > { %11193 = vmatpush3.msra.mxu1 %v2076_v8  ;;  %s13467_s4 = smov 80   ;;  %s13468_s26 = smov 112  }
 0x270   : > { %11194 = vmatprep.subr.mxu1 %v2075_v9  ;;  %s14949_s2 = smov 48   ;;  %s13470_s28 = smov 72  }
 0x271   : > { %11195 = vmatpush3.msra.mxu1 %v2075_v9  ;;  %s14951_s10 = smov 104   ;;  %s14947_s6 = smov 40  }
 0x272   : > { %11196 = vmatprep.subr.mxu1 %v2074_v10  ;;  %s15032_s1 = sld [smem:[#allocation84_spill]]  ;;  %s10740_s16 = sshll.u32 %s13757_s22, 1 }
 0x273   : > { %11197 = vmatpush3.msra.mxu1 %v2074_v10  ;;  %p1990_p9 = scmp.lt.s32.totalorder %s10740_s16, 3  ;;  %p15046_p7 = scmp.ne.s32.totalorder %s14998_s7, 0 }
 0x274   : > { %11201 = vmatprep.subr.mxu1 %v13460_v20 }
 0x275   : > { %s15056_s16 = smov (!%p1990_p9, %s10740_s16), 3 }
 0x2f5   : > { %v2047_v2 = vpop.xlane.xlu0 %2046 }
 0x2f6   : > { %v2048_v3 = vmul.f32 0.03125, %v2047_v2 }
 0x2f8   : > { %v2049_v4 = vsub.f32 %v2044_v0, %v2048_v3 }
 0x2fa   : > { %v2050_v5 = vmul.f32 %v2049_v4, %v2049_v4 }
 0x2fc   : > { %v2051_v6 = vsel %vm1998_vm0, %v2050_v5, 0.0 }
 0x2fd   : > { %2052 = vadd.xlane.f32.xlu0 %v2051_v6 }
 0x386   : > { %v2053_v11 = vpop.xlane.xlu0 %2052 }
 0x387   : > { %v2054_v12 = vmul.f32 0.03125, %v2053_v11 }
 0x389   : > { %v2055_v13 = vadd.f32 1e-12, %v2054_v12 }
 0x38b   : > { %12121 = vrsqrt.f32 %v2055_v13 }
 0x398   : > { %v12122_v14 = vpop.eup %12121 }
 0x399   : > { %v2057_v16 = vmul.f32 %v12122_v14, %v2049_v4 }
 0x39b   : > { %v2065_v18 = vmul.f32 %v10744_v15, %v2057_v16  ;;  %v2163_v15 = vld [vmem:[#allocation28] sm:$0xff] }
 0x39d   : > { %v14095_v19 = vadd.f32 %v10745_v17, %v2065_v18 }
 0x39f   : > { %11198 = vmatprep.mubr.msk.f32.mxu1 %vm1998_vm0, %v14095_v19 }
 0x3a0   : > { %11199 = vmatmul.mubr.msk.f32.vlgmr.msra.gmra.mxu1 %vm1998_vm0, %v14095_v19 }
 0x3a1   : > { %11203 = vmatprep.mubr.msk.f32.mxu1 %vm13461_vm1, %v13460_v20 }
 0x460   : > { %v11200_v21 = vpop.f32.mrf.mxu1 }
 0x461   : > { %v14111_v25 = vadd.f32 %v11200_v21, %v10746_v22 }
 0x462   : > { %v2154_v23 = vpop.f32.mrf.mxu1 }
 0x463   : > { %v14107_v24 = vadd.f32 %v10746_v22, %v2154_v23  ;;  %v14126_v29 = vmul.f32 0.35355338, %v14111_v25 }
 0x465   : > { %2170 = vrot.lane.b32.xlu1 %v14107_v24, %s13462_s11  ;;  %v14118_v27 = vmul.f32 0.35355338, %v14107_v24 }
 0x469   : > { %2249 = vrot.lane.b32.xlu1 %v14111_v25, %s13462_s11 }
 0x4d7   : > { %v2171_v26 = vpop.permute.xlu1 %2170 }
 0x4d8   : > { %11202 = vmatpush3.xpose.msk.msra.mxu1 %vm2172_vm2, %v2171_v26 }
 0x4d9   : > { %11206 = vmatprep.subr.mxu1 %v13460_v20 }
 0x4db   : > { %v2250_v28 = vpop.permute.xlu1 %2249  ;;  %11204 = vmatmul.mubr.msk.f32.vlgmr.msra.gmra.mxu1 %vm2172_vm2, %v14118_v27 }
 0x4dc   : > { %11207 = vmatpush3.xpose.msk.msra.mxu1 %vm2172_vm2, %v2250_v28  ;;  %11208 = vmatprep.mubr.msk.f32.mxu1 %vm13461_vm1, %v13460_v20 }
 0x4dd   : > { %11226 = vmatprep.subr.mxu1 %v13460_v20 }
 0x4df   : > { %11209 = vmatmul.mubr.msk.f32.vlgmr.msra.gmra.mxu1 %vm2172_vm2, %v14126_v29 }
 0x4e0   : > { %11228 = vmatprep.mubr.msk.f32.mxu1 %vm13461_vm1, %v13460_v20 }
 0x59b   : > { %v2244_v30 = vpop.f32.mrf.mxu1 }
 0x59c   : > { %v2326_v31 = vsel %vm2172_vm2, %v2244_v30, -inf }
 0x59d   : > { %2327 = vmax.xlane.f32.xlu0 %v2326_v31  ;;  %v11205_v32 = vpop.f32.mrf.mxu1 }
 0x59e   : > { %v2164_v32 = vld [vmem:[#allocation28 + $0x8] sm:$0xff] }
 0x59f   : > { %v2322_v33 = vpop.f32.mrf.mxu1 }
 0x5a0   : > { %v2329_v34 = vsel %vm2172_vm2, %v2322_v33, -inf }
 0x5a1   : > { %2330 = vmax.xlane.f32.xlu1 %v2329_v34  ;;  %v11210_v35 = vpop.f32.mrf.mxu1 }
 0x5b2   : > { %2502 = vrot.lane.b32.xlu1 %v14107_v24, %s13463_s5 }
 0x5b3   : > { %2348 = vrot.lane.b32.xlu0 %v14107_v24, %s13464_s23 }
 0x5b7   : > { %2424 = vrot.lane.b32.xlu0 %v14111_v25, %s13464_s23 }
 0x5bb   : > { %2580 = vrot.lane.b32.xlu0 %v14111_v25, %s13463_s5 }
 0x626   : > { %v2328_v36 = vpop.xlane.xlu0 %2327 }
 0x627   : > { %v2332_v37 = vsub.f32 %v2244_v30, %v2328_v36 }
 0x629   : > { %v2334_v38 = vmul.f32 1.442695, %v2332_v37 }
 0x62a   : > { %v2349_v39 = vpop.permute.xlu0 %2348  ;;  %v2331_v40 = vpop.xlane.xlu1 %2330 }
 0x62b   : > { %12123 = vpow2.f32 %v2334_v38  ;;  %v2333_v41 = vsub.f32 %v2322_v33, %v2331_v40  ;;  %11212 = vmatpush3.msra.mxu0 %v2349_v39 }
 0x62c   : > { %11216 = vmatprep.subr.mxu0 %v13460_v20 }
 0x62d   : > { %v2336_v42 = vmul.f32 1.442695, %v2333_v41 }
 0x62e   : > { %v2425_v43 = vpop.permute.xlu0 %2424  ;;  %v2503_v57 = vpop.permute.xlu1 %2502 }
 0x62f   : > { %12125 = vpow2.f32 %v2336_v42 }
 0x632   : > { %v2581_v44 = vpop.permute.xlu0 %2580 }
 0x633   : > { %11227 = vmatpush3.xpose.msk.msra.mxu1 %vm2172_vm2, %v2581_v44 }
 0x634   : > { %11236 = vmatprep.subr.mxu1 %v13460_v20 }
 0x638   : > { %v12124_v45 = vpop.eup %12123 }
 0x639   : > { %v2338_v46 = vsel %vm2172_vm2, %v12124_v45, 0.0 }
 0x63a   : > { %2339 = vadd.xlane.f32.xlu0 %v2338_v46 }
 0x63c   : > { %v12126_v47 = vpop.eup %12125 }
 0x63d   : > { %v2341_v48 = vsel %vm2172_vm2, %v12126_v47, 0.0 }
 0x63e   : > { %2342 = vadd.xlane.f32.xlu0 %v2341_v48 }
 0x654   : > { %2500 = vrot.lane.b32.xlu0 %v14118_v27, %s13465_s0 }
 0x658   : > { %2578 = vrot.lane.b32.xlu0 %v14126_v29, %s13465_s0 }
 0x6c3   : > { %v2340_v49 = vpop.xlane.xlu0 %2339 }
 0x6c4   : > { %12127 = vrcp.f32 %v2340_v49 }
 0x6c7   : > { %v2343_v50 = vpop.xlane.xlu0 %2342 }
 0x6c8   : > { %12129 = vrcp.f32 %v2343_v50 }
 0x6cb   : > { %v2501_v51 = vpop.permute.xlu0 %2500 }
 0x6cf   : > { %v2579_v52 = vpop.permute.xlu0 %2578 }
 0x6d0   : > { %11229 = vmatmul.mubr.msk.f32.vlgmr.msra.gmra.mxu1 %vm2172_vm2, %v2579_v52 }
 0x6d1   : > { %v12128_v53 = vpop.eup %12127  ;;  %11238 = vmatprep.mubr.msk.f32.mxu1 %vm13461_vm1, %v13460_v20 }
 0x6d2   : > { %v2346_v54 = vmul.f32 %v12128_v53, %v12124_v45 }
 0x6d4   : > { %11214 = vmatmul.mubr.msk.f32.vlgmr.msra.gmra.mxu0 %vm2172_vm2, %v2346_v54 }
 0x6d5   : > { %v12130_v55 = vpop.eup %12129  ;;  %11217 = vmatpush3.msra.mxu0 %v2425_v43  ;;  %11218 = vmatprep.mubr.msk.f32.mxu0 %vm13461_vm1, %v13460_v20 }
 0x6d6   : > { %11221 = vmatprep.subr.mxu0 %v13460_v20  ;;  %v2347_v56 = vmul.f32 %v12130_v55, %v12126_v47 }
 0x6d8   : > { %11219 = vmatmul.mubr.msk.f32.vlgmr.msra.gmra.mxu0 %vm2172_vm2, %v2347_v56 }
 0x6d9   : > { %11222 = vmatpush3.xpose.msk.msra.mxu0 %vm2172_vm2, %v2503_v57  ;;  %11223 = vmatprep.mubr.msk.f32.mxu0 %vm13461_vm1, %v13460_v20 }
 0x6da   : > { %11231 = vmatprep.subr.mxu0 %v13460_v20 }
 0x6dc   : > { %11224 = vmatmul.mubr.msk.f32.vlgmr.msra.gmra.mxu0 %vm2172_vm2, %v2501_v51 }
 0x6dd   : > { %11233 = vmatprep.mubr.msk.f32.mxu0 %vm13461_vm1, %v13460_v20 }
 0x790   : > { %v2652_v58 = vpop.f32.mrf.mxu1 }
 0x791   : > { %v2659_v59 = vsel %vm2172_vm2, %v2652_v58, -inf }
 0x792   : > { %2660 = vmax.xlane.f32.xlu1 %v2659_v59  ;;  %v11230_v60 = vpop.f32.mrf.mxu1 }
 0x794   : > { %v2420_v61 = vpop.f32.mrf.mxu0 }
 0x796   : > { %v11215_v62 = vpop.f32.mrf.mxu0 }
 0x798   : > { %v2496_v63 = vpop.f32.mrf.mxu0 }
 0x79a   : > { %v11220_v0 = vpop.f32.mrf.mxu0 }
 0x79c   : > { %v2574_v1 = vpop.f32.mrf.mxu0 }
 0x79d   : > { %v2656_v2 = vsel %vm2172_vm2, %v2574_v1, -inf }
 0x79e   : > { %2657 = vmax.xlane.f32.xlu0 %v2656_v2  ;;  %v11225_v3 = vpop.f32.mrf.mxu0 }
 0x7a3   : > { %2754 = vrot.lane.b32.xlu1 %v14111_v25, %s13466_s13 }
 0x7a7   : > { %2994 = vrot.lane.b32.xlu1 %v14107_v24, %s13467_s4 }
 0x7ab   : > { %3072 = vrot.lane.b32.xlu1 %v14111_v25, %s13467_s4 }
 0x7af   : > { %3070 = vrot.lane.b32.xlu1 %v14126_v29, %s13468_s26 }
 0x81b   : > { %v2661_v4 = vpop.xlane.xlu1 %2660 }
 0x81c   : > { %v2663_v5 = vsub.f32 %v2652_v58, %v2661_v4 }
 0x81e   : > { %v2666_v6 = vmul.f32 1.442695, %v2663_v5  ;;  %v2165_v5 = vld [vmem:[#allocation28 + $0x10] sm:$0xff] }
 0x81f   : > { %v2755_v7 = vpop.permute.xlu1 %2754 }
 0x820   : > { %12131 = vpow2.f32 %v2666_v6  ;;  %11237 = vmatpush3.msra.mxu1 %v2755_v7 }
 0x821   : > { %11246 = vmatprep.subr.mxu1 %v2163_v15 }
 0x823   : > { %v2995_v17 = vpop.permute.xlu1 %2994 }
 0x827   : > { %v2658_v8 = vpop.xlane.xlu0 %2657  ;;  %v3073_v26 = vpop.permute.xlu1 %3072 }
 0x828   : > { %v2662_v9 = vsub.f32 %v2574_v1, %v2658_v8 }
 0x82a   : > { %v2664_v10 = vmul.f32 1.442695, %v2662_v9 }
 0x82b   : > { %v3071_v28 = vpop.permute.xlu1 %3070 }
 0x82c   : > { %12133 = vpow2.f32 %v2664_v10 }
 0x82d   : > { %v12132_v11 = vpop.eup %12131 }
 0x82e   : > { %v2671_v12 = vsel %vm2172_vm2, %v12132_v11, 0.0 }
 0x82f   : > { %2672 = vadd.xlane.f32.xlu0 %v2671_v12 }
 0x839   : > { %v12134_v13 = vpop.eup %12133 }
 0x83a   : > { %v2668_v14 = vsel %vm2172_vm2, %v12134_v13, 0.0 }
 0x83b   : > { %2669 = vadd.xlane.f32.xlu0 %v2668_v14 }
 0x851   : > { %2678 = vrot.lane.b32.xlu0 %v14107_v24, %s13466_s13 }
 0x855   : > { %2992 = vrot.lane.b32.xlu0 %v14118_v27, %s13468_s26 }
 0x8b8   : > { %v2673_v16 = vpop.xlane.xlu0 %2672 }
 0x8b9   : > { %12135 = vrcp.f32 %v2673_v16 }
 0x8c4   : > { %v2670_v18 = vpop.xlane.xlu0 %2669 }
 0x8c5   : > { %12137 = vrcp.f32 %v2670_v18 }
 0x8c6   : > { %v12136_v21 = vpop.eup %12135 }
 0x8c7   : > { %v2677_v22 = vmul.f32 %v12136_v21, %v12132_v11 }
 0x8c8   : > { %v2679_v23 = vpop.permute.xlu0 %2678 }
 0x8c9   : > { %11232 = vmatpush3.msra.mxu0 %v2679_v23  ;;  %11239 = vmatmul.mubr.msk.f32.vlgmr.msra.gmra.mxu1 %vm2172_vm2, %v2677_v22 }
 0x8ca   : > { %11248 = vmatprep.mubr.msk.f32.mxu1 %vm2172_vm2, %v2420_v61  ;;  %11247 = vmatpush3.msra.mxu1 %v2163_v15 }
 0x8cb   : > { %11256 = vmatprep.subr.mxu1 %v13460_v20  ;;  %11241 = vmatprep.subr.mxu0 %v2164_v32 }
 0x8cc   : > { %v2993_v42 = vpop.permute.xlu0 %2992 }
 0x8cd   : > { %11249 = vmatmul.mubr.msk.f32.vlgmr.msra.gmra.mxu1 %vm2172_vm2, %v2496_v63 }
 0x8ce   : > { %11257 = vmatpush3.xpose.msk.msra.mxu1 %vm2172_vm2, %v3073_v26  ;;  %11258 = vmatprep.mubr.msk.f32.mxu1 %vm13461_vm1, %v13460_v20 }
 0x8cf   : > { %11266 = vmatprep.subr.mxu1 %v13460_v20 }
 0x8d1   : > { %11259 = vmatmul.mubr.msk.f32.vlgmr.msra.gmra.mxu1 %vm2172_vm2, %v3071_v28 }
 0x8d2   : > { %v12138_v30 = vpop.eup %12137  ;;  %11268 = vmatprep.mubr.msk.f32.mxu1 %vm13461_vm1, %v13460_v20 }
 0x8d3   : > { %v2676_v31 = vmul.f32 %v12138_v30, %v12134_v13 }
 0x8d5   : > { %11234 = vmatmul.mubr.msk.f32.vlgmr.msra.gmra.mxu0 %vm2172_vm2, %v2676_v31 }
 0x8d6   : > { %11242 = vmatpush3.msra.mxu0 %v2164_v32 }
 0x8d7   : > { %11251 = vmatprep.subr.mxu0 %v13460_v20 }
 0x989   : > { %v2826_v33 = vpop.f32.mrf.mxu1 }
 0x98b   : > { %v11240_v34 = vpop.f32.mrf.mxu1 }
 0x98d   : > { %v14196_v35 = vpop.f32.mrf.mxu1 }
 0x98f   : > { %v14198_v36 = vpop.f32.mrf.mxu1 }
 0x991   : > { %v3144_v37 = vpop.f32.mrf.mxu1 }
 0x992   : > { %v3151_v38 = vsel %vm2172_vm2, %v3144_v37, -inf }
 0x993   : > { %3152 = vmax.xlane.f32.xlu1 %v3151_v38  ;;  %v11260_v39 = vpop.f32.mrf.mxu1 }
 0x995   : > { %v2750_v40 = vpop.f32.mrf.mxu0 }
 0x996   : > { %11243 = vmatprep.mubr.msk.f32.mxu0 %vm2172_vm2, %v2750_v40 }
 0x997   : > { %v11235_v41 = vpop.f32.mrf.mxu0  ;;  %11244 = vmatmul.mubr.msk.f32.vlgmr.msra.gmra.mxu0 %vm2172_vm2, %v2826_v33 }
 0x998   : > { %11252 = vmatpush3.xpose.msk.msra.mxu0 %vm2172_vm2, %v2995_v17  ;;  %11253 = vmatprep.mubr.msk.f32.mxu0 %vm13461_vm1, %v13460_v20 }
 0x999   : > { %11261 = vmatprep.subr.mxu0 %v13460_v20 }
 0x99b   : > { %11254 = vmatmul.mubr.msk.f32.vlgmr.msra.gmra.mxu0 %vm2172_vm2, %v2993_v42 }
 0x99c   : > { %11263 = vmatprep.mubr.msk.f32.mxu0 %vm13461_vm1, %v13460_v20 }
 0x9a4   : > { %3246 = vrot.lane.b32.xlu1 %v14111_v25, %s14949_s2 }
 0x9a8   : > { %3407 = vrot.lane.b32.xlu1 %v14107_v24, %s13470_s28 }
 0x9ac   : > { %3485 = vrot.lane.b32.xlu1 %v14111_v25, %s13470_s28 }
 0x9b0   : > { %3483 = vrot.lane.b32.xlu1 %v14126_v29, %s14951_s10 }
 0xa1c   : > { %v3153_v43 = vpop.xlane.xlu1 %3152 }
 0xa1d   : > { %v3155_v45 = vsub.f32 %v3144_v37, %v3153_v43 }
 0xa1f   : > { %v3158_v46 = vmul.f32 1.442695, %v3155_v45 }
 0xa20   : > { %v3247_v44 = vpop.permute.xlu1 %3246 }
 0xa21   : > { %11267 = vmatpush3.msra.mxu1 %v3247_v44  ;;  %12139 = vpow2.f32 %v3158_v46  ;;  %v2166_v44 = vld [vmem:[#allocation28 + $0x18] sm:$0xff] }
 0xa22   : > { %11276 = vmatprep.subr.mxu1 %v13460_v20 }
 0xa24   : > { %v3408_v61 = vpop.permute.xlu1 %3407 }
 0xa28   : > { %v3486_v8 = vpop.permute.xlu1 %3485 }
 0xa2c   : > { %v3484_v11 = vpop.permute.xlu1 %3483 }
 0xa2e   : > { %v12140_v51 = vpop.eup %12139 }
 0xa2f   : > { %v3163_v29 = vsel %vm2172_vm2, %v12140_v51, 0.0 }
 0xa57   : > { %v14219_v47 = vpop.f32.mrf.mxu0 }
 0xa58   : > { %v2989_v17 = vadd.f32 %v14196_v35, %v14219_v47 }
 0xa59   : > { %v14221_v48 = vpop.f32.mrf.mxu0 }
 0xa5a   : > { %v2984_v21 = vadd.f32 %v14198_v36, %v14221_v48 }
 0xa5b   : > { %v3066_v49 = vpop.f32.mrf.mxu0 }
 0xa5c   : > { %v3148_v50 = vsel %vm2172_vm2, %v3066_v49, -inf }
 0xa5d   : > { %3149 = vmax.xlane.f32.xlu0 %v3148_v50  ;;  %v11255_v52 = vpop.f32.mrf.mxu0 }
 0xa61   : > { %3164 = vadd.xlane.f32.xlu0 %v3163_v29 }
 0xae6   : > { %v3150_v53 = vpop.xlane.xlu0 %3149 }
 0xae7   : > { %v3154_v54 = vsub.f32 %v3066_v49, %v3150_v53 }
 0xae9   : > { %v3156_v55 = vmul.f32 1.442695, %v3154_v54 }
 0xaea   : > { %v3165_v56 = vpop.xlane.xlu0 %3164 }
 0xaeb   : > { %12141 = vpow2.f32 %v3156_v55 }
 0xaec   : > { %12143 = vrcp.f32 %v3165_v56  ;;  %v10781_v56 = vld [vmem:[#allocation22] ss:$0 sm:$0xff] }
 0xaf8   : > { %v12142_v57 = vpop.eup %12141 }
 0xaf9   : > { %v12144_v58 = vpop.eup %12143  ;;  %v3160_v59 = vsel %vm2172_vm2, %v12142_v57, 0.0 }
 0xafa   : > { %3161 = vadd.xlane.f32.xlu0 %v3160_v59  ;;  %v3169_v60 = vmul.f32 %v12144_v58, %v12140_v51 }
 0xafc   : > { %11269 = vmatmul.mubr.msk.f32.vlgmr.msra.gmra.mxu1 %vm2172_vm2, %v3169_v60 }
 0xafd   : > { %11277 = vmatpush3.xpose.msk.msra.mxu1 %vm2172_vm2, %v3408_v61  ;;  %11278 = vmatprep.mubr.msk.f32.mxu1 %vm13461_vm1, %v13460_v20 }
 0xafe   : > { %11286 = vmatprep.subr.mxu1 %v13460_v20 }
 0xb10   : > { %3170 = vrot.lane.b32.xlu0 %v14107_v24, %s14949_s2 }
 0xb14   : > { %3405 = vrot.lane.b32.xlu0 %v14118_v27, %s14951_s10 }
 0xb83   : > { %v3162_v62 = vpop.xlane.xlu0 %3161 }
 0xb84   : > { %12145 = vrcp.f32 %v3162_v62 }
 0xb87   : > { %v3171_v63 = vpop.permute.xlu0 %3170 }
 0xb88   : > { %11262 = vmatpush3.msra.mxu0 %v3171_v63 }
 0xb89   : > { %11271 = vmatprep.subr.mxu0 %v2165_v5 }
 0xb8b   : > { %v3406_v0 = vpop.permute.xlu0 %3405 }
 0xb8c   : > { %11279 = vmatmul.mubr.msk.f32.vlgmr.msra.gmra.mxu1 %vm2172_vm2, %v3406_v0 }
 0xb8d   : > { %11288 = vmatprep.mubr.msk.f32.mxu1 %vm13461_vm1, %v13460_v20 }
 0xb91   : > { %v12146_v1 = vpop.eup %12145 }
 0xb92   : > { %v3168_v2 = vmul.f32 %v12146_v1, %v12142_v57 }
 0xb94   : > { %11264 = vmatmul.mubr.msk.f32.vlgmr.msra.gmra.mxu0 %vm2172_vm2, %v3168_v2 }
 0xb95   : > { %11272 = vmatpush3.msra.mxu0 %v2165_v5 }
 0xb96   : > { %11281 = vmatprep.subr.mxu0 %v13460_v20 }
 0xbbc   : > { %v3318_v3 = vpop.f32.mrf.mxu1 }
 0xbbe   : > { %v11270_v4 = vpop.f32.mrf.mxu1 }
 0xc4c   : > { %v3479_v27 = vpop.f32.mrf.mxu1 }
 0xc4d   : > { %v3561_v6 = vsel %vm2172_vm2, %v3479_v27, -inf }
 0xc4e   : > { %3562 = vmax.xlane.f32.xlu0 %v3561_v6  ;;  %v11280_v7 = vpop.f32.mrf.mxu1 }
 0xc54   : > { %v3242_v9 = vpop.f32.mrf.mxu0 }
 0xc55   : > { %11273 = vmatprep.mubr.msk.f32.mxu0 %vm2172_vm2, %v3242_v9 }
 0xc56   : > { %v11265_v10 = vpop.f32.mrf.mxu0  ;;  %11274 = vmatmul.mubr.msk.f32.vlgmr.msra.gmra.mxu0 %vm2172_vm2, %v3318_v3 }
 0xc57   : > { %11282 = vmatpush3.xpose.msk.msra.mxu0 %vm2172_vm2, %v3486_v8  ;;  %11283 = vmatprep.mubr.msk.f32.mxu0 %vm13461_vm1, %v13460_v20 }
 0xc58   : > { %11291 = vmatprep.subr.mxu0 %v13460_v20 }
 0xc5a   : > { %11284 = vmatmul.mubr.msk.f32.vlgmr.msra.gmra.mxu0 %vm2172_vm2, %v3484_v11 }
 0xc5b   : > { %11293 = vmatprep.mubr.msk.f32.mxu0 %vm13461_vm1, %v13460_v20 }
 0xcd7   : > { %v3563_v12 = vpop.xlane.xlu0 %3562 }
 0xcd8   : > { %v3567_v13 = vsub.f32 %v3479_v27, %v3563_v12 }
 0xcda   : > { %v3569_v14 = vmul.f32 1.442695, %v3567_v13 }
 0xcdc   : > { %12147 = vpow2.f32 %v3569_v14 }
 0xce9   : > { %v12148_v15 = vpop.eup %12147 }
 0xcea   : > { %v3573_v16 = vsel %vm2172_vm2, %v12148_v15, 0.0 }
 0xceb   : > { %3574 = vadd.xlane.f32.xlu0 %v3573_v16 }
 0xd16   : > { %v11275_v18 = vpop.f32.mrf.mxu0 }
 0xd17   : > { %v3404_v22 = vadd.f32 %v11275_v18, %v2989_v17 }
 0xd18   : > { %v3394_v23 = vpop.f32.mrf.mxu0 }
 0xd19   : > { %v3403_v26 = vadd.f32 %v3394_v23, %v2984_v21 }
 0xd1a   : > { %v3557_v28 = vpop.f32.mrf.mxu0 }
 0xd1b   : > { %v3564_v30 = vsel %vm2172_vm2, %v3557_v28, -inf }
 0xd1c   : > { %3565 = vmax.xlane.f32.xlu1 %v3564_v30  ;;  %v11285_v31 = vpop.f32.mrf.mxu0 }
 0xd2d   : > { %3659 = vrot.lane.b32.xlu1 %v14111_v25, %s14947_s6 }
 0xd74   : > { %v3575_v38 = vpop.xlane.xlu0 %3574 }
 0xda5   : > { %v3566_v32 = vpop.xlane.xlu1 %3565 }
 0xda6   : > { %v3568_v33 = vsub.f32 %v3557_v28, %v3566_v32 }
 0xda8   : > { %v3571_v34 = vmul.f32 1.442695, %v3568_v33 }
 0xda9   : > { %v3660_v35 = vpop.permute.xlu1 %3659 }
 0xdaa   : > { %12149 = vpow2.f32 %v3571_v34  ;;  %11292 = vmatpush3.msra.mxu0 %v3660_v35  ;;  %v10742_v34 = vld [vmem:[%s13729_s9] ss:$0 sm:$0xff] }
 0xdab   : > { %12151 = vrcp.f32 %v3575_v38 }
 0xdb7   : > { %v12150_v37 = vpop.eup %12149 }
 0xdb8   : > { %v3576_v36 = vsel %vm2172_vm2, %v12150_v37, 0.0  ;;  %v12152_v40 = vpop.eup %12151 }
 0xdb9   : > { %3577 = vadd.xlane.f32.xlu0 %v3576_v36  ;;  %v3581_v41 = vmul.f32 %v12152_v40, %v12148_v15 }
 0xdcf   : > { %3583 = vrot.lane.b32.xlu0 %v14107_v24, %s14947_s6  ;;  %s10741_s6 = sshll.u32 %s15056_s16, 3  ;;  %s15036_s16 = sld [smem:[#allocation96_spill]] }
 0xdd0   : > { %s1993_s2 = scalar_lea.vmem %s15032_s1, %s10741_s6  ;;  %s15034_s6 = sld [smem:[#allocation92_spill]] }
 0xdd1   : > { %v1997_v24 = vld [vmem:[%s1993_s2 + $0x8] sm:$0xff]  ;;  %v1996_v45 = vld [vmem:[%s1993_s2] sm:$0xff]  ;;  %s15033_s2 = sld [smem:[#allocation90_spill]] }
 0xdd2   : > { %v2002_v46 = vsel %vm1998_vm0, %v1997_v24, 0.0  ;;  %v1999_v47 = vsel %vm1998_vm0, %v1996_v45, 0.0  ;;  %s15035_s1 = sld [smem:[#allocation91_spill]] }
 0xdd3   : > { %2000 = vadd.xlane.f32.xlu1 %v1999_v47 }
 0xdd6   : > { %v3875_v36 = vld [vmem:[%s15034_s6 + $0x10] sm:$0xff]  ;;  %v3874_v40 = vld [vmem:[%s15034_s6 + $0x8] sm:$0xff] }
 0xdd7   : > { %v3968_v7 = vld [vmem:[%s15033_s2 + $0x18] sm:$0xff]  ;;  %v3967_v8 = vld [vmem:[%s15033_s2 + $0x10] sm:$0xff]  ;;  %v3966_v9 = vld [vmem:[%s15033_s2 + $0x8] sm:$0xff] }
 0xdee   : > { %2003 = vadd.xlane.f32.xlu0 %v2002_v46 }
 0xe42   : > { %v3578_v39 = vpop.xlane.xlu0 %3577 }
 0xe43   : > { %12153 = vrcp.f32 %v3578_v39 }
 0xe46   : > { %v3584_v25 = vpop.permute.xlu0 %3583 }
 0xe47   : > { %11287 = vmatpush3.msra.mxu1 %v3584_v25 }
 0xe48   : > { %11289 = vmatmul.mubr.msk.f32.vlgmr.msra.gmra.mxu1 %vm2172_vm2, %v3581_v41  ;;  %11296 = vmatprep.subr.mxu1 %v2166_v44  ;;  %v10743_v41 = vld [vmem:[%s13724_s30] ss:$0 sm:$0xff] }
 0xe49   : > { %11297 = vmatpush3.msra.mxu1 %v2166_v44 }
 0xe4a   : > { %11312 = vmatprep.subr.mxu1 %v3968_v7 }
 0xe50   : > { %v12154_v42 = vpop.eup %12153 }
 0xe51   : > { %v3582_v43 = vmul.f32 %v12154_v42, %v12150_v37  ;;  %v3876_v37 = vld [vmem:[%s15034_s6 + $0x18] sm:$0xff]  ;;  %v3873_v42 = vld [vmem:[%s15034_s6] sm:$0xff] }
 0xe52   : > { %11301 = vmatprep.subr.mxu0 %v3876_v37 }
 0xe53   : > { %11294 = vmatmul.mubr.msk.f32.vlgmr.msra.gmra.mxu0 %vm2172_vm2, %v3582_v43 }
 0xe54   : > { %11302 = vmatpush3.msra.mxu0 %v3876_v37 }
 0xe55   : > { %11303 = vmatprep.subr.mxu0 %v3875_v36 }
 0xe56   : > { %11304 = vmatpush3.msra.mxu0 %v3875_v36 }
 0xe57   : > { %11305 = vmatprep.subr.mxu0 %v3874_v40 }
 0xe58   : > { %11306 = vmatpush3.msra.mxu0 %v3874_v40 }
 0xe59   : > { %11307 = vmatprep.subr.mxu0 %v3873_v42 }
 0xe5a   : > { %11308 = vmatpush3.msra.mxu0 %v3873_v42 }
 0xe5b   : > { %11323 = vmatprep.subr.mxu0 %v13460_v20 }
 0xe5c   : > { %v2001_v29 = vpop.xlane.xlu1 %2000 }
 0xe5d   : > { %v2006_v54 = vmul.f32 0.03125, %v2001_v29 }
 0xe5f   : > { %v2008_v62 = vsub.f32 %v1996_v45, %v2006_v54 }
 0xe61   : > { %v2010_v4 = vmul.f32 %v2008_v62, %v2008_v62 }
 0xe63   : > { %v2012_v6 = vsel %vm1998_vm0, %v2010_v4, 0.0 }
 0xe77   : > { %v2004_v52 = vpop.xlane.xlu0 %2003 }
 0xe78   : > { %v2007_v53 = vmul.f32 0.03125, %v2004_v52  ;;  %v10782_v52 = vld [vmem:[#allocation26] ss:$0 sm:$0xff] }
 0xe7a   : > { %v2009_v58 = vsub.f32 %v1997_v24, %v2007_v53 }
 0xe7c   : > { %v2011_v1 = vmul.f32 %v2009_v58, %v2009_v58 }
 0xe7e   : > { %v2015_v27 = vsel %vm1998_vm0, %v2011_v1, 0.0 }
 0xf08   : > { %v3655_v48 = vpop.f32.mrf.mxu1 }
 0xf09   : > { %11298 = vmatprep.mubr.msk.f32.mxu1 %vm2172_vm2, %v3655_v48 }
 0xf0a   : > { %v11290_v49 = vpop.f32.mrf.mxu1 }
 0xf13   : > { %v3731_v50 = vpop.f32.mrf.mxu0 }
 0xf14   : > { %11299 = vmatmul.mubr.msk.f32.vlgmr.msra.gmra.mxu1 %vm2172_vm2, %v3731_v50 }
 0xf15   : > { %v11295_v51 = vpop.f32.mrf.mxu0  ;;  %11313 = vmatpush3.msra.mxu1 %v3968_v7 }
 0xf16   : > { %11314 = vmatprep.subr.mxu1 %v3967_v8 }
 0xf17   : > { %11315 = vmatpush3.msra.mxu1 %v3967_v8 }
 0xf18   : > { %11316 = vmatprep.subr.mxu1 %v3966_v9 }
 0xf19   : > { %11317 = vmatpush3.msra.mxu1 %v3966_v9 }
 0xfd4   : > { %v11300_v55 = vpop.f32.mrf.mxu1 }
 0xfd5   : > { %v3817_v57 = vadd.f32 %v11300_v55, %v3404_v22 }
 0xfd6   : > { %v3807_v59 = vpop.f32.mrf.mxu1 }
 0xfd7   : > { %v3826_v60 = vadd.f32 %v10781_v56, %v3817_v57  ;;  %v3816_v61 = vadd.f32 %v3807_v59, %v3403_v26  ;;  %v10787_v59 = vld [vmem:[#allocation7] ss:$0 sm:$0xff] }
 0xfd9   : > { %v3825_v63 = vadd.f32 %v10781_v56, %v3816_v61  ;;  %v3828_v0 = vadd.f32 %v3826_v60, %v14095_v19  ;;  %v10783_v56 = vld [vmem:[#allocation25] ss:$0 sm:$0xff] }
 0xfdb   : > { %v3832_v2 = vsel %vm1998_vm0, %v3828_v0, 0.0  ;;  %v3827_v3 = vadd.f32 %v3825_v63, %v14095_v19  ;;  %v3965_v19 = vld [vmem:[%s15033_s2] sm:$0xff] }
 0xfdc   : > { %3833 = vadd.xlane.f32.xlu1 %v3832_v2  ;;  %11318 = vmatprep.subr.mxu1 %v3965_v19 }
 0xfdd   : > { %v3829_v5 = vsel %vm1998_vm0, %v3827_v3, 0.0  ;;  %11319 = vmatpush3.msra.mxu1 %v3965_v19 }
 0xfde   : > { %3830 = vadd.xlane.f32.xlu0 %v3829_v5  ;;  %11328 = vmatprep.subr.mxu1 %v13460_v20 }
 0xfe0   : > { %2016 = vadd.xlane.f32.xlu1 %v2015_v27 }
 0xfe2   : > { %2013 = vadd.xlane.f32.xlu0 %v2012_v6 }
0x1065   : > { %v3834_v10 = vpop.xlane.xlu1 %3833 }
0x1066   : > { %v3836_v11 = vmul.f32 0.03125, %v3834_v10 }
0x1067   : > { %v3831_v12 = vpop.xlane.xlu0 %3830 }
0x1068   : > { %v3838_v13 = vsub.f32 %v3828_v0, %v3836_v11  ;;  %v3835_v14 = vmul.f32 0.03125, %v3831_v12  ;;  %v10784_v0 = vld [vmem:[#allocation10] ss:$0 sm:$0xff] }
0x1069   : > { %v2017_v15 = vpop.xlane.xlu1 %2016 }
0x106a   : > { %v3837_v16 = vsub.f32 %v3827_v3, %v3835_v14  ;;  %v2019_v17 = vmul.f32 0.03125, %v2017_v15  ;;  %v3840_v18 = vmul.f32 %v3838_v13, %v3838_v13 }
0x106b   : > { %v2014_v21 = vpop.xlane.xlu0 %2013 }
0x106c   : > { %v2021_v22 = vadd.f32 1e-05, %v2019_v17  ;;  %v2018_v23 = vmul.f32 0.03125, %v2014_v21  ;;  %v3844_v26 = vsel %vm1998_vm0, %v3840_v18, 0.0  ;;  %v3839_v28 = vmul.f32 %v3837_v16, %v3837_v16 }
0x106d   : > { %3845 = vadd.xlane.f32.xlu1 %v3844_v26 }
0x106e   : > { %12155 = vrsqrt.f32 %v2021_v22  ;;  %v2020_v30 = vadd.f32 1e-05, %v2018_v23  ;;  %v3841_v31 = vsel %vm1998_vm0, %v3839_v28, 0.0 }
0x106f   : > { %3842 = vadd.xlane.f32.xlu0 %v3841_v31 }
0x1070   : > { %12157 = vrsqrt.f32 %v2020_v30 }
0x107b   : > { %v12156_v32 = vpop.eup %12155 }
0x107c   : > { %v2025_v33 = vmul.f32 %v12156_v32, %v2009_v58 }
0x107d   : > { %v12158_v35 = vpop.eup %12157 }
0x107e   : > { %v2024_v38 = vmul.f32 %v12158_v35, %v2008_v62  ;;  %v2034_v39 = vmul.f32 %v10742_v34, %v2025_v33 }
0x1080   : > { %v2033_v25 = vmul.f32 %v10742_v34, %v2024_v38  ;;  %v14290_v44 = vadd.f32 %v10743_v41, %v2034_v39 }
0x1082   : > { %v14288_v43 = vadd.f32 %v10743_v41, %v2033_v25 }
0x1084   : > { %11320 = vmatprep.mubr.msk.f32.mxu1 %vm1998_vm0, %v14288_v43 }
0x1085   : > { %11321 = vmatmul.mubr.msk.f32.vlgmr.msra.gmra.mxu1 %vm1998_vm0, %v14290_v44 }
0x1086   : > { %11330 = vmatprep.mubr.msk.f32.mxu1 %vm13461_vm1, %v13460_v20 }
0x10f6   : > { %v3846_v24 = vpop.xlane.xlu1 %3845 }
0x10f7   : > { %v3848_v45 = vmul.f32 0.03125, %v3846_v24 }
0x10f8   : > { %v3843_v46 = vpop.xlane.xlu0 %3842 }
0x10f9   : > { %v3850_v47 = vadd.f32 1e-12, %v3848_v45  ;;  %v3847_v48 = vmul.f32 0.03125, %v3843_v46 }
0x10fb   : > { %12159 = vrsqrt.f32 %v3850_v47  ;;  %v3849_v49 = vadd.f32 1e-12, %v3847_v48 }
0x10fd   : > { %12161 = vrsqrt.f32 %v3849_v49 }
0x1108   : > { %v12160_v50 = vpop.eup %12159 }
0x1109   : > { %v3854_v51 = vmul.f32 %v12160_v50, %v3838_v13 }
0x110a   : > { %v12162_v29 = vpop.eup %12161 }
0x110b   : > { %v3853_v53 = vmul.f32 %v12162_v29, %v3837_v16  ;;  %v3863_v54 = vmul.f32 %v10782_v52, %v3854_v51 }
0x110d   : > { %v3862_v55 = vmul.f32 %v10782_v52, %v3853_v53  ;;  %v14301_v58 = vadd.f32 %v10783_v56, %v3863_v54 }
0x110f   : > { %v14299_v57 = vadd.f32 %v10783_v56, %v3862_v55 }
0x1111   : > { %11309 = vmatprep.mubr.msk.f32.mxu0 %vm1998_vm0, %v14299_v57 }
0x1112   : > { %11310 = vmatmul.mubr.msk.f32.vlgmr.msra.gmra.mxu0 %vm1998_vm0, %v14301_v58 }
0x1113   : > { %11325 = vmatprep.mubr.msk.f32.mxu0 %vm13461_vm1, %v13460_v20 }
0x1145   : > { %v11322_v60 = vpop.f32.mrf.mxu1 }
0x1146   : > { %v14309_v61 = vadd.f32 %v11322_v60, %v10787_v59 }
0x1147   : > { %v4048_v62 = vpop.f32.mrf.mxu1 }
0x1148   : > { %v14311_v63 = vadd.f32 %v10787_v59, %v4048_v62  ;;  %11329 = vmatpush3.xpose.msk.msra.mxu1 %vm2172_vm2, %v14309_v61  ;;  %v4057_v62 = vld [vmem:[%s15035_s1] sm:$0xff] }
0x1149   : > { %11338 = vmatprep.subr.mxu1 %v13460_v20 }
0x114a   : > { %11324 = vmatpush3.xpose.msk.msra.mxu0 %vm2172_vm2, %v14311_v63 }
0x114b   : > { %11333 = vmatprep.subr.mxu0 %v13460_v20 }
0x11d2   : > { %v11311_v1 = vpop.f32.mrf.mxu0 }
0x11d3   : > { %v3962_v2 = vadd.f32 %v11311_v1, %v10784_v0 }
0x11d4   : > { %v3956_v3 = vpop.f32.mrf.mxu0 }
0x11d5   : > { %v14319_v4 = vmul.f32 0.35355338, %v3962_v2  ;;  %v3957_v5 = vadd.f32 %v10784_v0, %v3956_v3 }
0x11d7   : > { %v14321_v27 = vmul.f32 0.35355338, %v3957_v5  ;;  %11331 = vmatmul.mubr.msk.f32.vlgmr.msra.gmra.mxu1 %vm2172_vm2, %v14319_v4 }
0x11d8   : > { %11340 = vmatprep.mubr.msk.f32.mxu1 %vm13461_vm1, %v13460_v20 }
0x11d9   : > { %11326 = vmatmul.mubr.msk.f32.vlgmr.msra.gmra.mxu0 %vm2172_vm2, %v14321_v27 }
0x11da   : > { %11335 = vmatprep.mubr.msk.f32.mxu0 %vm13461_vm1, %v13460_v20 }
0x1297   : > { %v4211_v6 = vpop.f32.mrf.mxu1 }
0x1298   : > { %v4218_v7 = vsel %vm2172_vm2, %v4211_v6, -inf }
0x1299   : > { %4219 = vmax.xlane.f32.xlu1 %v4218_v7  ;;  %v4135_v8 = vpop.f32.mrf.mxu0  ;;  %v11332_v9 = vpop.f32.mrf.mxu1 }
0x129a   : > { %v4215_v19 = vsel %vm2172_vm2, %v4135_v8, -inf }
0x129b   : > { %4216 = vmax.xlane.f32.xlu0 %v4215_v19  ;;  %v11327_v10 = vpop.f32.mrf.mxu0 }
0x129c   : > { %v4058_v10 = vld [vmem:[%s15035_s1 + $0x8] sm:$0xff] }
0x1322   : > { %v4220_v11 = vpop.xlane.xlu1 %4219 }
0x1323   : > { %v4222_v12 = vsub.f32 %v4211_v6, %v4220_v11 }
0x1324   : > { %v4217_v13 = vpop.xlane.xlu0 %4216 }
0x1325   : > { %v4225_v14 = vmul.f32 1.442695, %v4222_v12  ;;  %v4221_v15 = vsub.f32 %v4135_v8, %v4217_v13 }
0x1327   : > { %12163 = vpow2.f32 %v4225_v14  ;;  %v4223_v16 = vmul.f32 1.442695, %v4221_v15 }
0x1329   : > { %12165 = vpow2.f32 %v4223_v16 }
0x1334   : > { %v12164_v17 = vpop.eup %12163 }
0x1335   : > { %v4230_v18 = vsel %vm2172_vm2, %v12164_v17, 0.0 }
0x1336   : > { %v12166_v21 = vpop.eup %12165  ;;  %4231 = vadd.xlane.f32.xlu1 %v4230_v18 }
0x1337   : > { %v4227_v22 = vsel %vm2172_vm2, %v12166_v21, 0.0 }
0x1338   : > { %4228 = vadd.xlane.f32.xlu0 %v4227_v22 }
0x1347   : > { %4313 = vrot.lane.b32.xlu1 %v14309_v61, %s13462_s11 }
0x134b   : > { %4391 = vrot.lane.b32.xlu1 %v14311_v63, %s13465_s0 }
0x134e   : > { %4237 = vrot.lane.b32.xlu0 %v14311_v63, %s13462_s11 }
0x134f   : > { %4469 = vrot.lane.b32.xlu1 %v14309_v61, %s13465_s0 }
0x1352   : > { %4389 = vrot.lane.b32.xlu0 %v14321_v27, %s13465_s0 }
0x1353   : > { %4467 = vrot.lane.b32.xlu1 %v14319_v4, %s13465_s0 }
0x13bf   : > { %v4232_v23 = vpop.xlane.xlu1 %4231 }
0x13c0   : > { %12167 = vrcp.f32 %v4232_v23 }
0x13c1   : > { %v4229_v26 = vpop.xlane.xlu0 %4228 }
0x13c2   : > { %12169 = vrcp.f32 %v4229_v26 }
0x13c3   : > { %v4314_v28 = vpop.permute.xlu1 %4313 }
0x13c4   : > { %11339 = vmatpush3.msra.mxu1 %v4314_v28 }
0x13c5   : > { %v4238_v30 = vpop.permute.xlu0 %4237  ;;  %11348 = vmatprep.subr.mxu1 %v13460_v20 }
0x13c6   : > { %11334 = vmatpush3.msra.mxu0 %v4238_v30 }
0x13c7   : > { %v4392_v31 = vpop.permute.xlu1 %4391  ;;  %11343 = vmatprep.subr.mxu0 %v13460_v20 }
0x13c9   : > { %v4390_v38 = vpop.permute.xlu0 %4389 }
0x13cb   : > { %v4470_v33 = vpop.permute.xlu1 %4469 }
0x13cd   : > { %v12168_v32 = vpop.eup %12167 }
0x13ce   : > { %v4236_v34 = vmul.f32 %v12168_v32, %v12164_v17 }
0x13cf   : > { %v12170_v35 = vpop.eup %12169  ;;  %v4468_v36 = vpop.permute.xlu1 %4467 }
0x13d0   : > { %11341 = vmatmul.mubr.msk.f32.vlgmr.msra.gmra.mxu1 %vm2172_vm2, %v4236_v34  ;;  %v4235_v37 = vmul.f32 %v12170_v35, %v12166_v21 }
0x13d1   : > { %11349 = vmatpush3.xpose.msk.msra.mxu1 %vm2172_vm2, %v4470_v33  ;;  %11350 = vmatprep.mubr.msk.f32.mxu1 %vm13461_vm1, %v13460_v20 }
0x13d2   : > { %11336 = vmatmul.mubr.msk.f32.vlgmr.msra.gmra.mxu0 %vm2172_vm2, %v4235_v37  ;;  %11358 = vmatprep.subr.mxu1 %v13460_v20 }
0x13d3   : > { %11344 = vmatpush3.xpose.msk.msra.mxu0 %vm2172_vm2, %v4392_v31  ;;  %11345 = vmatprep.mubr.msk.f32.mxu0 %vm13461_vm1, %v13460_v20 }
0x13d4   : > { %11351 = vmatmul.mubr.msk.f32.vlgmr.msra.gmra.mxu1 %vm2172_vm2, %v4468_v36  ;;  %11353 = vmatprep.subr.mxu0 %v13460_v20 }
0x13d5   : > { %11360 = vmatprep.mubr.msk.f32.mxu1 %vm13461_vm1, %v13460_v20 }
0x13d6   : > { %11346 = vmatmul.mubr.msk.f32.vlgmr.msra.gmra.mxu0 %vm2172_vm2, %v4390_v38 }
0x13d7   : > { %11355 = vmatprep.mubr.msk.f32.mxu0 %vm13461_vm1, %v13460_v20 }
0x1490   : > { %v4385_v39 = vpop.f32.mrf.mxu1 }
0x1492   : > { %v4309_v40 = vpop.f32.mrf.mxu0  ;;  %v11342_v25 = vpop.f32.mrf.mxu1 }
0x1494   : > { %v11337_v41 = vpop.f32.mrf.mxu0  ;;  %v4541_v42 = vpop.f32.mrf.mxu1 }
0x1495   : > { %v4548_v24 = vsel %vm2172_vm2, %v4541_v42, -inf }
0x1496   : > { %4549 = vmax.xlane.f32.xlu1 %v4548_v24  ;;  %v4463_v45 = vpop.f32.mrf.mxu0  ;;  %v11352_v46 = vpop.f32.mrf.mxu1 }
0x1497   : > { %v4545_v47 = vsel %vm2172_vm2, %v4463_v45, -inf }
0x1498   : > { %4546 = vmax.xlane.f32.xlu0 %v4545_v47  ;;  %v11347_v48 = vpop.f32.mrf.mxu0 }
0x14a7   : > { %4643 = vrot.lane.b32.xlu1 %v14309_v61, %s13463_s5 }
0x14ab   : > { %4883 = vrot.lane.b32.xlu1 %v14311_v63, %s13468_s26 }
0x14af   : > { %4961 = vrot.lane.b32.xlu1 %v14309_v61, %s13468_s26 }
0x14b3   : > { %4959 = vrot.lane.b32.xlu1 %v14319_v4, %s13468_s26 }
0x151f   : > { %v4550_v49 = vpop.xlane.xlu1 %4549 }
0x1520   : > { %v4552_v50 = vsub.f32 %v4541_v42, %v4550_v49 }
0x1521   : > { %v4547_v51 = vpop.xlane.xlu0 %4546 }
0x1522   : > { %v4555_v52 = vmul.f32 1.442695, %v4552_v50  ;;  %v4551_v29 = vsub.f32 %v4463_v45, %v4547_v51 }
0x1523   : > { %v4644_v53 = vpop.permute.xlu1 %4643 }
0x1524   : > { %12171 = vpow2.f32 %v4555_v52  ;;  %v4553_v54 = vmul.f32 1.442695, %v4551_v29  ;;  %11359 = vmatpush3.msra.mxu1 %v4644_v53  ;;  %v4059_v29 = vld [vmem:[%s15035_s1 + $0x10] sm:$0xff] }
0x1525   : > { %11368 = vmatprep.subr.mxu1 %v4057_v62 }
0x1526   : > { %12173 = vpow2.f32 %v4553_v54 }
0x1527   : > { %v4884_v3 = vpop.permute.xlu1 %4883 }
0x152b   : > { %v4962_v8 = vpop.permute.xlu1 %4961 }
0x152f   : > { %v4960_v19 = vpop.permute.xlu1 %4959 }
0x1531   : > { %v12172_v55 = vpop.eup %12171 }
0x1532   : > { %v4560_v56 = vsel %vm2172_vm2, %v12172_v55, 0.0 }
0x1533   : > { %v12174_v59 = vpop.eup %12173  ;;  %4561 = vadd.xlane.f32.xlu0 %v4560_v56 }
0x1534   : > { %v4557_v60 = vsel %vm2172_vm2, %v12174_v59, 0.0 }
0x1537   : > { %4558 = vadd.xlane.f32.xlu0 %v4557_v60 }
0x154d   : > { %4567 = vrot.lane.b32.xlu0 %v14311_v63, %s13463_s5 }
0x1551   : > { %4881 = vrot.lane.b32.xlu0 %v14321_v27, %s13468_s26 }
0x15bc   : > { %v4562_v0 = vpop.xlane.xlu0 %4561 }
0x15bd   : > { %12175 = vrcp.f32 %v4562_v0 }
0x15c0   : > { %v4559_v1 = vpop.xlane.xlu0 %4558 }
0x15c1   : > { %12177 = vrcp.f32 %v4559_v1 }
0x15c4   : > { %v4568_v2 = vpop.permute.xlu0 %4567 }
0x15c5   : > { %11354 = vmatpush3.msra.mxu0 %v4568_v2 }
0x15c6   : > { %11363 = vmatprep.subr.mxu0 %v4058_v10 }
0x15c8   : > { %v4882_v18 = vpop.permute.xlu0 %4881 }
0x15ca   : > { %v12176_v5 = vpop.eup %12175 }
0x15cb   : > { %v4566_v6 = vmul.f32 %v12176_v5, %v12172_v55 }
0x15cd   : > { %11361 = vmatmul.mubr.msk.f32.vlgmr.msra.gmra.mxu1 %vm2172_vm2, %v4566_v6 }
0x15ce   : > { %v12178_v7 = vpop.eup %12177  ;;  %11370 = vmatprep.mubr.msk.f32.mxu1 %vm2172_vm2, %v4309_v40  ;;  %11369 = vmatpush3.msra.mxu1 %v4057_v62 }
0x15cf   : > { %11378 = vmatprep.subr.mxu1 %v13460_v20  ;;  %v4565_v9 = vmul.f32 %v12178_v7, %v12174_v59 }
0x15d1   : > { %11356 = vmatmul.mubr.msk.f32.vlgmr.msra.gmra.mxu0 %vm2172_vm2, %v4565_v9  ;;  %11371 = vmatmul.mubr.msk.f32.vlgmr.msra.gmra.mxu1 %vm2172_vm2, %v4385_v39 }
0x15d2   : > { %11379 = vmatpush3.xpose.msk.msra.mxu1 %vm2172_vm2, %v4962_v8  ;;  %11380 = vmatprep.mubr.msk.f32.mxu1 %vm13461_vm1, %v13460_v20 }
0x15d3   : > { %11388 = vmatprep.subr.mxu1 %v13460_v20  ;;  %11364 = vmatpush3.msra.mxu0 %v4058_v10 }
0x15d4   : > { %11373 = vmatprep.subr.mxu0 %v13460_v20 }
0x15d5   : > { %11381 = vmatmul.mubr.msk.f32.vlgmr.msra.gmra.mxu1 %vm2172_vm2, %v4960_v19 }
0x15d6   : > { %11390 = vmatprep.mubr.msk.f32.mxu1 %vm13461_vm1, %v13460_v20 }
0x168d   : > { %v4715_v11 = vpop.f32.mrf.mxu1 }
0x168f   : > { %v11362_v12 = vpop.f32.mrf.mxu1 }
0x1691   : > { %v4639_v13 = vpop.f32.mrf.mxu0  ;;  %v14396_v14 = vpop.f32.mrf.mxu1 }
0x1692   : > { %11365 = vmatprep.mubr.msk.f32.mxu0 %vm2172_vm2, %v4639_v13 }
0x1693   : > { %v11357_v15 = vpop.f32.mrf.mxu0  ;;  %11366 = vmatmul.mubr.msk.f32.vlgmr.msra.gmra.mxu0 %vm2172_vm2, %v4715_v11  ;;  %v14400_v16 = vpop.f32.mrf.mxu1 }
0x1694   : > { %11374 = vmatpush3.xpose.msk.msra.mxu0 %vm2172_vm2, %v4884_v3  ;;  %11375 = vmatprep.mubr.msk.f32.mxu0 %vm13461_vm1, %v13460_v20 }
0x1695   : > { %v5033_v17 = vpop.f32.mrf.mxu1  ;;  %11383 = vmatprep.subr.mxu0 %v13460_v20 }
0x1696   : > { %v5040_v21 = vsel %vm2172_vm2, %v5033_v17, -inf }
0x1697   : > { %5041 = vmax.xlane.f32.xlu1 %v5040_v21  ;;  %11376 = vmatmul.mubr.msk.f32.vlgmr.msra.gmra.mxu0 %vm2172_vm2, %v4882_v18  ;;  %v11382_v22 = vpop.f32.mrf.mxu1 }
0x1698   : > { %11385 = vmatprep.mubr.msk.f32.mxu0 %vm13461_vm1, %v13460_v20 }
0x16a8   : > { %5135 = vrot.lane.b32.xlu1 %v14309_v61, %s13467_s4 }
0x16ac   : > { %5296 = vrot.lane.b32.xlu1 %v14311_v63, %s14951_s10 }
0x16b0   : > { %5374 = vrot.lane.b32.xlu1 %v14309_v61, %s14951_s10 }
0x16b4   : > { %5372 = vrot.lane.b32.xlu1 %v14319_v4, %s14951_s10 }
0x1720   : > { %v5042_v23 = vpop.xlane.xlu1 %5041 }
0x1721   : > { %v5044_v28 = vsub.f32 %v5033_v17, %v5042_v23 }
0x1723   : > { %v5047_v30 = vmul.f32 1.442695, %v5044_v28 }
0x1724   : > { %v5136_v26 = vpop.permute.xlu1 %5135 }
0x1725   : > { %11389 = vmatpush3.msra.mxu1 %v5136_v26  ;;  %12179 = vpow2.f32 %v5047_v30 }
0x1726   : > { %11398 = vmatprep.subr.mxu1 %v13460_v20 }
0x1728   : > { %v5297_v45 = vpop.permute.xlu1 %5296 }
0x172c   : > { %v5375_v55 = vpop.permute.xlu1 %5374 }
0x1730   : > { %v5373_v60 = vpop.permute.xlu1 %5372 }
0x1732   : > { %v12180_v35 = vpop.eup %12179 }
0x1733   : > { %v5052_v4 = vsel %vm2172_vm2, %v12180_v35, 0.0 }
0x1753   : > { %v14419_v31 = vpop.f32.mrf.mxu0 }
0x1754   : > { %v4878_v5 = vadd.f32 %v14396_v14, %v14419_v31  ;;  %v4060_v31 = vld [vmem:[%s15035_s1 + $0x18] sm:$0xff] }
0x1755   : > { %v14421_v32 = vpop.f32.mrf.mxu0 }
0x1756   : > { %v4873_v7 = vadd.f32 %v14400_v16, %v14421_v32 }
0x1757   : > { %v4955_v33 = vpop.f32.mrf.mxu0 }
0x1758   : > { %v5037_v34 = vsel %vm2172_vm2, %v4955_v33, -inf }
0x1759   : > { %5038 = vmax.xlane.f32.xlu0 %v5037_v34  ;;  %v11377_v37 = vpop.f32.mrf.mxu0 }
0x175a   : > { %v10822_v37 = vld [vmem:[#allocation8] ss:$0 sm:$0xff] }
0x175d   : > { %5053 = vadd.xlane.f32.xlu0 %v5052_v4 }
0x17e2   : > { %v5039_v36 = vpop.xlane.xlu0 %5038 }
0x17e3   : > { %v5043_v38 = vsub.f32 %v4955_v33, %v5039_v36 }
0x17e5   : > { %v5045_v39 = vmul.f32 1.442695, %v5043_v38 }
0x17e6   : > { %v5054_v40 = vpop.xlane.xlu0 %5053 }
0x17e7   : > { %12181 = vpow2.f32 %v5045_v39 }
0x17e8   : > { %12183 = vrcp.f32 %v5054_v40 }
0x17f4   : > { %v12182_v25 = vpop.eup %12181 }
0x17f5   : > { %v12184_v41 = vpop.eup %12183  ;;  %v5049_v42 = vsel %vm2172_vm2, %v12182_v25, 0.0 }
0x17f6   : > { %5050 = vadd.xlane.f32.xlu0 %v5049_v42  ;;  %v5058_v24 = vmul.f32 %v12184_v41, %v12180_v35 }
0x17f8   : > { %11391 = vmatmul.mubr.msk.f32.vlgmr.msra.gmra.mxu1 %vm2172_vm2, %v5058_v24 }
0x17f9   : > { %11399 = vmatpush3.xpose.msk.msra.mxu1 %vm2172_vm2, %v5297_v45  ;;  %11400 = vmatprep.mubr.msk.f32.mxu1 %vm13461_vm1, %v13460_v20 }
0x17fa   : > { %11408 = vmatprep.subr.mxu1 %v13460_v20 }
0x180c   : > { %5059 = vrot.lane.b32.xlu0 %v14311_v63, %s13467_s4 }
0x1810   : > { %5294 = vrot.lane.b32.xlu0 %v14321_v27, %s14951_s10  ;;  %s15037_s10 = smov %s15036_s16 }
0x187f   : > { %v5051_v46 = vpop.xlane.xlu0 %5050 }
0x1880   : > { %12185 = vrcp.f32 %v5051_v46 }
0x1883   : > { %v5060_v47 = vpop.permute.xlu0 %5059 }
0x1884   : > { %11384 = vmatpush3.msra.mxu0 %v5060_v47 }
0x1885   : > { %11393 = vmatprep.subr.mxu0 %v4059_v29 }
0x1887   : > { %v5295_v48 = vpop.permute.xlu0 %5294 }
0x1888   : > { %11401 = vmatmul.mubr.msk.f32.vlgmr.msra.gmra.mxu1 %vm2172_vm2, %v5295_v48 }
0x1889   : > { %11410 = vmatprep.mubr.msk.f32.mxu1 %vm13461_vm1, %v13460_v20 }
0x188d   : > { %v12186_v49 = vpop.eup %12185 }
0x188e   : > { %v5057_v50 = vmul.f32 %v12186_v49, %v12182_v25 }
0x1890   : > { %11386 = vmatmul.mubr.msk.f32.vlgmr.msra.gmra.mxu0 %vm2172_vm2, %v5057_v50 }
0x1891   : > { %11394 = vmatpush3.msra.mxu0 %v4059_v29 }
0x1892   : > { %11403 = vmatprep.subr.mxu0 %v13460_v20 }
0x18b8   : > { %v5207_v51 = vpop.f32.mrf.mxu1 }
0x18ba   : > { %v11392_v52 = vpop.f32.mrf.mxu1 }
0x1948   : > { %v5368_v27 = vpop.f32.mrf.mxu1 }
0x1949   : > { %v5450_v53 = vsel %vm2172_vm2, %v5368_v27, -inf }
0x194a   : > { %5451 = vmax.xlane.f32.xlu0 %v5450_v53  ;;  %v11402_v54 = vpop.f32.mrf.mxu1  ;;  %v5763_v53 = vld [vmem:[#allocation20 + $0x8] sm:$0xff] }
0x194b   : > { %v5762_v54 = vld [vmem:[#allocation20] sm:$0xff] }
0x1950   : > { %v5131_v56 = vpop.f32.mrf.mxu0 }
0x1951   : > { %11395 = vmatprep.mubr.msk.f32.mxu0 %vm2172_vm2, %v5131_v56 }
0x1952   : > { %v11387_v59 = vpop.f32.mrf.mxu0  ;;  %11396 = vmatmul.mubr.msk.f32.vlgmr.msra.gmra.mxu0 %vm2172_vm2, %v5207_v51 }
0x1953   : > { %11404 = vmatpush3.xpose.msk.msra.mxu0 %vm2172_vm2, %v5375_v55  ;;  %11405 = vmatprep.mubr.msk.f32.mxu0 %vm13461_vm1, %v13460_v20 }
0x1954   : > { %11413 = vmatprep.subr.mxu0 %v13460_v20 }
0x1956   : > { %11406 = vmatmul.mubr.msk.f32.vlgmr.msra.gmra.mxu0 %vm2172_vm2, %v5373_v60 }
0x1957   : > { %11415 = vmatprep.mubr.msk.f32.mxu0 %vm13461_vm1, %v13460_v20 }
0x19d3   : > { %v5452_v62 = vpop.xlane.xlu0 %5451 }
0x19d4   : > { %v5456_v0 = vsub.f32 %v5368_v27, %v5452_v62  ;;  %v5765_v27 = vld [vmem:[#allocation20 + $0x18] sm:$0xff] }
0x19d6   : > { %v5458_v1 = vmul.f32 1.442695, %v5456_v0 }
0x19d8   : > { %12187 = vpow2.f32 %v5458_v1 }
0x19e5   : > { %v12188_v2 = vpop.eup %12187 }
0x19e6   : > { %v5462_v3 = vsel %vm2172_vm2, %v12188_v2, 0.0 }
0x19e7   : > { %5463 = vadd.xlane.f32.xlu0 %v5462_v3  ;;  %v10823_v3 = vld [vmem:[#allocation13] ss:$0 sm:$0xff] }
0x1a12   : > { %v11397_v6 = vpop.f32.mrf.mxu0 }
0x1a13   : > { %v5293_v8 = vadd.f32 %v11397_v6, %v4878_v5 }
0x1a14   : > { %v5283_v9 = vpop.f32.mrf.mxu0 }
0x1a15   : > { %v5292_v19 = vadd.f32 %v5283_v9, %v4873_v7  ;;  %v10824_v9 = vld [vmem:[#allocation11] ss:$0 sm:$0xff] }
0x1a16   : > { %v5446_v10 = vpop.f32.mrf.mxu0 }
0x1a17   : > { %v5453_v11 = vsel %vm2172_vm2, %v5446_v10, -inf }
0x1a18   : > { %5454 = vmax.xlane.f32.xlu1 %v5453_v11  ;;  %v11407_v12 = vpop.f32.mrf.mxu0  ;;  %v5879_v11 = vld [vmem:[%s15036_s16 + $0x38] sm:$0xff]  ;;  %s15040_s16 = smov 40  }
0x1a19   : > { %v5878_v12 = vld [vmem:[%s15037_s10 + $0x30] sm:$0xff] }
0x1a29   : > { %5548 = vrot.lane.b32.xlu1 %v14309_v61, %s13470_s28 }
0x1a70   : > { %v5464_v21 = vpop.xlane.xlu0 %5463 }
0x1aa1   : > { %v5455_v13 = vpop.xlane.xlu1 %5454 }
0x1aa2   : > { %v5457_v15 = vsub.f32 %v5446_v10, %v5455_v13  ;;  %v5877_v13 = vld [vmem:[%s15037_s10 + $0x28] sm:$0xff] }
0x1aa4   : > { %v5460_v17 = vmul.f32 1.442695, %v5457_v15  ;;  %v5876_v15 = vld [vmem:[%s15037_s10 + $0x20] sm:$0xff] }
0x1aa5   : > { %v5549_v18 = vpop.permute.xlu1 %5548 }
0x1aa6   : > { %12189 = vpow2.f32 %v5460_v17  ;;  %11414 = vmatpush3.msra.mxu0 %v5549_v18  ;;  %v5875_v17 = vld [vmem:[%s15037_s10 + $0x18] sm:$0xff]  ;;  %v5874_v18 = vld [vmem:[%s15037_s10 + $0x10] sm:$0xff] }
0x1aa7   : > { %12191 = vrcp.f32 %v5464_v21  ;;  %11423 = vmatprep.subr.mxu0 %v5765_v27  ;;  %v10825_v21 = vld [vmem:[#allocation14] ss:$0 sm:$0xff] }
0x1ab3   : > { %v12190_v14 = vpop.eup %12189 }
0x1ab4   : > { %v5465_v16 = vsel %vm2172_vm2, %v12190_v14, 0.0  ;;  %v12192_v23 = vpop.eup %12191 }
0x1ab5   : > { %5466 = vadd.xlane.f32.xlu0 %v5465_v16  ;;  %v5470_v26 = vmul.f32 %v12192_v23, %v12188_v2  ;;  %v5872_v16 = vld [vmem:[%s15037_s10] sm:$0xff] }
0x1acb   : > { %5472 = vrot.lane.b32.xlu0 %v14311_v63, %s13470_s28 }
0x1b3e   : > { %v5467_v22 = vpop.xlane.xlu0 %5466 }
0x1b3f   : > { %12193 = vrcp.f32 %v5467_v22 }
0x1b42   : > { %v5473_v61 = vpop.permute.xlu0 %5472 }
0x1b43   : > { %11409 = vmatpush3.msra.mxu1 %v5473_v61 }
0x1b44   : > { %11411 = vmatmul.mubr.msk.f32.vlgmr.msra.gmra.mxu1 %vm2172_vm2, %v5470_v26  ;;  %11418 = vmatprep.subr.mxu1 %v4060_v31 }
0x1b45   : > { %11419 = vmatpush3.msra.mxu1 %v4060_v31 }
0x1b46   : > { %11434 = vmatprep.subr.mxu1 %v5879_v11 }
0x1b4c   : > { %v12194_v28 = vpop.eup %12193 }
0x1b4d   : > { %v5471_v30 = vmul.f32 %v12194_v28, %v12190_v14  ;;  %v5873_v14 = vld [vmem:[%s15037_s10 + $0x8] sm:$0xff] }
0x1b4f   : > { %11416 = vmatmul.mubr.msk.f32.vlgmr.msra.gmra.mxu0 %vm2172_vm2, %v5471_v30 }
0x1b50   : > { %11424 = vmatpush3.msra.mxu0 %v5765_v27 }
0x1c04   : > { %v5544_v32 = vpop.f32.mrf.mxu1 }
0x1c05   : > { %11420 = vmatprep.mubr.msk.f32.mxu1 %vm2172_vm2, %v5544_v32 }
0x1c06   : > { %v11412_v63 = vpop.f32.mrf.mxu1 }
0x1c0f   : > { %v5620_v33 = vpop.f32.mrf.mxu0 }
0x1c10   : > { %11421 = vmatmul.mubr.msk.f32.vlgmr.msra.gmra.mxu1 %vm2172_vm2, %v5620_v33 }
0x1c11   : > { %v11417_v34 = vpop.f32.mrf.mxu0  ;;  %11435 = vmatpush3.msra.mxu1 %v5879_v11 }
0x1c12   : > { %11436 = vmatprep.subr.mxu1 %v5878_v12 }
0x1c13   : > { %11437 = vmatpush3.msra.mxu1 %v5878_v12  ;;  %v10831_v12 = vld [vmem:[#allocation19] ss:$0 sm:$0xff] }
0x1c14   : > { %11438 = vmatprep.subr.mxu1 %v5877_v13 }
0x1c15   : > { %11439 = vmatpush3.msra.mxu1 %v5877_v13 }
0x1c16   : > { %11440 = vmatprep.subr.mxu1 %v5876_v15 }
0x1c17   : > { %11441 = vmatpush3.msra.mxu1 %v5876_v15 }
0x1c18   : > { %11442 = vmatprep.subr.mxu1 %v5875_v17 }
0x1c19   : > { %11443 = vmatpush3.msra.mxu1 %v5875_v17 }
0x1c1a   : > { %11444 = vmatprep.subr.mxu1 %v5874_v18 }
0x1c1b   : > { %11445 = vmatpush3.msra.mxu1 %v5874_v18 }
0x1c1c   : > { %11446 = vmatprep.subr.mxu1 %v5873_v14 }
0x1c1d   : > { %11447 = vmatpush3.msra.mxu1 %v5873_v14  ;;  %v10832_v14 = vld [vmem:[#allocation17] ss:$0 sm:$0xff] }
0x1c1e   : > { %11448 = vmatprep.subr.mxu1 %v5872_v16 }
0x1c1f   : > { %11449 = vmatpush3.msra.mxu1 %v5872_v16 }
0x1c20   : > { %11469 = vmatprep.subr.mxu1 %v13460_v20 }
0x1cd0   : > { %v11422_v35 = vpop.f32.mrf.mxu1 }
0x1cd1   : > { %v5706_v4 = vadd.f32 %v11422_v35, %v5293_v8 }
0x1cd2   : > { %v5696_v36 = vpop.f32.mrf.mxu1 }
0x1cd3   : > { %v5715_v38 = vadd.f32 %v10822_v37, %v5706_v4  ;;  %v5705_v39 = vadd.f32 %v5696_v36, %v5292_v19 }
0x1cd5   : > { %v5714_v40 = vadd.f32 %v10822_v37, %v5705_v39  ;;  %v5717_v25 = vadd.f32 %v5715_v38, %v14301_v58 }
0x1cd7   : > { %v5721_v41 = vsel %vm1998_vm0, %v5717_v25, 0.0  ;;  %v5716_v42 = vadd.f32 %v5714_v40, %v14299_v57  ;;  %v5764_v57 = vld [vmem:[#allocation20 + $0x10] sm:$0xff] }
0x1cd8   : > { %5722 = vadd.xlane.f32.xlu0 %v5721_v41  ;;  %11425 = vmatprep.subr.mxu0 %v5764_v57 }
0x1cd9   : > { %v5718_v24 = vsel %vm1998_vm0, %v5716_v42, 0.0  ;;  %11426 = vmatpush3.msra.mxu0 %v5764_v57 }
0x1cda   : > { %5719 = vadd.xlane.f32.xlu1 %v5718_v24  ;;  %11427 = vmatprep.subr.mxu0 %v5763_v53 }
0x1cdb   : > { %11428 = vmatpush3.msra.mxu0 %v5763_v53 }
0x1cdc   : > { %11429 = vmatprep.subr.mxu0 %v5762_v54 }
0x1cdd   : > { %11430 = vmatpush3.msra.mxu0 %v5762_v54 }
0x1d61   : > { %v5723_v45 = vpop.xlane.xlu0 %5722 }
0x1d62   : > { %v5725_v46 = vmul.f32 0.03125, %v5723_v45  ;;  %v10828_v45 = vld [vmem:[#allocation16] ss:$0 sm:$0xff] }
0x1d63   : > { %v5720_v47 = vpop.xlane.xlu1 %5719 }
0x1d64   : > { %v5727_v48 = vsub.f32 %v5717_v25, %v5725_v46  ;;  %v5724_v49 = vmul.f32 0.03125, %v5720_v47 }
0x1d66   : > { %v5726_v50 = vsub.f32 %v5716_v42, %v5724_v49  ;;  %v5729_v51 = vmul.f32 %v5727_v48, %v5727_v48 }
0x1d68   : > { %v5733_v52 = vsel %vm1998_vm0, %v5729_v51, 0.0  ;;  %v5728_v29 = vmul.f32 %v5726_v50, %v5726_v50 }
0x1d69   : > { %5734 = vadd.xlane.f32.xlu1 %v5733_v52 }
0x1d6a   : > { %v5730_v58 = vsel %vm1998_vm0, %v5728_v29, 0.0 }
0x1d6b   : > { %5731 = vadd.xlane.f32.xlu0 %v5730_v58 }
0x1df2   : > { %v5735_v55 = vpop.xlane.xlu1 %5734 }
0x1df3   : > { %v5737_v56 = vmul.f32 0.03125, %v5735_v55 }
0x1df4   : > { %v5732_v59 = vpop.xlane.xlu0 %5731 }
0x1df5   : > { %v5739_v60 = vadd.f32 1e-12, %v5737_v56  ;;  %v5736_v62 = vmul.f32 0.03125, %v5732_v59 }
0x1df7   : > { %12195 = vrsqrt.f32 %v5739_v60  ;;  %v5738_v0 = vadd.f32 1e-12, %v5736_v62 }
0x1df9   : > { %12197 = vrsqrt.f32 %v5738_v0  ;;  %v6018_v0 = vld [vmem:[#allocation56 + $0x18] sm:$0xff] }
0x1dfa   : > { %11453 = vmatprep.subr.mxu0 %v6018_v0 }
0x1e04   : > { %v12196_v1 = vpop.eup %12195 }
0x1e05   : > { %v5743_v2 = vmul.f32 %v12196_v1, %v5727_v48  ;;  %v6017_v1 = vld [vmem:[#allocation56 + $0x10] sm:$0xff] }
0x1e06   : > { %v12198_v5 = vpop.eup %12197 }
0x1e07   : > { %v5742_v6 = vmul.f32 %v12198_v5, %v5726_v50  ;;  %v5752_v7 = vmul.f32 %v10823_v3, %v5743_v2  ;;  %v6016_v2 = vld [vmem:[#allocation56 + $0x8] sm:$0xff] }
0x1e09   : > { %v5751_v8 = vmul.f32 %v10823_v3, %v5742_v6  ;;  %v5761_v10 = vadd.f32 %v10824_v9, %v5752_v7  ;;  %v6015_v3 = vld [vmem:[#allocation56] sm:$0xff] }
0x1e0b   : > { %v14473_v19 = vadd.f32 %v10824_v9, %v5751_v8 }
0x1e0d   : > { %11431 = vmatprep.mubr.msk.f32.mxu0 %vm1998_vm0, %v14473_v19 }
0x1e0e   : > { %11432 = vmatmul.mubr.msk.f32.vlgmr.msra.gmra.mxu0 %vm1998_vm0, %v5761_v10 }
0x1e0f   : > { %11454 = vmatpush3.msra.mxu0 %v6018_v0 }
0x1e10   : > { %11455 = vmatprep.subr.mxu0 %v6017_v1 }
0x1e11   : > { %11456 = vmatpush3.msra.mxu0 %v6017_v1 }
0x1e12   : > { %11457 = vmatprep.subr.mxu0 %v6016_v2 }
0x1e13   : > { %11458 = vmatpush3.msra.mxu0 %v6016_v2 }
0x1e14   : > { %11459 = vmatprep.subr.mxu0 %v6015_v3 }
0x1e15   : > { %11460 = vmatpush3.msra.mxu0 %v6015_v3 }
0x1e16   : > { %11464 = vmatprep.subr.mxu0 %v13460_v20 }
0x1ece   : > { %v11433_v22 = vpop.f32.mrf.mxu0 }
0x1ecf   : > { %v5851_v23 = vadd.f32 %v11433_v22, %v10825_v21  ;;  %v10833_v22 = vld [vmem:[#allocation50] ss:$0 sm:$0xff] }
0x1ed0   : > { %v5845_v61 = vpop.f32.mrf.mxu0 }
0x1ed1   : > { %v5855_v26 = vmul.f32 %v5851_v23, %v5851_v23  ;;  %v5846_v28 = vadd.f32 %v10825_v21, %v5845_v61 }
0x1ed3   : > { %v5857_v30 = vmul.f32 %v5855_v26, %v5851_v23  ;;  %v5854_v31 = vmul.f32 %v5846_v28, %v5846_v28 }
0x1ed5   : > { %v5859_v32 = vmul.f32 0.044715, %v5857_v30  ;;  %v5856_v63 = vmul.f32 %v5854_v31, %v5846_v28 }
0x1ed7   : > { %v5861_v33 = vadd.f32 %v5859_v32, %v5851_v23  ;;  %v5858_v34 = vmul.f32 0.044715, %v5856_v63 }
0x1ed9   : > { %v5863_v35 = vmul.f32 0.7978846, %v5861_v33  ;;  %v5860_v37 = vadd.f32 %v5858_v34, %v5846_v28 }
0x1edb   : > { %12199 = vtanh.f32 %v5863_v35  ;;  %v5862_v4 = vmul.f32 0.7978846, %v5860_v37 }
0x1edd   : > { %12201 = vtanh.f32 %v5862_v4 }
0x1ee8   : > { %v12200_v36 = vpop.eup %12199 }
0x1ee9   : > { %v5867_v38 = vadd.f32 1.0, %v12200_v36 }
0x1eea   : > { %v12202_v39 = vpop.eup %12201 }
0x1eeb   : > { %v5866_v40 = vadd.f32 1.0, %v12202_v39  ;;  %v5869_v25 = vmul.f32 0.5, %v5867_v38 }
0x1eed   : > { %v5868_v41 = vmul.f32 0.5, %v5866_v40  ;;  %v5871_v24 = vmul.f32 %v5869_v25, %v5851_v23 }
0x1eef   : > { %v5870_v42 = vmul.f32 %v5868_v41, %v5846_v28 }
0x1ef1   : > { %11450 = vmatprep.mubr.msk.f32.mxu1 %vm5887_vm3, %v5870_v42 }
0x1ef2   : > { %11451 = vmatmul.mubr.msk.f32.vlgmr.msra.gmra.mxu1 %vm5887_vm3, %v5871_v24 }
0x1ef3   : > { %11471 = vmatprep.mubr.msk.f32.mxu1 %vm13461_vm1, %v13460_v20 }
0x1fb2   : > { %v11452_v46 = vpop.f32.mrf.mxu1 }
0x1fb3   : > { %v5966_v47 = vadd.f32 %v11452_v46, %v10828_v45 }
0x1fb4   : > { %v5960_v48 = vpop.f32.mrf.mxu1 }
0x1fb5   : > { %v5961_v49 = vadd.f32 %v10828_v45, %v5960_v48  ;;  %v5970_v50 = vadd.f32 %v5966_v47, %v5761_v10 }
0x1fb7   : > { %v5974_v51 = vsel %vm1998_vm0, %v5970_v50, 0.0  ;;  %v5969_v52 = vadd.f32 %v5961_v49, %v14473_v19 }
0x1fb8   : > { %5975 = vadd.xlane.f32.xlu1 %v5974_v51 }
0x1fb9   : > { %v5971_v29 = vsel %vm1998_vm0, %v5969_v52, 0.0 }
0x1fba   : > { %5972 = vadd.xlane.f32.xlu0 %v5971_v29 }
0x2041   : > { %v5976_v58 = vpop.xlane.xlu1 %5975 }
0x2042   : > { %v5978_v27 = vmul.f32 0.03125, %v5976_v58 }
0x2043   : > { %v5973_v57 = vpop.xlane.xlu0 %5972 }
0x2044   : > { %v5980_v53 = vsub.f32 %v5970_v50, %v5978_v27  ;;  %v5977_v54 = vmul.f32 0.03125, %v5973_v57 }
0x2046   : > { %v5979_v55 = vsub.f32 %v5969_v52, %v5977_v54  ;;  %v5982_v56 = vmul.f32 %v5980_v53, %v5980_v53 }
0x2048   : > { %v5986_v59 = vsel %vm1998_vm0, %v5982_v56, 0.0  ;;  %v5981_v60 = vmul.f32 %v5979_v55, %v5979_v55 }
0x2049   : > { %5987 = vadd.xlane.f32.xlu1 %v5986_v59 }
0x204a   : > { %v5983_v62 = vsel %vm1998_vm0, %v5981_v60, 0.0 }
0x204b   : > { %5984 = vadd.xlane.f32.xlu0 %v5983_v62 }
0x20d2   : > { %v5988_v5 = vpop.xlane.xlu1 %5987 }
0x20d3   : > { %v5990_v6 = vmul.f32 0.03125, %v5988_v5 }
0x20d4   : > { %v5985_v7 = vpop.xlane.xlu0 %5984 }
0x20d5   : > { %v5992_v8 = vadd.f32 1e-12, %v5990_v6  ;;  %v5989_v9 = vmul.f32 0.03125, %v5985_v7 }
0x20d7   : > { %12203 = vrsqrt.f32 %v5992_v8  ;;  %v5991_v19 = vadd.f32 1e-12, %v5989_v9 }
0x20d9   : > { %12205 = vrsqrt.f32 %v5991_v19 }
0x20e4   : > { %v12204_v10 = vpop.eup %12203 }
0x20e5   : > { %v5996_v11 = vmul.f32 %v12204_v10, %v5980_v53 }
0x20e6   : > { %v12206_v13 = vpop.eup %12205 }
0x20e7   : > { %v5995_v15 = vmul.f32 %v12206_v13, %v5979_v55  ;;  %v6005_v17 = vmul.f32 %v10831_v12, %v5996_v11 }
0x20e9   : > { %v6004_v18 = vmul.f32 %v10831_v12, %v5995_v15  ;;  %v14499_v21 = vadd.f32 %v10832_v14, %v6005_v17 }
0x20eb   : > { %v14497_v16 = vadd.f32 %v10832_v14, %v6004_v18  ;;  %v6107_v14 = vld [vmem:[#allocation55] sm:$0xff] }
0x20ed   : > { %11461 = vmatprep.mubr.msk.f32.mxu0 %vm1998_vm0, %v14497_v16 }
0x20ee   : > { %11462 = vmatmul.mubr.msk.f32.vlgmr.msra.gmra.mxu0 %vm1998_vm0, %v14499_v21 }
0x20ef   : > { %11466 = vmatprep.mubr.msk.f32.mxu0 %vm13461_vm1, %v13460_v20 }
0x21ae   : > { %v11463_v23 = vpop.f32.mrf.mxu0 }
0x21af   : > { %v14507_v61 = vadd.f32 %v11463_v23, %v10833_v22 }
0x21b0   : > { %v6098_v26 = vpop.f32.mrf.mxu0 }
0x21b1   : > { %v14509_v28 = vadd.f32 %v10833_v22, %v6098_v26  ;;  %6192 = vrot.lane.b32.xlu1 %v14507_v61, %s13462_s11  ;;  %v14517_v32 = vmul.f32 0.35355338, %v14507_v61 }
0x21b3   : > { %6114 = vrot.lane.b32.xlu0 %v14509_v28, %s13462_s11  ;;  %v14524_v63 = vmul.f32 0.35355338, %v14509_v28 }
0x2223   : > { %v6193_v30 = vpop.permute.xlu1 %6192 }
0x2224   : > { %11470 = vmatpush3.xpose.msk.msra.mxu1 %vm2172_vm2, %v6193_v30 }
0x2225   : > { %v6115_v31 = vpop.permute.xlu0 %6114  ;;  %11479 = vmatprep.subr.mxu1 %v13460_v20 }
0x2226   : > { %11465 = vmatpush3.xpose.msk.msra.mxu0 %vm2172_vm2, %v6115_v31 }
0x2227   : > { %11472 = vmatmul.mubr.msk.f32.vlgmr.msra.gmra.mxu1 %vm2172_vm2, %v14517_v32  ;;  %11474 = vmatprep.subr.mxu0 %v13460_v20 }
0x2228   : > { %11481 = vmatprep.mubr.msk.f32.mxu1 %vm13461_vm1, %v13460_v20 }
0x2229   : > { %11467 = vmatmul.mubr.msk.f32.vlgmr.msra.gmra.mxu0 %vm2172_vm2, %v14524_v63 }
0x222a   : > { %11476 = vmatprep.mubr.msk.f32.mxu0 %vm13461_vm1, %v13460_v20 }
0x22e7   : > { %v6265_v33 = vpop.f32.mrf.mxu1 }
0x22e8   : > { %v6272_v34 = vsel %vm2172_vm2, %v6265_v33, -inf }
0x22e9   : > { %v11473_v35 = vpop.f32.mrf.mxu1  ;;  %6273 = vmax.xlane.f32.xlu0 %v6272_v34  ;;  %v6187_v37 = vpop.f32.mrf.mxu0 }
0x22ea   : > { %v6269_v4 = vsel %vm2172_vm2, %v6187_v37, -inf }
0x22eb   : > { %6270 = vmax.xlane.f32.xlu1 %v6269_v4  ;;  %v11468_v36 = vpop.f32.mrf.mxu0 }
0x22ec   : > { %v6108_v36 = vld [vmem:[#allocation55 + $0x8] sm:$0xff] }
0x2372   : > { %v6274_v38 = vpop.xlane.xlu0 %6273 }
0x2373   : > { %v6276_v39 = vsub.f32 %v6265_v33, %v6274_v38 }
0x2374   : > { %v6271_v40 = vpop.xlane.xlu1 %6270 }
0x2375   : > { %v6279_v25 = vmul.f32 1.442695, %v6276_v39  ;;  %v6275_v41 = vsub.f32 %v6187_v37, %v6271_v40 }
0x2377   : > { %12207 = vpow2.f32 %v6279_v25  ;;  %v6277_v42 = vmul.f32 1.442695, %v6275_v41 }
0x2379   : > { %12209 = vpow2.f32 %v6277_v42 }
0x2384   : > { %v12208_v24 = vpop.eup %12207 }
0x2385   : > { %v6284_v45 = vsel %vm2172_vm2, %v12208_v24, 0.0 }
0x2386   : > { %v12210_v46 = vpop.eup %12209  ;;  %6285 = vadd.xlane.f32.xlu1 %v6284_v45 }
0x2387   : > { %v6281_v47 = vsel %vm2172_vm2, %v12210_v46, 0.0 }
0x2388   : > { %6282 = vadd.xlane.f32.xlu0 %v6281_v47 }
0x2397   : > { %6367 = vrot.lane.b32.xlu1 %v14507_v61, %s13464_s23 }
0x239b   : > { %6445 = vrot.lane.b32.xlu1 %v14509_v28, %s13463_s5 }
0x239e   : > { %6291 = vrot.lane.b32.xlu0 %v14509_v28, %s13464_s23  ;;  %s15038_s23 = smov 48  }
0x239f   : > { %6523 = vrot.lane.b32.xlu1 %v14507_v61, %s13463_s5 }
0x23a2   : > { %6443 = vrot.lane.b32.xlu0 %v14524_v63, %s13465_s0 }
0x23a3   : > { %6521 = vrot.lane.b32.xlu1 %v14517_v32, %s13465_s0 }
0x240f   : > { %v6286_v48 = vpop.xlane.xlu1 %6285 }
0x2410   : > { %12211 = vrcp.f32 %v6286_v48 }
0x2411   : > { %v6283_v49 = vpop.xlane.xlu0 %6282 }
0x2412   : > { %12213 = vrcp.f32 %v6283_v49 }
0x2413   : > { %v6368_v50 = vpop.permute.xlu1 %6367 }
0x2414   : > { %11480 = vmatpush3.msra.mxu1 %v6368_v50 }
0x2415   : > { %v6292_v51 = vpop.permute.xlu0 %6291  ;;  %11489 = vmatprep.subr.mxu1 %v13460_v20 }
0x2416   : > { %11475 = vmatpush3.msra.mxu0 %v6292_v51 }
0x2417   : > { %v6446_v52 = vpop.permute.xlu1 %6445  ;;  %11484 = vmatprep.subr.mxu0 %v13460_v20 }
0x2419   : > { %v6444_v55 = vpop.permute.xlu0 %6443 }
0x241b   : > { %v6524_v58 = vpop.permute.xlu1 %6523 }
0x241d   : > { %v12212_v29 = vpop.eup %12211 }
0x241e   : > { %v6290_v27 = vmul.f32 %v12212_v29, %v12208_v24 }
0x241f   : > { %v12214_v57 = vpop.eup %12213  ;;  %v6522_v54 = vpop.permute.xlu1 %6521 }
0x2420   : > { %11482 = vmatmul.mubr.msk.f32.vlgmr.msra.gmra.mxu1 %vm2172_vm2, %v6290_v27  ;;  %v6289_v53 = vmul.f32 %v12214_v57, %v12210_v46 }
0x2421   : > { %11490 = vmatpush3.xpose.msk.msra.mxu1 %vm2172_vm2, %v6524_v58  ;;  %11491 = vmatprep.mubr.msk.f32.mxu1 %vm13461_vm1, %v13460_v20 }
0x2422   : > { %11477 = vmatmul.mubr.msk.f32.vlgmr.msra.gmra.mxu0 %vm2172_vm2, %v6289_v53  ;;  %11499 = vmatprep.subr.mxu1 %v13460_v20 }
0x2423   : > { %11485 = vmatpush3.xpose.msk.msra.mxu0 %vm2172_vm2, %v6446_v52  ;;  %11486 = vmatprep.mubr.msk.f32.mxu0 %vm13461_vm1, %v13460_v20 }
0x2424   : > { %11492 = vmatmul.mubr.msk.f32.vlgmr.msra.gmra.mxu1 %vm2172_vm2, %v6522_v54  ;;  %11494 = vmatprep.subr.mxu0 %v13460_v20 }
0x2425   : > { %11501 = vmatprep.mubr.msk.f32.mxu1 %vm13461_vm1, %v13460_v20 }
0x2426   : > { %11487 = vmatmul.mubr.msk.f32.vlgmr.msra.gmra.mxu0 %vm2172_vm2, %v6444_v55 }
0x2427   : > { %11496 = vmatprep.mubr.msk.f32.mxu0 %vm13461_vm1, %v13460_v20 }
0x24e0   : > { %v6439_v56 = vpop.f32.mrf.mxu1 }
0x24e2   : > { %v6363_v59 = vpop.f32.mrf.mxu0  ;;  %v11483_v60 = vpop.f32.mrf.mxu1 }
0x24e4   : > { %v11478_v62 = vpop.f32.mrf.mxu0  ;;  %v6595_v0 = vpop.f32.mrf.mxu1 }
0x24e5   : > { %v6602_v1 = vsel %vm2172_vm2, %v6595_v0, -inf }
0x24e6   : > { %6603 = vmax.xlane.f32.xlu1 %v6602_v1  ;;  %v6517_v2 = vpop.f32.mrf.mxu0  ;;  %v11493_v3 = vpop.f32.mrf.mxu1 }
0x24e7   : > { %v6599_v5 = vsel %vm2172_vm2, %v6517_v2, -inf }
0x24e8   : > { %6600 = vmax.xlane.f32.xlu0 %v6599_v5  ;;  %v11488_v6 = vpop.f32.mrf.mxu0 }
0x24f7   : > { %6697 = vrot.lane.b32.xlu1 %v14507_v61, %s13466_s13 }
0x24fb   : > { %6937 = vrot.lane.b32.xlu1 %v14509_v28, %s13467_s4 }
0x24ff   : > { %7015 = vrot.lane.b32.xlu1 %v14507_v61, %s13467_s4 }
0x2503   : > { %7013 = vrot.lane.b32.xlu1 %v14517_v32, %s13468_s26 }
0x256f   : > { %v6604_v7 = vpop.xlane.xlu1 %6603 }
0x2570   : > { %v6606_v8 = vsub.f32 %v6595_v0, %v6604_v7 }
0x2571   : > { %v6601_v9 = vpop.xlane.xlu0 %6600 }
0x2572   : > { %v6609_v19 = vmul.f32 1.442695, %v6606_v8  ;;  %v6605_v10 = vsub.f32 %v6517_v2, %v6601_v9 }
0x2573   : > { %v6698_v11 = vpop.permute.xlu1 %6697 }
0x2574   : > { %12215 = vpow2.f32 %v6609_v19  ;;  %v6607_v12 = vmul.f32 1.442695, %v6605_v10  ;;  %11500 = vmatpush3.msra.mxu1 %v6698_v11  ;;  %v6109_v10 = vld [vmem:[#allocation55 + $0x10] sm:$0xff] }
0x2575   : > { %11509 = vmatprep.subr.mxu1 %v6107_v14 }
0x2576   : > { %12217 = vpow2.f32 %v6607_v12 }
0x2577   : > { %v6938_v30 = vpop.permute.xlu1 %6937 }
0x257b   : > { %v7016_v35 = vpop.permute.xlu1 %7015 }
0x257f   : > { %v7014_v4 = vpop.permute.xlu1 %7013 }
0x2581   : > { %v12216_v13 = vpop.eup %12215 }
0x2582   : > { %v6614_v15 = vsel %vm2172_vm2, %v12216_v13, 0.0 }
0x2583   : > { %v12218_v17 = vpop.eup %12217  ;;  %6615 = vadd.xlane.f32.xlu0 %v6614_v15 }
0x2584   : > { %v6611_v18 = vsel %vm2172_vm2, %v12218_v17, 0.0 }
0x2587   : > { %6612 = vadd.xlane.f32.xlu0 %v6611_v18 }
0x259d   : > { %6621 = vrot.lane.b32.xlu0 %v14509_v28, %s13466_s13  ;;  %s15039_s13 = smov 104  }
0x25a1   : > { %6935 = vrot.lane.b32.xlu0 %v14524_v63, %s13468_s26 }
0x260c   : > { %v6616_v22 = vpop.xlane.xlu0 %6615 }
0x260d   : > { %12219 = vrcp.f32 %v6616_v22 }
0x2610   : > { %v6613_v23 = vpop.xlane.xlu0 %6612 }
0x2611   : > { %12221 = vrcp.f32 %v6613_v23 }
0x2614   : > { %v6622_v26 = vpop.permute.xlu0 %6621 }
0x2615   : > { %11495 = vmatpush3.msra.mxu0 %v6622_v26 }
0x2616   : > { %11504 = vmatprep.subr.mxu0 %v6108_v36 }
0x2618   : > { %v6936_v45 = vpop.permute.xlu0 %6935 }
0x261a   : > { %v12220_v31 = vpop.eup %12219 }
0x261b   : > { %v6620_v33 = vmul.f32 %v12220_v31, %v12216_v13 }
0x261d   : > { %11502 = vmatmul.mubr.msk.f32.vlgmr.msra.gmra.mxu1 %vm2172_vm2, %v6620_v33 }
0x261e   : > { %v12222_v34 = vpop.eup %12221  ;;  %11511 = vmatprep.mubr.msk.f32.mxu1 %vm2172_vm2, %v6363_v59  ;;  %11510 = vmatpush3.msra.mxu1 %v6107_v14 }
0x261f   : > { %11519 = vmatprep.subr.mxu1 %v13460_v20  ;;  %v6619_v37 = vmul.f32 %v12222_v34, %v12218_v17 }
0x2621   : > { %11497 = vmatmul.mubr.msk.f32.vlgmr.msra.gmra.mxu0 %vm2172_vm2, %v6619_v37  ;;  %11512 = vmatmul.mubr.msk.f32.vlgmr.msra.gmra.mxu1 %vm2172_vm2, %v6439_v56 }
0x2622   : > { %11520 = vmatpush3.xpose.msk.msra.mxu1 %vm2172_vm2, %v7016_v35  ;;  %11521 = vmatprep.mubr.msk.f32.mxu1 %vm13461_vm1, %v13460_v20 }
0x2623   : > { %11529 = vmatprep.subr.mxu1 %v13460_v20  ;;  %11505 = vmatpush3.msra.mxu0 %v6108_v36 }
0x2624   : > { %11514 = vmatprep.subr.mxu0 %v13460_v20 }
0x2625   : > { %11522 = vmatmul.mubr.msk.f32.vlgmr.msra.gmra.mxu1 %vm2172_vm2, %v7014_v4 }
0x2626   : > { %11531 = vmatprep.mubr.msk.f32.mxu1 %vm13461_vm1, %v13460_v20 }
0x26dd   : > { %v6769_v38 = vpop.f32.mrf.mxu1 }
0x26df   : > { %v11503_v39 = vpop.f32.mrf.mxu1 }
0x26e1   : > { %v6693_v40 = vpop.f32.mrf.mxu0  ;;  %v14596_v25 = vpop.f32.mrf.mxu1 }
0x26e2   : > { %11506 = vmatprep.mubr.msk.f32.mxu0 %vm2172_vm2, %v6693_v40 }
0x26e3   : > { %v11498_v41 = vpop.f32.mrf.mxu0  ;;  %11507 = vmatmul.mubr.msk.f32.vlgmr.msra.gmra.mxu0 %vm2172_vm2, %v6769_v38  ;;  %v14600_v42 = vpop.f32.mrf.mxu1 }
0x26e4   : > { %11515 = vmatpush3.xpose.msk.msra.mxu0 %vm2172_vm2, %v6938_v30  ;;  %11516 = vmatprep.mubr.msk.f32.mxu0 %vm13461_vm1, %v13460_v20 }
0x26e5   : > { %v7087_v24 = vpop.f32.mrf.mxu1  ;;  %11524 = vmatprep.subr.mxu0 %v13460_v20 }
0x26e6   : > { %v7094_v46 = vsel %vm2172_vm2, %v7087_v24, -inf }
0x26e7   : > { %7095 = vmax.xlane.f32.xlu1 %v7094_v46  ;;  %11517 = vmatmul.mubr.msk.f32.vlgmr.msra.gmra.mxu0 %vm2172_vm2, %v6936_v45  ;;  %v11523_v47 = vpop.f32.mrf.mxu1 }
0x26e8   : > { %11526 = vmatprep.mubr.msk.f32.mxu0 %vm13461_vm1, %v13460_v20 }
0x26f8   : > { %7189 = vrot.lane.b32.xlu1 %v14507_v61, %s15038_s23 }
0x26fc   : > { %7350 = vrot.lane.b32.xlu1 %v14509_v28, %s13470_s28 }
0x2700   : > { %7428 = vrot.lane.b32.xlu1 %v14507_v61, %s13470_s28 }
0x2704   : > { %7426 = vrot.lane.b32.xlu1 %v14517_v32, %s15039_s13 }
0x2770   : > { %v7096_v48 = vpop.xlane.xlu1 %7095 }
0x2771   : > { %v7098_v50 = vsub.f32 %v7087_v24, %v7096_v48 }
0x2773   : > { %v7101_v51 = vmul.f32 1.442695, %v7098_v50 }
0x2774   : > { %v7190_v49 = vpop.permute.xlu1 %7189 }
0x2775   : > { %11530 = vmatpush3.msra.mxu1 %v7190_v49  ;;  %12223 = vpow2.f32 %v7101_v51 }
0x2776   : > { %11539 = vmatprep.subr.mxu1 %v13460_v20 }
0x2778   : > { %v7351_v2 = vpop.permute.xlu1 %7350 }
0x277c   : > { %v7429_v13 = vpop.permute.xlu1 %7428 }
0x2780   : > { %v7427_v18 = vpop.permute.xlu1 %7426 }
0x2782   : > { %v12224_v57 = vpop.eup %12223 }
0x2783   : > { %v7106_v32 = vsel %vm2172_vm2, %v12224_v57, 0.0 }
0x27a3   : > { %v14619_v52 = vpop.f32.mrf.mxu0 }
0x27a4   : > { %v6932_v31 = vadd.f32 %v14596_v25, %v14619_v52  ;;  %v6110_v52 = vld [vmem:[#allocation55 + $0x18] sm:$0xff] }
0x27a5   : > { %v14621_v29 = vpop.f32.mrf.mxu0 }
0x27a6   : > { %v6927_v34 = vadd.f32 %v14600_v42, %v14621_v29 }
0x27a7   : > { %v7009_v58 = vpop.f32.mrf.mxu0 }
0x27a8   : > { %v7091_v27 = vsel %vm2172_vm2, %v7009_v58, -inf }
0x27a9   : > { %7092 = vmax.xlane.f32.xlu0 %v7091_v27  ;;  %v11518_v53 = vpop.f32.mrf.mxu0 }
0x27ad   : > { %7107 = vadd.xlane.f32.xlu0 %v7106_v32 }
0x2832   : > { %v7093_v54 = vpop.xlane.xlu0 %7092 }
0x2833   : > { %v7097_v55 = vsub.f32 %v7009_v58, %v7093_v54 }
0x2835   : > { %v7099_v56 = vmul.f32 1.442695, %v7097_v55 }
0x2836   : > { %v7108_v59 = vpop.xlane.xlu0 %7107 }
0x2837   : > { %12225 = vpow2.f32 %v7099_v56  ;;  %v10868_v56 = vld [vmem:[#allocation49] ss:$0 sm:$0xff] }
0x2838   : > { %12227 = vrcp.f32 %v7108_v59 }
0x2844   : > { %v12226_v60 = vpop.eup %12225 }
0x2845   : > { %v12228_v62 = vpop.eup %12227  ;;  %v7103_v0 = vsel %vm2172_vm2, %v12226_v60, 0.0 }
0x2846   : > { %7104 = vadd.xlane.f32.xlu0 %v7103_v0  ;;  %v7112_v1 = vmul.f32 %v12228_v62, %v12224_v57 }
0x2848   : > { %11532 = vmatmul.mubr.msk.f32.vlgmr.msra.gmra.mxu1 %vm2172_vm2, %v7112_v1 }
0x2849   : > { %11540 = vmatpush3.xpose.msk.msra.mxu1 %vm2172_vm2, %v7351_v2  ;;  %11541 = vmatprep.mubr.msk.f32.mxu1 %vm13461_vm1, %v13460_v20  ;;  %v10874_v2 = vld [vmem:[#allocation31] ss:$0 sm:$0xff] }
0x284a   : > { %11549 = vmatprep.subr.mxu1 %v13460_v20 }
0x285c   : > { %7113 = vrot.lane.b32.xlu0 %v14509_v28, %s15038_s23  ;;  %s15041_s23 = sld [smem:[#allocation105_spill]] }
0x2860   : > { %7348 = vrot.lane.b32.xlu0 %v14524_v63, %s15039_s13 }
0x2862   : > { %v7910_v57 = vld [vmem:[%s15041_s23 + $0x10] sm:$0xff]  ;;  %v7909_v32 = vld [vmem:[%s15041_s23 + $0x8] sm:$0xff]  ;;  %v7908_v54 = vld [vmem:[%s15041_s23] sm:$0xff] }
0x28cf   : > { %v7105_v3 = vpop.xlane.xlu0 %7104 }
0x28d0   : > { %12229 = vrcp.f32 %v7105_v3 }
0x28d3   : > { %v7114_v5 = vpop.permute.xlu0 %7113 }
0x28d4   : > { %11525 = vmatpush3.msra.mxu0 %v7114_v5 }
0x28d5   : > { %11534 = vmatprep.subr.mxu0 %v6109_v10 }
0x28d7   : > { %v7349_v6 = vpop.permute.xlu0 %7348 }
0x28d8   : > { %11542 = vmatmul.mubr.msk.f32.vlgmr.msra.gmra.mxu1 %vm2172_vm2, %v7349_v6 }
0x28d9   : > { %11551 = vmatprep.mubr.msk.f32.mxu1 %vm13461_vm1, %v13460_v20 }
0x28dd   : > { %v12230_v7 = vpop.eup %12229 }
0x28de   : > { %v7111_v8 = vmul.f32 %v12230_v7, %v12226_v60 }
0x28e0   : > { %11527 = vmatmul.mubr.msk.f32.vlgmr.msra.gmra.mxu0 %vm2172_vm2, %v7111_v8 }
0x28e1   : > { %11535 = vmatpush3.msra.mxu0 %v6109_v10 }
0x28e2   : > { %11544 = vmatprep.subr.mxu0 %v13460_v20 }
0x2908   : > { %v7261_v9 = vpop.f32.mrf.mxu1 }
0x290a   : > { %v11533_v19 = vpop.f32.mrf.mxu1 }
0x2998   : > { %v7422_v63 = vpop.f32.mrf.mxu1 }
0x2999   : > { %v7504_v11 = vsel %vm2172_vm2, %v7422_v63, -inf }
0x299a   : > { %7505 = vmax.xlane.f32.xlu0 %v7504_v11  ;;  %v11543_v12 = vpop.f32.mrf.mxu1 }
0x29a0   : > { %v7185_v15 = vpop.f32.mrf.mxu0 }
0x29a1   : > { %11536 = vmatprep.mubr.msk.f32.mxu0 %vm2172_vm2, %v7185_v15  ;;  %v7819_v15 = vld [vmem:[#allocation40 + $0x18] sm:$0xff] }
0x29a2   : > { %v11528_v17 = vpop.f32.mrf.mxu0  ;;  %11537 = vmatmul.mubr.msk.f32.vlgmr.msra.gmra.mxu0 %vm2172_vm2, %v7261_v9 }
0x29a3   : > { %11545 = vmatpush3.xpose.msk.msra.mxu0 %vm2172_vm2, %v7429_v13  ;;  %11546 = vmatprep.mubr.msk.f32.mxu0 %vm13461_vm1, %v13460_v20  ;;  %v7818_v17 = vld [vmem:[#allocation40 + $0x10] sm:$0xff] }
0x29a4   : > { %11554 = vmatprep.subr.mxu0 %v13460_v20 }
0x29a6   : > { %11547 = vmatmul.mubr.msk.f32.vlgmr.msra.gmra.mxu0 %vm2172_vm2, %v7427_v18  ;;  %v7817_v18 = vld [vmem:[#allocation40 + $0x8] sm:$0xff] }
0x29a7   : > { %11556 = vmatprep.mubr.msk.f32.mxu0 %vm13461_vm1, %v13460_v20 }
0x2a23   : > { %v7506_v14 = vpop.xlane.xlu0 %7505 }
0x2a24   : > { %v7510_v22 = vsub.f32 %v7422_v63, %v7506_v14  ;;  %v7816_v14 = vld [vmem:[#allocation40] sm:$0xff] }
0x2a26   : > { %v7512_v23 = vmul.f32 1.442695, %v7510_v22 }
0x2a28   : > { %12231 = vpow2.f32 %v7512_v23 }
0x2a35   : > { %v12232_v26 = vpop.eup %12231 }
0x2a36   : > { %v7516_v30 = vsel %vm2172_vm2, %v12232_v26, 0.0 }
0x2a37   : > { %7517 = vadd.xlane.f32.xlu0 %v7516_v30 }
0x2a62   : > { %v11538_v33 = vpop.f32.mrf.mxu0 }
0x2a63   : > { %v7347_v35 = vadd.f32 %v11538_v33, %v6932_v31 }
0x2a64   : > { %v7337_v37 = vpop.f32.mrf.mxu0 }
0x2a65   : > { %v7346_v4 = vadd.f32 %v7337_v37, %v6927_v34  ;;  %v10869_v37 = vld [vmem:[#allocation53] ss:$0 sm:$0xff] }
0x2a66   : > { %v7500_v36 = vpop.f32.mrf.mxu0 }
0x2a67   : > { %v7507_v38 = vsel %vm2172_vm2, %v7500_v36, -inf }
0x2a68   : > { %7508 = vmax.xlane.f32.xlu1 %v7507_v38  ;;  %v11548_v39 = vpop.f32.mrf.mxu0 }
0x2a79   : > { %7602 = vrot.lane.b32.xlu1 %v14507_v61, %s15040_s16 }
0x2ac0   : > { %v7518_v46 = vpop.xlane.xlu0 %7517 }
0x2af1   : > { %v7509_v40 = vpop.xlane.xlu1 %7508 }
0x2af2   : > { %v7511_v41 = vsub.f32 %v7500_v36, %v7509_v40  ;;  %v10870_v40 = vld [vmem:[#allocation52] ss:$0 sm:$0xff] }
0x2af4   : > { %v7514_v24 = vmul.f32 1.442695, %v7511_v41 }
0x2af5   : > { %v7603_v45 = vpop.permute.xlu1 %7602 }
0x2af6   : > { %12233 = vpow2.f32 %v7514_v24  ;;  %11555 = vmatpush3.msra.mxu0 %v7603_v45 }
0x2af7   : > { %12235 = vrcp.f32 %v7518_v46  ;;  %11564 = vmatprep.subr.mxu0 %v7819_v15 }
0x2b03   : > { %v12234_v25 = vpop.eup %12233 }
0x2b04   : > { %v7519_v42 = vsel %vm2172_vm2, %v12234_v25, 0.0  ;;  %v12236_v48 = vpop.eup %12235 }
0x2b05   : > { %7520 = vadd.xlane.f32.xlu0 %v7519_v42  ;;  %v7524_v49 = vmul.f32 %v12236_v48, %v12232_v26  ;;  %v10871_v42 = vld [vmem:[#allocation34] ss:$0 sm:$0xff] }
0x2b1b   : > { %7526 = vrot.lane.b32.xlu0 %v14509_v28, %s15040_s16  ;;  %v7911_v28 = vld [vmem:[%s15041_s23 + $0x18] sm:$0xff] }
0x2b8e   : > { %v7521_v47 = vpop.xlane.xlu0 %7520 }
0x2b8f   : > { %12237 = vrcp.f32 %v7521_v47 }
0x2b92   : > { %v7527_v61 = vpop.permute.xlu0 %7526 }
0x2b93   : > { %11550 = vmatpush3.msra.mxu1 %v7527_v61 }
0x2b94   : > { %11552 = vmatmul.mubr.msk.f32.vlgmr.msra.gmra.mxu1 %vm2172_vm2, %v7524_v49  ;;  %11559 = vmatprep.subr.mxu1 %v6110_v52 }
0x2b95   : > { %11560 = vmatpush3.msra.mxu1 %v6110_v52 }
0x2b96   : > { %11575 = vmatprep.subr.mxu1 %v7911_v28 }
0x2b9c   : > { %v12238_v50 = vpop.eup %12237 }
0x2b9d   : > { %v7525_v51 = vmul.f32 %v12238_v50, %v12234_v25 }
0x2b9f   : > { %11557 = vmatmul.mubr.msk.f32.vlgmr.msra.gmra.mxu0 %vm2172_vm2, %v7525_v51 }
0x2ba0   : > { %11565 = vmatpush3.msra.mxu0 %v7819_v15 }
0x2ba1   : > { %11566 = vmatprep.subr.mxu0 %v7818_v17 }
0x2ba2   : > { %11567 = vmatpush3.msra.mxu0 %v7818_v17 }
0x2ba3   : > { %11568 = vmatprep.subr.mxu0 %v7817_v18 }
0x2ba4   : > { %11569 = vmatpush3.msra.mxu0 %v7817_v18 }
0x2ba5   : > { %11570 = vmatprep.subr.mxu0 %v7816_v14 }
0x2ba6   : > { %11571 = vmatpush3.msra.mxu0 %v7816_v14 }
0x2ba7   : > { %11586 = vmatprep.subr.mxu0 %v13460_v20 }
0x2c54   : > { %v7598_v29 = vpop.f32.mrf.mxu1 }
0x2c55   : > { %11561 = vmatprep.mubr.msk.f32.mxu1 %vm2172_vm2, %v7598_v29 }
0x2c56   : > { %v11553_v58 = vpop.f32.mrf.mxu1 }
0x2c5f   : > { %v7674_v27 = vpop.f32.mrf.mxu0 }
0x2c60   : > { %11562 = vmatmul.mubr.msk.f32.vlgmr.msra.gmra.mxu1 %vm2172_vm2, %v7674_v27 }
0x2c61   : > { %11576 = vmatpush3.msra.mxu1 %v7911_v28  ;;  %v11558_v53 = vpop.f32.mrf.mxu0  ;;  %11583 = vmatprep.mubr.msk.f32.mxu1 %vm1998_vm0, %v14288_v43 }
0x2c62   : > { %11577 = vmatprep.subr.mxu1 %v7910_v57 }
0x2c63   : > { %11578 = vmatpush3.msra.mxu1 %v7910_v57 }
0x2c64   : > { %11579 = vmatprep.subr.mxu1 %v7909_v32 }
0x2c65   : > { %11580 = vmatpush3.msra.mxu1 %v7909_v32 }
0x2c66   : > { %11581 = vmatprep.subr.mxu1 %v7908_v54 }
0x2c67   : > { %11582 = vmatpush3.msra.mxu1 %v7908_v54 }
0x2c68   : > { %11584 = vmatmul.mubr.msk.f32.vlgmr.msra.gmra.mxu1 %vm1998_vm0, %v14290_v44  ;;  %11591 = vmatprep.subr.mxu1 %v13460_v20 }
0x2c69   : > { %11593 = vmatprep.mubr.msk.f32.mxu1 %vm13461_vm1, %v13460_v20 }
0x2d20   : > { %v11563_v55 = vpop.f32.mrf.mxu1 }
0x2d21   : > { %v7760_v59 = vadd.f32 %v11563_v55, %v7347_v35 }
0x2d22   : > { %v7750_v43 = vpop.f32.mrf.mxu1 }
0x2d23   : > { %v7769_v60 = vadd.f32 %v10868_v56, %v7760_v59  ;;  %v7759_v62 = vadd.f32 %v7750_v43, %v7346_v4 }
0x2d25   : > { %v7768_v0 = vadd.f32 %v10868_v56, %v7759_v62  ;;  %v7771_v1 = vadd.f32 %v7769_v60, %v14499_v21 }
0x2d27   : > { %v7775_v3 = vsel %vm1998_vm0, %v7771_v1, 0.0  ;;  %v7770_v5 = vadd.f32 %v7768_v0, %v14497_v16 }
0x2d28   : > { %v11585_v44 = vpop.f32.mrf.mxu1  ;;  %7776 = vadd.xlane.f32.xlu0 %v7775_v3 }
0x2d29   : > { %v14679_v6 = vadd.f32 %v11585_v44, %v10874_v2  ;;  %v7772_v7 = vsel %vm1998_vm0, %v7770_v5, 0.0 }
0x2d2a   : > { %7773 = vadd.xlane.f32.xlu1 %v7772_v7  ;;  %v7985_v41 = vpop.f32.mrf.mxu1 }
0x2d2b   : > { %11592 = vmatpush3.xpose.msk.msra.mxu1 %vm2172_vm2, %v14679_v6  ;;  %v14692_v25 = vadd.f32 %v10874_v2, %v7985_v41 }
0x2d2c   : > { %11601 = vmatprep.subr.mxu1 %v13460_v20 }
0x2db1   : > { %v7777_v8 = vpop.xlane.xlu0 %7776 }
0x2db2   : > { %v7779_v9 = vmul.f32 0.03125, %v7777_v8 }
0x2db3   : > { %v7774_v21 = vpop.xlane.xlu1 %7773 }
0x2db4   : > { %v7781_v19 = vsub.f32 %v7771_v1, %v7779_v9  ;;  %v7778_v10 = vmul.f32 0.03125, %v7774_v21 }
0x2db6   : > { %v7780_v63 = vsub.f32 %v7770_v5, %v7778_v10  ;;  %v7783_v11 = vmul.f32 %v7781_v19, %v7781_v19 }
0x2db8   : > { %v7787_v16 = vsel %vm1998_vm0, %v7783_v11, 0.0  ;;  %v7782_v12 = vmul.f32 %v7780_v63, %v7780_v63 }
0x2db9   : > { %7788 = vadd.xlane.f32.xlu1 %v7787_v16 }
0x2dba   : > { %v7784_v13 = vsel %vm1998_vm0, %v7782_v12, 0.0 }
0x2dbb   : > { %7785 = vadd.xlane.f32.xlu0 %v7784_v13 }
0x2e42   : > { %v7789_v22 = vpop.xlane.xlu1 %7788 }
0x2e43   : > { %v7791_v23 = vmul.f32 0.03125, %v7789_v22 }
0x2e44   : > { %v7786_v26 = vpop.xlane.xlu0 %7785 }
0x2e45   : > { %v7793_v30 = vadd.f32 1e-12, %v7791_v23  ;;  %v7790_v31 = vmul.f32 0.03125, %v7786_v26 }
0x2e47   : > { %12239 = vrsqrt.f32 %v7793_v30  ;;  %v7792_v33 = vadd.f32 1e-12, %v7790_v31 }
0x2e49   : > { %12241 = vrsqrt.f32 %v7792_v33 }
0x2e54   : > { %v12240_v34 = vpop.eup %12239 }
0x2e55   : > { %v7797_v35 = vmul.f32 %v12240_v34, %v7781_v19 }
0x2e56   : > { %v12242_v4 = vpop.eup %12241 }
0x2e57   : > { %v7796_v36 = vmul.f32 %v12242_v4, %v7780_v63  ;;  %v7806_v38 = vmul.f32 %v10869_v37, %v7797_v35 }
0x2e59   : > { %v7805_v39 = vmul.f32 %v10869_v37, %v7796_v36  ;;  %v14690_v45 = vadd.f32 %v10870_v40, %v7806_v38 }
0x2e5b   : > { %v14688_v24 = vadd.f32 %v10870_v40, %v7805_v39  ;;  %v7994_v39 = vld [vmem:[#allocation38] sm:$0xff] }
0x2e5d   : > { %11572 = vmatprep.mubr.msk.f32.mxu0 %vm1998_vm0, %v14688_v24 }
0x2e5e   : > { %11573 = vmatmul.mubr.msk.f32.vlgmr.msra.gmra.mxu0 %vm1998_vm0, %v14690_v45 }
0x2e5f   : > { %11587 = vmatpush3.xpose.msk.msra.mxu0 %vm2172_vm2, %v14692_v25  ;;  %11588 = vmatprep.mubr.msk.f32.mxu0 %vm13461_vm1, %v13460_v20 }
0x2e60   : > { %11596 = vmatprep.subr.mxu0 %v13460_v20 }
0x2f1e   : > { %v11574_v46 = vpop.f32.mrf.mxu0 }
0x2f1f   : > { %v7905_v47 = vadd.f32 %v11574_v46, %v10871_v42 }
0x2f20   : > { %v7899_v48 = vpop.f32.mrf.mxu0 }
0x2f21   : > { %v14703_v61 = vmul.f32 0.35355338, %v7905_v47  ;;  %v7900_v49 = vadd.f32 %v10871_v42, %v7899_v48 }
0x2f23   : > { %v14705_v50 = vmul.f32 0.35355338, %v7900_v49  ;;  %11594 = vmatmul.mubr.msk.f32.vlgmr.msra.gmra.mxu1 %vm2172_vm2, %v14703_v61 }
0x2f24   : > { %11603 = vmatprep.mubr.msk.f32.mxu1 %vm13461_vm1, %v13460_v20 }
0x2f25   : > { %11589 = vmatmul.mubr.msk.f32.vlgmr.msra.gmra.mxu0 %vm2172_vm2, %v14705_v50 }
0x2f26   : > { %11598 = vmatprep.mubr.msk.f32.mxu0 %vm13461_vm1, %v13460_v20 }
0x2fe3   : > { %v8148_v51 = vpop.f32.mrf.mxu1 }
0x2fe4   : > { %v8155_v52 = vsel %vm2172_vm2, %v8148_v51, -inf }
0x2fe5   : > { %8156 = vmax.xlane.f32.xlu1 %v8155_v52  ;;  %v8072_v28 = vpop.f32.mrf.mxu0  ;;  %v11595_v29 = vpop.f32.mrf.mxu1 }
0x2fe6   : > { %v8152_v58 = vsel %vm2172_vm2, %v8072_v28, -inf  ;;  %v7995_v29 = vld [vmem:[#allocation38 + $0x8] sm:$0xff] }
0x2fe7   : > { %8153 = vmax.xlane.f32.xlu0 %v8152_v58  ;;  %v11590_v27 = vpop.f32.mrf.mxu0 }
0x306e   : > { %v8157_v57 = vpop.xlane.xlu1 %8156 }
0x306f   : > { %v8159_v53 = vsub.f32 %v8148_v51, %v8157_v57 }
0x3070   : > { %v8154_v32 = vpop.xlane.xlu0 %8153 }
0x3071   : > { %v8162_v54 = vmul.f32 1.442695, %v8159_v53  ;;  %v8158_v55 = vsub.f32 %v8072_v28, %v8154_v32 }
0x3073   : > { %12243 = vpow2.f32 %v8162_v54  ;;  %v8160_v56 = vmul.f32 1.442695, %v8158_v55 }
0x3075   : > { %12245 = vpow2.f32 %v8160_v56 }
0x3080   : > { %v12244_v59 = vpop.eup %12243 }
0x3081   : > { %v8167_v43 = vsel %vm2172_vm2, %v12244_v59, 0.0 }
0x3082   : > { %v12246_v60 = vpop.eup %12245  ;;  %8168 = vadd.xlane.f32.xlu1 %v8167_v43 }
0x3083   : > { %v8164_v62 = vsel %vm2172_vm2, %v12246_v60, 0.0 }
0x3084   : > { %8165 = vadd.xlane.f32.xlu0 %v8164_v62 }
0x3093   : > { %8250 = vrot.lane.b32.xlu1 %v14679_v6, %s13462_s11 }
0x3097   : > { %8328 = vrot.lane.b32.xlu1 %v14692_v25, %s13465_s0 }
0x309a   : > { %8174 = vrot.lane.b32.xlu0 %v14692_v25, %s13462_s11  ;;  %s15042_s11 = sld [smem:[#allocation110_spill]] }
0x309b   : > { %8406 = vrot.lane.b32.xlu1 %v14679_v6, %s13465_s0 }
0x309e   : > { %8326 = vrot.lane.b32.xlu0 %v14705_v50, %s13465_s0 }
0x309f   : > { %8404 = vrot.lane.b32.xlu1 %v14703_v61, %s13465_s0  ;;  %s15044_s0 = sld [smem:[#allocation120_spill]] }
0x310b   : > { %v8169_v0 = vpop.xlane.xlu1 %8168 }
0x310c   : > { %12247 = vrcp.f32 %v8169_v0 }
0x310d   : > { %v8166_v1 = vpop.xlane.xlu0 %8165 }
0x310e   : > { %12249 = vrcp.f32 %v8166_v1 }
0x310f   : > { %v8251_v2 = vpop.permute.xlu1 %8250 }
0x3110   : > { %11602 = vmatpush3.msra.mxu1 %v8251_v2 }
0x3111   : > { %v8175_v3 = vpop.permute.xlu0 %8174  ;;  %11611 = vmatprep.subr.mxu1 %v13460_v20 }
0x3112   : > { %11597 = vmatpush3.msra.mxu0 %v8175_v3 }
0x3113   : > { %v8329_v5 = vpop.permute.xlu1 %8328  ;;  %11606 = vmatprep.subr.mxu0 %v13460_v20 }
0x3115   : > { %v8327_v10 = vpop.permute.xlu0 %8326 }
0x3117   : > { %v8407_v7 = vpop.permute.xlu1 %8406 }
0x3119   : > { %v12248_v44 = vpop.eup %12247 }
0x311a   : > { %v8173_v8 = vmul.f32 %v12248_v44, %v12244_v59 }
0x311b   : > { %v12250_v9 = vpop.eup %12249  ;;  %v8405_v19 = vpop.permute.xlu1 %8404 }
0x311c   : > { %11604 = vmatmul.mubr.msk.f32.vlgmr.msra.gmra.mxu1 %vm2172_vm2, %v8173_v8  ;;  %v8172_v21 = vmul.f32 %v12250_v9, %v12246_v60 }
0x311d   : > { %11612 = vmatpush3.xpose.msk.msra.mxu1 %vm2172_vm2, %v8407_v7  ;;  %11613 = vmatprep.mubr.msk.f32.mxu1 %vm13461_vm1, %v13460_v20 }
0x311e   : > { %11599 = vmatmul.mubr.msk.f32.vlgmr.msra.gmra.mxu0 %vm2172_vm2, %v8172_v21  ;;  %11621 = vmatprep.subr.mxu1 %v13460_v20 }
0x311f   : > { %11607 = vmatpush3.xpose.msk.msra.mxu0 %vm2172_vm2, %v8329_v5  ;;  %11608 = vmatprep.mubr.msk.f32.mxu0 %vm13461_vm1, %v13460_v20 }
0x3120   : > { %11614 = vmatmul.mubr.msk.f32.vlgmr.msra.gmra.mxu1 %vm2172_vm2, %v8405_v19  ;;  %11616 = vmatprep.subr.mxu0 %v13460_v20 }
0x3121   : > { %11623 = vmatprep.mubr.msk.f32.mxu1 %vm13461_vm1, %v13460_v20 }
0x3122   : > { %11609 = vmatmul.mubr.msk.f32.vlgmr.msra.gmra.mxu0 %vm2172_vm2, %v8327_v10 }
0x3123   : > { %11618 = vmatprep.mubr.msk.f32.mxu0 %vm13461_vm1, %v13460_v20 }
0x31dc   : > { %v8322_v63 = vpop.f32.mrf.mxu1 }
0x31de   : > { %v8246_v11 = vpop.f32.mrf.mxu0  ;;  %v11605_v16 = vpop.f32.mrf.mxu1 }
0x31e0   : > { %v11600_v12 = vpop.f32.mrf.mxu0  ;;  %v8478_v13 = vpop.f32.mrf.mxu1 }
0x31e1   : > { %v8485_v15 = vsel %vm2172_vm2, %v8478_v13, -inf }
0x31e2   : > { %8486 = vmax.xlane.f32.xlu1 %v8485_v15  ;;  %v8400_v17 = vpop.f32.mrf.mxu0  ;;  %v11615_v18 = vpop.f32.mrf.mxu1 }
0x31e3   : > { %v8482_v14 = vsel %vm2172_vm2, %v8400_v17, -inf }
0x31e4   : > { %8483 = vmax.xlane.f32.xlu0 %v8482_v14  ;;  %v11610_v22 = vpop.f32.mrf.mxu0 }
0x31f3   : > { %8580 = vrot.lane.b32.xlu1 %v14679_v6, %s13463_s5 }
0x31f7   : > { %8820 = vrot.lane.b32.xlu1 %v14692_v25, %s13468_s26 }
0x31fb   : > { %8898 = vrot.lane.b32.xlu1 %v14679_v6, %s13468_s26 }
0x31ff   : > { %8896 = vrot.lane.b32.xlu1 %v14703_v61, %s13468_s26 }
0x326b   : > { %v8487_v23 = vpop.xlane.xlu1 %8486 }
0x326c   : > { %v8489_v26 = vsub.f32 %v8478_v13, %v8487_v23 }
0x326d   : > { %v8484_v30 = vpop.xlane.xlu0 %8483 }
0x326e   : > { %v8492_v31 = vmul.f32 1.442695, %v8489_v26  ;;  %v8488_v33 = vsub.f32 %v8400_v17, %v8484_v30  ;;  %v7996_v30 = vld [vmem:[#allocation38 + $0x10] sm:$0xff] }
0x326f   : > { %v8581_v34 = vpop.permute.xlu1 %8580 }
0x3270   : > { %12251 = vpow2.f32 %v8492_v31  ;;  %v8490_v35 = vmul.f32 1.442695, %v8488_v33  ;;  %11622 = vmatpush3.msra.mxu1 %v8581_v34 }
0x3271   : > { %11631 = vmatprep.subr.mxu1 %v7994_v39 }
0x3272   : > { %12253 = vpow2.f32 %v8490_v35 }
0x3273   : > { %v8821_v46 = vpop.permute.xlu1 %8820 }
0x3277   : > { %v8899_v51 = vpop.permute.xlu1 %8898 }
0x327b   : > { %v8897_v28 = vpop.permute.xlu1 %8896 }
0x327d   : > { %v12252_v37 = vpop.eup %12251 }
0x327e   : > { %v8497_v4 = vsel %vm2172_vm2, %v12252_v37, 0.0 }
0x327f   : > { %v12254_v36 = vpop.eup %12253  ;;  %8498 = vadd.xlane.f32.xlu0 %v8497_v4 }
0x3280   : > { %v8494_v38 = vsel %vm2172_vm2, %v12254_v36, 0.0 }
0x3283   : > { %8495 = vadd.xlane.f32.xlu0 %v8494_v38 }
0x3299   : > { %8504 = vrot.lane.b32.xlu0 %v14692_v25, %s13463_s5  ;;  %s15043_s5 = sld [smem:[#allocation119_spill]] }
0x329d   : > { %8818 = vrot.lane.b32.xlu0 %v14705_v50, %s13468_s26  ;;  %s1986_s26 = sand.u32 1, %s13359_s15  }
0x329e   : > { %s14892_s2 = scalar_lea.sflag [#allocation4], %s1986_s26 }
0x3308   : > { %v8499_v40 = vpop.xlane.xlu0 %8498 }
0x3309   : > { %12255 = vrcp.f32 %v8499_v40 }
0x330c   : > { %v8496_v41 = vpop.xlane.xlu0 %8495 }
0x330d   : > { %12257 = vrcp.f32 %v8496_v41 }
0x3310   : > { %v8505_v42 = vpop.permute.xlu0 %8504 }
0x3311   : > { %11617 = vmatpush3.msra.mxu0 %v8505_v42 }
0x3312   : > { %11626 = vmatprep.subr.mxu0 %v7995_v29 }
0x3314   : > { %v8819_v56 = vpop.permute.xlu0 %8818 }
0x3316   : > { %v12256_v47 = vpop.eup %12255 }
0x3317   : > { %v8503_v48 = vmul.f32 %v12256_v47, %v12252_v37 }
0x3319   : > { %11624 = vmatmul.mubr.msk.f32.vlgmr.msra.gmra.mxu1 %vm2172_vm2, %v8503_v48 }
0x331a   : > { %v12258_v49 = vpop.eup %12257  ;;  %11633 = vmatprep.mubr.msk.f32.mxu1 %vm2172_vm2, %v8246_v11  ;;  %11632 = vmatpush3.msra.mxu1 %v7994_v39 }
0x331b   : > { %11641 = vmatprep.subr.mxu1 %v13460_v20  ;;  %v8502_v52 = vmul.f32 %v12258_v49, %v12254_v36 }
0x331d   : > { %11619 = vmatmul.mubr.msk.f32.vlgmr.msra.gmra.mxu0 %vm2172_vm2, %v8502_v52  ;;  %11634 = vmatmul.mubr.msk.f32.vlgmr.msra.gmra.mxu1 %vm2172_vm2, %v8322_v63 }
0x331e   : > { %11642 = vmatpush3.xpose.msk.msra.mxu1 %vm2172_vm2, %v8899_v51  ;;  %11643 = vmatprep.mubr.msk.f32.mxu1 %vm13461_vm1, %v13460_v20 }
0x331f   : > { %11651 = vmatprep.subr.mxu1 %v13460_v20  ;;  %11627 = vmatpush3.msra.mxu0 %v7995_v29 }
0x3320   : > { %11636 = vmatprep.subr.mxu0 %v13460_v20 }
0x3321   : > { %11644 = vmatmul.mubr.msk.f32.vlgmr.msra.gmra.mxu1 %vm2172_vm2, %v8897_v28 }
0x3322   : > { %11653 = vmatprep.mubr.msk.f32.mxu1 %vm13461_vm1, %v13460_v20 }
0x33d9   : > { %v8652_v58 = vpop.f32.mrf.mxu1 }
0x33db   : > { %v11625_v27 = vpop.f32.mrf.mxu1 }
0x33dd   : > { %v8576_v57 = vpop.f32.mrf.mxu0  ;;  %v14778_v53 = vpop.f32.mrf.mxu1 }
0x33de   : > { %11628 = vmatprep.mubr.msk.f32.mxu0 %vm2172_vm2, %v8576_v57 }
0x33df   : > { %v11620_v32 = vpop.f32.mrf.mxu0  ;;  %11629 = vmatmul.mubr.msk.f32.vlgmr.msra.gmra.mxu0 %vm2172_vm2, %v8652_v58  ;;  %v14782_v54 = vpop.f32.mrf.mxu1 }
0x33e0   : > { %11637 = vmatpush3.xpose.msk.msra.mxu0 %vm2172_vm2, %v8821_v46  ;;  %11638 = vmatprep.mubr.msk.f32.mxu0 %vm13461_vm1, %v13460_v20 }
0x33e1   : > { %v8970_v55 = vpop.f32.mrf.mxu1  ;;  %11646 = vmatprep.subr.mxu0 %v13460_v20 }
0x33e2   : > { %v8977_v59 = vsel %vm2172_vm2, %v8970_v55, -inf }
0x33e3   : > { %8978 = vmax.xlane.f32.xlu1 %v8977_v59  ;;  %11639 = vmatmul.mubr.msk.f32.vlgmr.msra.gmra.mxu0 %vm2172_vm2, %v8819_v56  ;;  %v11645_v43 = vpop.f32.mrf.mxu1 }
0x33e4   : > { %11648 = vmatprep.mubr.msk.f32.mxu0 %vm13461_vm1, %v13460_v20 }
0x33f4   : > { %9072 = vrot.lane.b32.xlu1 %v14679_v6, %s13467_s4 }
0x33f8   : > { %9233 = vrot.lane.b32.xlu1 %v14692_v25, %s15039_s13 }
0x33fc   : > { %9311 = vrot.lane.b32.xlu1 %v14679_v6, %s15039_s13 }
0x3400   : > { %9309 = vrot.lane.b32.xlu1 %v14703_v61, %s15039_s13 }
0x346c   : > { %v8979_v60 = vpop.xlane.xlu1 %8978 }
0x346d   : > { %v8981_v0 = vsub.f32 %v8970_v55, %v8979_v60 }
0x346f   : > { %v8984_v1 = vmul.f32 1.442695, %v8981_v0 }
0x3470   : > { %v9073_v62 = vpop.permute.xlu1 %9072 }
0x3471   : > { %11652 = vmatpush3.msra.mxu1 %v9073_v62  ;;  %12259 = vpow2.f32 %v8984_v1  ;;  %v7997_v62 = vld [vmem:[#allocation38 + $0x18] sm:$0xff] }
0x3472   : > { %11661 = vmatprep.subr.mxu1 %v13460_v20 }
0x3474   : > { %v9234_v13 = vpop.permute.xlu1 %9233 }
0x3478   : > { %v9312_v34 = vpop.permute.xlu1 %9311 }
0x347c   : > { %v9310_v4 = vpop.permute.xlu1 %9309 }
0x347e   : > { %v12260_v7 = vpop.eup %12259 }
0x347f   : > { %v8989_v61 = vsel %vm2172_vm2, %v12260_v7, 0.0 }
0x349f   : > { %v14801_v2 = vpop.f32.mrf.mxu0 }
0x34a0   : > { %v8815_v42 = vadd.f32 %v14778_v53, %v14801_v2 }
0x34a1   : > { %v14803_v3 = vpop.f32.mrf.mxu0 }
0x34a2   : > { %v8810_v47 = vadd.f32 %v14782_v54, %v14803_v3 }
0x34a3   : > { %v8892_v5 = vpop.f32.mrf.mxu0 }
0x34a4   : > { %v8974_v44 = vsel %vm2172_vm2, %v8892_v5, -inf }
0x34a5   : > { %8975 = vmax.xlane.f32.xlu0 %v8974_v44  ;;  %v11640_v8 = vpop.f32.mrf.mxu0 }
0x34a9   : > { %8990 = vadd.xlane.f32.xlu0 %v8989_v61 }
0x352e   : > { %v8976_v9 = vpop.xlane.xlu0 %8975 }
0x352f   : > { %v8980_v21 = vsub.f32 %v8892_v5, %v8976_v9  ;;  %v10909_v5 = vld [vmem:[#allocation32] ss:$0 sm:$0xff] }
0x3531   : > { %v8982_v19 = vmul.f32 1.442695, %v8980_v21 }
0x3532   : > { %v8991_v10 = vpop.xlane.xlu0 %8990 }
0x3533   : > { %12261 = vpow2.f32 %v8982_v19 }
0x3534   : > { %12263 = vrcp.f32 %v8991_v10 }
0x3540   : > { %v12262_v63 = vpop.eup %12261 }
0x3541   : > { %v12264_v11 = vpop.eup %12263  ;;  %v8986_v16 = vsel %vm2172_vm2, %v12262_v63, 0.0 }
0x3542   : > { %8987 = vadd.xlane.f32.xlu0 %v8986_v16  ;;  %v8995_v12 = vmul.f32 %v12264_v11, %v12260_v7 }
0x3544   : > { %11654 = vmatmul.mubr.msk.f32.vlgmr.msra.gmra.mxu1 %vm2172_vm2, %v8995_v12 }
0x3545   : > { %11662 = vmatpush3.xpose.msk.msra.mxu1 %vm2172_vm2, %v9234_v13  ;;  %11663 = vmatprep.mubr.msk.f32.mxu1 %vm13461_vm1, %v13460_v20 }
0x3546   : > { %11671 = vmatprep.subr.mxu1 %v13460_v20 }
0x3558   : > { %8996 = vrot.lane.b32.xlu0 %v14692_v25, %s13467_s4  ;;  %s15045_s4 = smov %s15044_s0 }
0x355c   : > { %9231 = vrot.lane.b32.xlu0 %v14705_v50, %s15039_s13 }
0x35cb   : > { %v8988_v15 = vpop.xlane.xlu0 %8987 }
0x35cc   : > { %12265 = vrcp.f32 %v8988_v15 }
0x35cf   : > { %v8997_v17 = vpop.permute.xlu0 %8996 }
0x35d0   : > { %11647 = vmatpush3.msra.mxu0 %v8997_v17 }
0x35d1   : > { %11656 = vmatprep.subr.mxu0 %v7996_v30 }
0x35d3   : > { %v9232_v18 = vpop.permute.xlu0 %9231 }
0x35d4   : > { %11664 = vmatmul.mubr.msk.f32.vlgmr.msra.gmra.mxu1 %vm2172_vm2, %v9232_v18 }
0x35d5   : > { %11673 = vmatprep.mubr.msk.f32.mxu1 %vm13461_vm1, %v13460_v20 }
0x35d9   : > { %v12266_v14 = vpop.eup %12265 }
0x35da   : > { %v8994_v22 = vmul.f32 %v12266_v14, %v12262_v63 }
0x35dc   : > { %11649 = vmatmul.mubr.msk.f32.vlgmr.msra.gmra.mxu0 %vm2172_vm2, %v8994_v22 }
0x35dd   : > { %11657 = vmatpush3.msra.mxu0 %v7996_v30  ;;  %v9699_v30 = vld [vmem:[#allocation47] sm:$0xff] }
0x35de   : > { %11666 = vmatprep.subr.mxu0 %v13460_v20 }
0x3604   : > { %v9144_v23 = vpop.f32.mrf.mxu1 }
0x3606   : > { %v11655_v26 = vpop.f32.mrf.mxu1 }
0x3607   : > { %v9700_v26 = vld [vmem:[#allocation47 + $0x8] sm:$0xff] }
0x3694   : > { %v9305_v50 = vpop.f32.mrf.mxu1 }
0x3695   : > { %v9387_v31 = vsel %vm2172_vm2, %v9305_v50, -inf }
0x3696   : > { %9388 = vmax.xlane.f32.xlu0 %v9387_v31  ;;  %v11665_v33 = vpop.f32.mrf.mxu1 }
0x369c   : > { %v9068_v35 = vpop.f32.mrf.mxu0 }
0x369d   : > { %11658 = vmatprep.mubr.msk.f32.mxu0 %vm2172_vm2, %v9068_v35 }
0x369e   : > { %v11650_v37 = vpop.f32.mrf.mxu0  ;;  %11659 = vmatmul.mubr.msk.f32.vlgmr.msra.gmra.mxu0 %vm2172_vm2, %v9144_v23  ;;  %v9702_v23 = vld [vmem:[#allocation47 + $0x18] sm:$0xff] }
0x369f   : > { %11667 = vmatpush3.xpose.msk.msra.mxu0 %vm2172_vm2, %v9312_v34  ;;  %11668 = vmatprep.mubr.msk.f32.mxu0 %vm13461_vm1, %v13460_v20 }
0x36a0   : > { %11676 = vmatprep.subr.mxu0 %v13460_v20 }
0x36a2   : > { %11669 = vmatmul.mubr.msk.f32.vlgmr.msra.gmra.mxu0 %vm2172_vm2, %v9310_v4 }
0x36a3   : > { %11678 = vmatprep.mubr.msk.f32.mxu0 %vm13461_vm1, %v13460_v20 }
0x371f   : > { %v9389_v36 = vpop.xlane.xlu0 %9388 }
0x3720   : > { %v9393_v38 = vsub.f32 %v9305_v50, %v9389_v36 }
0x3722   : > { %v9395_v39 = vmul.f32 1.442695, %v9393_v38  ;;  %v10910_v38 = vld [vmem:[#allocation37] ss:$0 sm:$0xff] }
0x3724   : > { %12267 = vpow2.f32 %v9395_v39 }
0x3731   : > { %v12268_v40 = vpop.eup %12267 }
0x3732   : > { %v9399_v41 = vsel %vm2172_vm2, %v12268_v40, 0.0 }
0x3733   : > { %9400 = vadd.xlane.f32.xlu0 %v9399_v41 }
0x375e   : > { %v11660_v46 = vpop.f32.mrf.mxu0 }
0x375f   : > { %v9230_v48 = vadd.f32 %v11660_v46, %v8815_v42  ;;  %v10911_v46 = vld [vmem:[#allocation35] ss:$0 sm:$0xff] }
0x3760   : > { %v9220_v49 = vpop.f32.mrf.mxu0 }
0x3761   : > { %v9229_v51 = vadd.f32 %v9220_v49, %v8810_v47  ;;  %v9816_v49 = vld [vmem:[%s15042_s11 + $0x38] sm:$0xff] }
0x3762   : > { %v9383_v52 = vpop.f32.mrf.mxu0 }
0x3763   : > { %v9390_v20 = vsel %vm2172_vm2, %v9383_v52, -inf }
0x3764   : > { %9391 = vmax.xlane.f32.xlu1 %v9390_v20  ;;  %v11670_v28 = vpop.f32.mrf.mxu0  ;;  %v9813_v20 = vld [vmem:[%s15042_s11 + $0x20] sm:$0xff] }
0x3765   : > { %v9812_v28 = vld [vmem:[%s15042_s11 + $0x18] sm:$0xff] }
0x3775   : > { %9485 = vrot.lane.b32.xlu1 %v14679_v6, %s13470_s28 }
0x37bc   : > { %v9401_v54 = vpop.xlane.xlu0 %9400 }
0x37ed   : > { %v9392_v29 = vpop.xlane.xlu1 %9391 }
0x37ee   : > { %v9394_v58 = vsub.f32 %v9383_v52, %v9392_v29  ;;  %v9814_v52 = vld [vmem:[%s15042_s11 + $0x28] sm:$0xff]  ;;  %v9811_v29 = vld [vmem:[%s15042_s11 + $0x10] sm:$0xff] }
0x37f0   : > { %v9397_v27 = vmul.f32 1.442695, %v9394_v58  ;;  %v9810_v58 = vld [vmem:[%s15042_s11 + $0x8] sm:$0xff] }
0x37f1   : > { %v9486_v57 = vpop.permute.xlu1 %9485 }
0x37f2   : > { %12269 = vpow2.f32 %v9397_v27  ;;  %11677 = vmatpush3.msra.mxu0 %v9486_v57  ;;  %v9809_v27 = vld [vmem:[%s15042_s11] sm:$0xff]  ;;  %v10912_v57 = vld [vmem:[#allocation41] ss:$0 sm:$0xff] }
0x37f3   : > { %12271 = vrcp.f32 %v9401_v54  ;;  %11686 = vmatprep.subr.mxu0 %v9702_v23 }
0x37ff   : > { %v12270_v53 = vpop.eup %12269 }
0x3800   : > { %v9402_v32 = vsel %vm2172_vm2, %v12270_v53, 0.0  ;;  %v12272_v56 = vpop.eup %12271 }
0x3801   : > { %9403 = vadd.xlane.f32.xlu0 %v9402_v32  ;;  %v9407_v6 = vmul.f32 %v12272_v56, %v12268_v40 }
0x3817   : > { %9409 = vrot.lane.b32.xlu0 %v14692_v25, %s13470_s28  ;;  %s10739_s28 = sshll.u32 %s1986_s26, 4 }
0x3818   : > { %s1988_s13 = scalar_lea.vmem [#allocation62], %s10739_s28 }
0x3819   : > { %s10172_s16 = sshll.u32 %s1988_s13, 4  ;;  %s14885_s16 = int_to_ptr.vmem [resolvable:$true] %s10172_s16 }
0x381a   : > { %s13227_s28 = scalar_lea.vmem %s14885_s16, 256 }
0x381b   : > { %p13228_p10 = scmp.ne.s32.totalorder %s14885_s16, %s13227_s28 }
0x381d   : > { %p13229_p8 = pnand %p13228_p10, %p15046_p7 }
0x381f   : > { %p13230_p11 = pneg %p13229_p8 }
0x388a   : > { %v9404_v55 = vpop.xlane.xlu0 %9403 }
0x388b   : > { %12273 = vrcp.f32 %v9404_v55 }
0x388e   : > { %v9410_v59 = vpop.permute.xlu0 %9409 }
0x388f   : > { %11672 = vmatpush3.msra.mxu1 %v9410_v59 }
0x3890   : > { %11674 = vmatmul.mubr.msk.f32.vlgmr.msra.gmra.mxu1 %vm2172_vm2, %v9407_v6  ;;  %11681 = vmatprep.subr.mxu1 %v7997_v62 }
0x3891   : > { %11682 = vmatpush3.msra.mxu1 %v7997_v62 }
0x3892   : > { %11697 = vmatprep.subr.mxu1 %v9816_v49 }
0x3898   : > { %v12274_v43 = vpop.eup %12273 }
0x3899   : > { %v9408_v60 = vmul.f32 %v12274_v43, %v12270_v53 }
0x389b   : > { %11679 = vmatmul.mubr.msk.f32.vlgmr.msra.gmra.mxu0 %vm2172_vm2, %v9408_v60 }
0x389c   : > { %11687 = vmatpush3.msra.mxu0 %v9702_v23 }
0x3950   : > { %v9481_v0 = vpop.f32.mrf.mxu1 }
0x3951   : > { %11683 = vmatprep.mubr.msk.f32.mxu1 %vm2172_vm2, %v9481_v0 }
0x3952   : > { %v11675_v25 = vpop.f32.mrf.mxu1 }
0x395b   : > { %v9557_v1 = vpop.f32.mrf.mxu0 }
0x395c   : > { %11684 = vmatmul.mubr.msk.f32.vlgmr.msra.gmra.mxu1 %vm2172_vm2, %v9557_v1 }
0x395d   : > { %v11680_v2 = vpop.f32.mrf.mxu0  ;;  %11698 = vmatpush3.msra.mxu1 %v9816_v49 }
0x3a1c   : > { %v11685_v3 = vpop.f32.mrf.mxu1 }
0x3a1d   : > { %v9643_v44 = vadd.f32 %v11685_v3, %v9230_v48 }
0x3a1e   : > { %v9633_v7 = vpop.f32.mrf.mxu1 }
0x3a1f   : > { %v9652_v8 = vadd.f32 %v10909_v5, %v9643_v44  ;;  %v9642_v61 = vadd.f32 %v9633_v7, %v9229_v51  ;;  %v9815_v51 = vld [vmem:[%s15042_s11 + $0x30] sm:$0xff] }
0x3a20   : > { %11699 = vmatprep.subr.mxu1 %v9815_v51 }
0x3a21   : > { %v9651_v9 = vadd.f32 %v10909_v5, %v9642_v61  ;;  %v9654_v21 = vadd.f32 %v9652_v8, %v14690_v45  ;;  %11700 = vmatpush3.msra.mxu1 %v9815_v51 }
0x3a22   : > { %11701 = vmatprep.subr.mxu1 %v9814_v52 }
0x3a23   : > { %v9658_v19 = vsel %vm1998_vm0, %v9654_v21, 0.0  ;;  %v9653_v10 = vadd.f32 %v9651_v9, %v14688_v24  ;;  %v9701_v24 = vld [vmem:[#allocation47 + $0x10] sm:$0xff]  ;;  %11702 = vmatpush3.msra.mxu1 %v9814_v52 }
0x3a24   : > { %9659 = vadd.xlane.f32.xlu0 %v9658_v19  ;;  %11688 = vmatprep.subr.mxu0 %v9701_v24  ;;  %v10915_v19 = vld [vmem:[#allocation43] ss:$0 sm:$0xff] }
0x3a25   : > { %v9655_v63 = vsel %vm1998_vm0, %v9653_v10, 0.0  ;;  %11689 = vmatpush3.msra.mxu0 %v9701_v24  ;;  %11703 = vmatprep.subr.mxu1 %v9813_v20 }
0x3a26   : > { %9656 = vadd.xlane.f32.xlu1 %v9655_v63  ;;  %11690 = vmatprep.subr.mxu0 %v9700_v26 }
0x3a27   : > { %11691 = vmatpush3.msra.mxu0 %v9700_v26  ;;  %11704 = vmatpush3.msra.mxu1 %v9813_v20  ;;  %v10919_v20 = vld [vmem:[#allocation44] ss:$0 sm:$0xff] }
0x3a28   : > { %11692 = vmatprep.subr.mxu0 %v9699_v30  ;;  %11705 = vmatprep.subr.mxu1 %v9812_v28 }
0x3a29   : > { %11693 = vmatpush3.msra.mxu0 %v9699_v30  ;;  %11706 = vmatpush3.msra.mxu1 %v9812_v28 }
0x3a2a   : > { %11707 = vmatprep.subr.mxu1 %v9811_v29 }
0x3a2b   : > { %11708 = vmatpush3.msra.mxu1 %v9811_v29 }
0x3a2c   : > { %11709 = vmatprep.subr.mxu1 %v9810_v58 }
0x3a2d   : > { %11710 = vmatpush3.msra.mxu1 %v9810_v58  ;;  %v10066_v58 = vld [vmem:[%s15044_s0 + $0x28] sm:$0xff]  ;;  %s10931_s0 = sshll.u32 %s13757_s22, 8  ;;  %s13473_s22 = smov [#allocation62]  }
0x3a2e   : > { %11711 = vmatprep.subr.mxu1 %v9809_v27  ;;  %s14889_s1 = scalar_lea.hbm %s13734_s3, %s10931_s0 }
0x3a2f   : > { %11712 = vmatpush3.msra.mxu1 %v9809_v27  ;;  %v10065_v27 = vld [vmem:[%s15045_s4 + $0x20] sm:$0xff] }
0x3aad   : > { %v9660_v11 = vpop.xlane.xlu0 %9659 }
0x3aae   : > { %v9662_v16 = vmul.f32 0.03125, %v9660_v11 }
0x3aaf   : > { %v9657_v12 = vpop.xlane.xlu1 %9656 }
0x3ab0   : > { %v9664_v13 = vsub.f32 %v9654_v21, %v9662_v16  ;;  %v9661_v15 = vmul.f32 0.03125, %v9657_v12 }
0x3ab2   : > { %v9663_v17 = vsub.f32 %v9653_v10, %v9661_v15  ;;  %v9666_v18 = vmul.f32 %v9664_v13, %v9664_v13 }
0x3ab4   : > { %v9670_v14 = vsel %vm1998_vm0, %v9666_v18, 0.0  ;;  %v9665_v22 = vmul.f32 %v9663_v17, %v9663_v17 }
0x3ab5   : > { %9671 = vadd.xlane.f32.xlu1 %v9670_v14 }
0x3ab6   : > { %v9667_v45 = vsel %vm1998_vm0, %v9665_v22, 0.0 }
0x3ab7   : > { %9668 = vadd.xlane.f32.xlu0 %v9667_v45 }
0x3b3e   : > { %v9672_v50 = vpop.xlane.xlu1 %9671 }
0x3b3f   : > { %v9674_v31 = vmul.f32 0.03125, %v9672_v50 }
0x3b40   : > { %v9669_v33 = vpop.xlane.xlu0 %9668 }
0x3b41   : > { %v9676_v34 = vadd.f32 1e-12, %v9674_v31  ;;  %v9673_v35 = vmul.f32 0.03125, %v9669_v33  ;;  %v9954_v33 = vld [vmem:[%s15043_s5 + $0x18] sm:$0xff] }
0x3b42   : > { %11716 = vmatprep.subr.mxu0 %v9954_v33 }
0x3b43   : > { %12275 = vrsqrt.f32 %v9676_v34  ;;  %v9675_v37 = vadd.f32 1e-12, %v9673_v35  ;;  %v9953_v34 = vld [vmem:[%s15043_s5 + $0x10] sm:$0xff]  ;;  %v9952_v35 = vld [vmem:[%s15043_s5 + $0x8] sm:$0xff] }
0x3b45   : > { %12277 = vrsqrt.f32 %v9675_v37  ;;  %v9951_v37 = vld [vmem:[%s15043_s5] sm:$0xff] }
0x3b50   : > { %v12276_v4 = vpop.eup %12275 }
0x3b51   : > { %v9680_v36 = vmul.f32 %v12276_v4, %v9664_v13 }
0x3b52   : > { %v12278_v39 = vpop.eup %12277 }
0x3b53   : > { %v9679_v40 = vmul.f32 %v12278_v39, %v9663_v17  ;;  %v9689_v41 = vmul.f32 %v10910_v38, %v9680_v36 }
0x3b55   : > { %v9688_v42 = vmul.f32 %v10910_v38, %v9679_v40  ;;  %v9698_v48 = vadd.f32 %v10911_v46, %v9689_v41 }
0x3b57   : > { %v9697_v47 = vadd.f32 %v10911_v46, %v9688_v42 }
0x3b59   : > { %11694 = vmatprep.mubr.msk.f32.mxu0 %vm1998_vm0, %v9697_v47 }
0x3b5a   : > { %11695 = vmatmul.mubr.msk.f32.vlgmr.msra.gmra.mxu0 %vm1998_vm0, %v9698_v48 }
0x3b5b   : > { %11717 = vmatpush3.msra.mxu0 %v9954_v33 }
0x3b5c   : > { %11718 = vmatprep.subr.mxu0 %v9953_v34 }
0x3b5d   : > { %11719 = vmatpush3.msra.mxu0 %v9953_v34 }
0x3b5e   : > { %11720 = vmatprep.subr.mxu0 %v9952_v35 }
0x3b5f   : > { %11721 = vmatpush3.msra.mxu0 %v9952_v35 }
0x3b60   : > { %11722 = vmatprep.subr.mxu0 %v9951_v37 }
0x3b61   : > { %11723 = vmatpush3.msra.mxu0 %v9951_v37 }
0x3b62   : > { %11727 = vmatprep.subr.mxu0 %v10066_v58 }
0x3c1a   : > { %v11696_v53 = vpop.f32.mrf.mxu0 }
0x3c1b   : > { %v9788_v32 = vadd.f32 %v11696_v53, %v10912_v57  ;;  %v10063_v53 = vld [vmem:[%s15045_s4 + $0x10] sm:$0xff] }
0x3c1c   : > { %v9782_v54 = vpop.f32.mrf.mxu0 }
0x3c1d   : > { %v9792_v55 = vmul.f32 %v9788_v32, %v9788_v32  ;;  %v9783_v56 = vadd.f32 %v10912_v57, %v9782_v54  ;;  %v10064_v57 = vld [vmem:[%s15045_s4 + $0x18] sm:$0xff]  ;;  %v10061_v54 = vld [vmem:[%s15045_s4] sm:$0xff] }
0x3c1f   : > { %v9794_v59 = vmul.f32 %v9792_v55, %v9788_v32  ;;  %v9791_v6 = vmul.f32 %v9783_v56, %v9783_v56  ;;  %v10920_v55 = vld [vmem:[#allocation58] ss:$0 sm:$0xff] }
0x3c21   : > { %v9796_v43 = vmul.f32 0.044715, %v9794_v59  ;;  %v9793_v60 = vmul.f32 %v9791_v6, %v9783_v56 }
0x3c23   : > { %v9798_v62 = vadd.f32 %v9796_v43, %v9788_v32  ;;  %v9795_v0 = vmul.f32 0.044715, %v9793_v60 }
0x3c25   : > { %v9800_v25 = vmul.f32 0.7978846, %v9798_v62  ;;  %v9797_v1 = vadd.f32 %v9795_v0, %v9783_v56 }
0x3c27   : > { %12279 = vtanh.f32 %v9800_v25  ;;  %v9799_v2 = vmul.f32 0.7978846, %v9797_v1 }
0x3c29   : > { %12281 = vtanh.f32 %v9799_v2 }
0x3c34   : > { %v12280_v3 = vpop.eup %12279 }
0x3c35   : > { %v9804_v5 = vadd.f32 1.0, %v12280_v3 }
0x3c36   : > { %v12282_v44 = vpop.eup %12281 }
0x3c37   : > { %v9803_v7 = vadd.f32 1.0, %v12282_v44  ;;  %v9806_v8 = vmul.f32 0.5, %v9804_v5 }
0x3c39   : > { %v9805_v61 = vmul.f32 0.5, %v9803_v7  ;;  %v9808_v21 = vmul.f32 %v9806_v8, %v9788_v32  ;;  %v10062_v32 = vld [vmem:[%s15045_s4 + $0x8] sm:$0xff]  ;;  %s13231_s4 = sshll.u32 %s13473_s22, 4  ;;  %s13232_s4 = int_to_ptr.vmem [resolvable:$false] %s13231_s4 }
0x3c3a   : > { %s13233_s5 = scalar_lea.vmem %s13232_s4, 512  ;;  %p13234_p12 = scmp.lt.s32.totalorder %s14885_s16, %s13232_s4 }
0x3c3b   : > { %v9807_v9 = vmul.f32 %v9805_v61, %v9783_v56  ;;  %p13235_p13 = scmp.lt.s32.totalorder %s13233_s5, %s13227_s28 }
0x3c3d   : > { %11713 = vmatprep.mubr.msk.f32.mxu1 %vm5887_vm3, %v9807_v9  ;;  %p13236_p0 = por %p13235_p13, %p13234_p12 }
0x3c3e   : > { %11714 = vmatmul.mubr.msk.f32.vlgmr.msra.gmra.mxu1 %vm5887_vm3, %v9808_v21 }
0x3c3f   : > { %p13237_p1 = pnand %p13236_p0, %p13230_p11 }
0x3cfe   : > { %v11715_v10 = vpop.f32.mrf.mxu1 }
0x3cff   : > { %v9902_v63 = vadd.f32 %v11715_v10, %v10915_v19 }
0x3d00   : > { %v9896_v11 = vpop.f32.mrf.mxu1 }
0x3d01   : > { %v9906_v16 = vadd.f32 %v9902_v63, %v9698_v48  ;;  %v9897_v12 = vadd.f32 %v10915_v19, %v9896_v11 }
0x3d03   : > { %v9905_v13 = vadd.f32 %v9897_v12, %v9697_v47  ;;  %v9910_v15 = vsel %vm1998_vm0, %v9906_v16, 0.0  ;;  %v10918_v47 = vld [vmem:[#allocation46] ss:$0 sm:$0xff] }
0x3d04   : > { %9911 = vadd.xlane.f32.xlu1 %v9910_v15 }
0x3d05   : > { %v9907_v17 = vsel %vm1998_vm0, %v9905_v13, 0.0 }
0x3d06   : > { %9908 = vadd.xlane.f32.xlu0 %v9907_v17 }
0x3d8d   : > { %v9912_v18 = vpop.xlane.xlu1 %9911 }
0x3d8e   : > { %v9914_v14 = vmul.f32 0.03125, %v9912_v18 }
0x3d8f   : > { %v9909_v22 = vpop.xlane.xlu0 %9908 }
0x3d90   : > { %v9916_v45 = vsub.f32 %v9906_v16, %v9914_v14  ;;  %v9913_v23 = vmul.f32 0.03125, %v9909_v22  ;;  %v10923_v16 = vld [vmem:[#allocation59] ss:$0 sm:$0xff] }
0x3d92   : > { %v9915_v24 = vsub.f32 %v9905_v13, %v9913_v23  ;;  %v9918_v26 = vmul.f32 %v9916_v45, %v9916_v45 }
0x3d94   : > { %v9922_v30 = vsel %vm1998_vm0, %v9918_v26, 0.0  ;;  %v9917_v50 = vmul.f32 %v9915_v24, %v9915_v24 }
0x3d95   : > { %9923 = vadd.xlane.f32.xlu1 %v9922_v30 }
0x3d96   : > { %v9919_v31 = vsel %vm1998_vm0, %v9917_v50, 0.0 }
0x3d97   : > { %9920 = vadd.xlane.f32.xlu0 %v9919_v31 }
0x3e1e   : > { %v9924_v4 = vpop.xlane.xlu1 %9923 }
0x3e1f   : > { %v9926_v36 = vmul.f32 0.03125, %v9924_v4 }
0x3e20   : > { %v9921_v38 = vpop.xlane.xlu0 %9920 }
0x3e21   : > { %v9928_v39 = vadd.f32 1e-12, %v9926_v36  ;;  %v9925_v40 = vmul.f32 0.03125, %v9921_v38 }
0x3e23   : > { %12283 = vrsqrt.f32 %v9928_v39  ;;  %v9927_v41 = vadd.f32 1e-12, %v9925_v40 }
0x3e25   : > { %12285 = vrsqrt.f32 %v9927_v41 }
0x3e30   : > { %v12284_v42 = vpop.eup %12283 }
0x3e31   : > { %v9932_v46 = vmul.f32 %v12284_v42, %v9916_v45 }
0x3e32   : > { %v12286_v48 = vpop.eup %12285 }
0x3e33   : > { %v9931_v49 = vmul.f32 %v12286_v48, %v9915_v24  ;;  %v9941_v51 = vmul.f32 %v10918_v47, %v9932_v46 }
0x3e35   : > { %v9940_v52 = vmul.f32 %v10918_v47, %v9931_v49  ;;  %v9950_v29 = vadd.f32 %v10919_v20, %v9941_v51 }
0x3e37   : > { %v9949_v28 = vadd.f32 %v10919_v20, %v9940_v52 }
0x3e39   : > { %11724 = vmatprep.mubr.msk.f32.mxu0 %vm1998_vm0, %v9949_v28 }
0x3e3a   : > { %11725 = vmatmul.mubr.msk.f32.vlgmr.msra.gmra.mxu0 %vm1998_vm0, %v9950_v29 }
0x3e3b   : > { %11728 = vmatpush3.msra.mxu0 %v10066_v58 }
0x3e3c   : > { %11729 = vmatprep.subr.mxu0 %v10065_v27 }
0x3e3d   : > { %11730 = vmatpush3.msra.mxu0 %v10065_v27 }
0x3e3e   : > { %11731 = vmatprep.subr.mxu0 %v10064_v57 }
0x3e3f   : > { %11732 = vmatpush3.msra.mxu0 %v10064_v57 }
0x3e40   : > { %11733 = vmatprep.subr.mxu0 %v10063_v53 }
0x3e41   : > { %11734 = vmatpush3.msra.mxu0 %v10063_v53 }
0x3e42   : > { %11735 = vmatprep.subr.mxu0 %v10062_v32 }
0x3e43   : > { %11736 = vmatpush3.msra.mxu0 %v10062_v32 }
0x3e44   : > { %11737 = vmatprep.subr.mxu0 %v10061_v54 }
0x3e45   : > { %11738 = vmatpush3.msra.mxu0 %v10061_v54 }
0x3efa   : > { %v11726_v56 = vpop.f32.mrf.mxu0 }
0x3efb   : > { %v10040_v59 = vadd.f32 %v11726_v56, %v10920_v55 }
0x3efc   : > { %v10034_v6 = vpop.f32.mrf.mxu0 }
0x3efd   : > { %v10044_v43 = vmul.f32 %v10040_v59, %v10040_v59  ;;  %v10035_v60 = vadd.f32 %v10920_v55, %v10034_v6 }
0x3eff   : > { %v10046_v62 = vmul.f32 %v10044_v43, %v10040_v59  ;;  %v10043_v0 = vmul.f32 %v10035_v60, %v10035_v60 }
0x3f01   : > { %v10048_v25 = vmul.f32 0.044715, %v10046_v62  ;;  %v10045_v1 = vmul.f32 %v10043_v0, %v10035_v60 }
0x3f03   : > { %v10050_v2 = vadd.f32 %v10048_v25, %v10040_v59  ;;  %v10047_v3 = vmul.f32 0.044715, %v10045_v1 }
0x3f05   : > { %v10052_v5 = vmul.f32 0.7978846, %v10050_v2  ;;  %v10049_v44 = vadd.f32 %v10047_v3, %v10035_v60 }
0x3f07   : > { %12287 = vtanh.f32 %v10052_v5  ;;  %v10051_v7 = vmul.f32 0.7978846, %v10049_v44 }
0x3f09   : > { %12289 = vtanh.f32 %v10051_v7 }
0x3f14   : > { %v12288_v8 = vpop.eup %12287 }
0x3f15   : > { %v10056_v61 = vadd.f32 1.0, %v12288_v8 }
0x3f16   : > { %v12290_v9 = vpop.eup %12289 }
0x3f17   : > { %v10055_v21 = vadd.f32 1.0, %v12290_v9  ;;  %v10058_v19 = vmul.f32 0.5, %v10056_v61 }
0x3f19   : > { %v10057_v10 = vmul.f32 0.5, %v10055_v21  ;;  %v10060_v11 = vmul.f32 %v10058_v19, %v10040_v59 }
0x3f1b   : > { %v10059_v63 = vmul.f32 %v10057_v10, %v10035_v60 }
0x3f1d   : > { %11739 = vmatprep.mubr.msk.f32.mxu0 %vm10074_vm4, %v10059_v63 }
0x3f1e   : > { %11740 = vmatmul.mubr.msk.f32.vlgmr.msra.gmra.mxu0 %vm10074_vm4, %v10060_v11 }
0x3fde   : > { %v11741_v12 = vpop.f32.mrf.mxu0 }
0x3fdf   : > { %v10153_v13 = vadd.f32 %v11741_v12, %v10923_v16 }
0x3fe0   : > { %v10147_v15 = vpop.f32.mrf.mxu0 }
0x3fe1   : > { %10157 = vst.msk [vmem:[%s1988_s13 + $0x8] sm:$0xff] %vm10074_vm4, %v10153_v13  ;;  %v10148_v17 = vadd.f32 %v10923_v16, %v10147_v15 }
0x3fe3   : > { %10156 = vst.msk [vmem:[%s1988_s13] sm:$0xff] %vm10074_vm4, %v10148_v17 }
0x3fe4   : > { %13240 = shalt.err (!%p13237_p1)
}
0x3fe5   : > { %s13241_s26 = scalar_lea.hbm %s14889_s1, 256  ;;  %s13245_s13 = scalar_lea.hbm %s13734_s3, 512 }
0x3fe6   : > { %p13242_p2 = scmp.ne.s32.totalorder %s14889_s1, %s13241_s26  ;;  %p13246_p5 = scmp.lt.s32.totalorder %s14889_s1, %s13734_s3 }
0x3fe7   : > { %p13247_p4 = scmp.lt.s32.totalorder %s13245_s13, %s13241_s26 }
0x3fe8   : > { %p13243_p3 = pnand %p13242_p2, %p15046_p7 }
0x3fe9   : > { %p13248_p9 = por %p13247_p4, %p13246_p5 }
0x3fea   : > { %p13244_p6 = pneg %p13243_p3 }
0x3fec   : > { %p13249_p10 = pnand %p13248_p9, %p13244_p6 }
0x3fee   : > { %13252 = shalt.err (!%p13249_p10)
}
0x3fef   : > { %s13474_s5 = smov 128   ;;  %s13475_s4 = smov 8  }
0x3ff0   : > { %11898 = dma.vmem_to_hbm [thread:$0]  (%p15046_p7), %s14885_s16, 256, %s14889_s1, %s14892_s2, %s13474_s5, %s13474_s5, %s13475_s4  }
0x3ff1 PF: > { %s15047_s0 = sld [smem:[#allocation121_spill]]  ;;  %p11982_p8 = scmp.ge.s32.totalorder %s13367_s18, 2 }
0x3ff2   : > { %s15048_s28 = sld [smem:[#allocation125_spill]] }
0x3ff7   : > { %s10187_s22 = sand.u32 1, %s15047_s0  }
0x3ff8   : > { %p15049_p11 = scmp.ne.s32.totalorder %s15048_s28, 0  ;;  %s10188_s26 = scalar_lea.sflag [#allocation4], %s10187_s22 }
0x3ffa   : > { %p11901_p12 = pnand %p11982_p8, %p15049_p11 }
0x3ffc   : > { %p11902_p13 = pneg %p11901_p12 }
0x3ffe   : > { %13350 = dma.done.wait (%p11902_p13), %s10188_s26, 256  }
0x3fff   : > { %13352 = vsyncadd (%p11902_p13), %s10188_s26, 4294967040  ;;  %s15050_s18 = sld [smem:[#allocation123_spill]]  ;;  %s15053_s0 = smov %s13359_s15 }
0x4000   : > { %s15051_s13 = sld [smem:[#allocation122_spill]] }
0x4001   : > { %s15052_s16 = sld [smem:[#allocation124_spill]] }
0x4005   : > { %p131_p0 = scmp.ge.s32.totalorder %s15050_s18, 4  }
0x4006   : > { %s15054_s15 = smov %s15051_s13 }
0x4007   :  { %133 = sbr.rel (!%p131_p0) target bundleno = 116 (0x74), region = 462 }
0x400c   :  { %10193 = vsyncpa [#allocation3], 1 }
0x400d   :  { %10195 = vsyncpa [#allocation3 + $0x1], 1 }
0x400e   :  { %10196 = vsyncpa [#allocation6], 1 }
0x400f   :  { %10197 = vsyncpa [#allocation9], 1 }
0x4010   :  { %10198 = vsyncpa [#allocation12], 1 }
0x4011   :  { %10199 = vsyncpa [#allocation15], 1 }
0x4012   :  { %10200 = vsyncpa [#allocation18], 1 }
0x4013   :  { %10201 = vsyncpa [#allocation21], 1 }
0x4014   :  { %10202 = vsyncpa [#allocation24], 1 }
0x4015   :  { %10203 = vsyncpa [#allocation27], 1 }
0x4016   :  { %10204 = vsyncpa [#allocation30], 1 }
0x4017   :  { %10205 = vsyncpa [#allocation33], 1 }
0x4018   :  { %10206 = vsyncpa [#allocation36], 1 }
0x4019   :  { %10207 = vsyncpa [#allocation39], 1 }
0x401a   :  { %10208 = vsyncpa [#allocation42], 1 }
0x401b   :  { %10209 = vsyncpa [#allocation45], 1 }
0x401c   :  { %10210 = vsyncpa [#allocation48], 1 }
0x401d   :  { %10211 = vsyncpa [#allocation51], 1 }
0x401e   :  { %10212 = vsyncpa [#allocation54], 1 }
0x401f   :  { %10213 = vsyncpa [#allocation57], 1 }
0x4020   :  { %10214 = vsyncpa [#allocation60], 1 }
0x4021   :  { %10215 = vsyncpa [#allocation4], 1 }
0x4022   :  { %10217 = vsyncpa [#allocation4 + $0x1], 1 }

</bundles_post_ra>
